<compile_context>
chip_gen: v7x
topology: tpu7x:2x2x1
jax: 0.10.0
libtpu: 0.0.40
codegen_flags: <defaults>
</compile_context>

<pallas_src>
import math

import jax
import jax.numpy as jnp
from jax import lax
from jax.experimental import pallas as pl
from jax.experimental.pallas import tpu as pltpu


# ----------------------------------------------------------------------------
# Helpers
# ----------------------------------------------------------------------------
def _round_up(x, m):
    return ((x + m - 1) // m) * m


def _choose_time_block(T, max_tt=32):
    """Largest divisor of T that is <= max_tt (exact grid, no time padding)."""
    tt = min(T, max_tt)
    while T % tt != 0:
        tt -= 1
    return tt


def _pad_gate_cols(w, H, H_pad):
    """(..., 4*H) -> (..., 4*H_pad): place each gate slab [i,f,g,o] at a 128-lane-aligned
    column offset; padding columns are zero so padded hidden lanes stay exactly zero."""
    if H_pad == H:
        return w
    out = jnp.zeros(w.shape[:-1] + (4 * H_pad,), w.dtype)
    for g in range(4):
        out = out.at[..., g * H_pad:g * H_pad + H].set(w[..., g * H:(g + 1) * H])
    return out


# ----------------------------------------------------------------------------
# Fused kernel: all LSTM layers + final linear, time-blocked recurrence
# ----------------------------------------------------------------------------
def _make_fused_kernel(num_layers, TT, B_pad, H_pad):
    def kernel(*refs):
        idx = 0
        x_ref = refs[idx]; idx += 1
        w_ih, w_hh, b = [], [], []
        for _ in range(num_layers):
            w_ih.append(refs[idx]); w_hh.append(refs[idx + 1]); b.append(refs[idx + 2])
            idx += 3
        w_lin_ref, b_lin_ref = refs[idx], refs[idx + 1]; idx += 2
        out_ref = refs[idx]; idx += 1
        h_refs, c_refs = [], []
        for _ in range(num_layers):
            h_refs.append(refs[idx]); c_refs.append(refs[idx + 1]); idx += 2
        proj_scr, hseq_scr = refs[idx], refs[idx + 1]

        tb = pl.program_id(0)

        @pl.when(tb == 0)
        def _init():  # hidden_init=None in the PyTorch forward -> zeros
            for l in range(num_layers):
                h_refs[l][...] = jnp.zeros_like(h_refs[l])
                c_refs[l][...] = jnp.zeros_like(c_refs[l])

        for l in range(num_layers):
            # ---- hoisted input projection: ONE matmul for all TT timesteps ----
            inp = x_ref[...] if l == 0 else hseq_scr[...]
            proj_scr[...] = (
                jnp.dot(inp.astype(w_ih[l].dtype), w_ih[l][...],
                        preferred_element_type=jnp.float32)
                + b[l][...])

            last_layer = (l == num_layers - 1)

            # ---- recurrence: only h @ W_hh stays on the serial per-step path ----
            def step(tt, carry, l=l, last_layer=last_layer):
                row0 = pl.multiple_of(tt * B_pad, B_pad)
                h = h_refs[l][...]
                c = c_refs[l][...]
                gates = (proj_scr[pl.ds(row0, B_pad), :]
                         + jnp.dot(h.astype(w_hh[l].dtype), w_hh[l][...],
                                   preferred_element_type=jnp.float32))
                # PyTorch gate order [i, f, g, o]; each slab is 128-lane aligned.
                i_g = jax.nn.sigmoid(gates[:, 0 * H_pad:1 * H_pad])
                f_g = jax.nn.sigmoid(gates[:, 1 * H_pad:2 * H_pad])
                g_g = jnp.tanh(gates[:, 2 * H_pad:3 * H_pad])
                o_g = jax.nn.sigmoid(gates[:, 3 * H_pad:4 * H_pad])
                c_new = f_g * c + i_g * g_g
                h_new = o_g * jnp.tanh(c_new)
                c_refs[l][...] = c_new
                h_refs[l][...] = h_new
                if not last_layer:  # next layer consumes this block's hidden sequence
                    hseq_scr[pl.ds(row0, B_pad), :] = h_new
                return carry

            lax.fori_loop(0, TT, step, 0, unroll=True)

        # ---- fused final projection: embeds_raw = hidden[-1] @ W_lin + b_lin ----
        @pl.when(tb == pl.num_programs(0) - 1)
        def _final():
            h_last = h_refs[num_layers - 1][...]
            out_ref[...] = (
                jnp.dot(h_last.astype(w_lin_ref.dtype), w_lin_ref[...],
                        preferred_element_type=jnp.float32)
                + b_lin_ref[...])

    return kernel


# ----------------------------------------------------------------------------
# Parameter construction (PyTorch-like uniform(-1/sqrt(H), 1/sqrt(H)), pre-padded/packed)
# ----------------------------------------------------------------------------
def init_params(key, input_size, hidden_size, embedding_size, num_layers,
                compute_dtype=jnp.bfloat16):
    H = hidden_size
    H_pad = _round_up(H, 128)
    bound = 1.0 / math.sqrt(H)
    params = {"lstm": [], "linear": {}, "dims": (input_size, H, H_pad, embedding_size)}
    for layer in range(num_layers):
        d_in = input_size if layer == 0 else H
        key, k1, k2, k3, k4 = jax.random.split(key, 5)
        # Stored transposed for the kernel: (D_in, 4H) / (H, 4H); gate order i, f, g, o.
        w_ih = jax.random.uniform(k1, (d_in, 4 * H), jnp.float32, -bound, bound)
        w_hh = jax.random.uniform(k2, (H, 4 * H), jnp.float32, -bound, bound)
        b_ih = jax.random.uniform(k3, (4 * H,), jnp.float32, -bound, bound)
        b_hh = jax.random.uniform(k4, (4 * H,), jnp.float32, -bound, bound)
        w_ih_p = _pad_gate_cols(w_ih, H, H_pad)
        w_hh_p = _pad_gate_cols(w_hh, H, H_pad)
        if layer > 0:  # layer input is the (padded) hidden of the previous layer
            w_ih_p = jnp.pad(w_ih_p, ((0, H_pad - H), (0, 0)))
        w_hh_p = jnp.pad(w_hh_p, ((0, H_pad - H), (0, 0)))
        b_p = _pad_gate_cols((b_ih + b_hh)[None, :], H, H_pad)
        params["lstm"].append({
            "w_ih": w_ih_p.astype(compute_dtype),
            "w_hh": w_hh_p.astype(compute_dtype),
            "b": b_p.astype(jnp.float32),
        })
    key, k1, k2 = jax.random.split(key, 3)
    w_lin = jax.random.uniform(k1, (H, embedding_size), jnp.float32, -bound, bound)
    b_lin = jax.random.uniform(k2, (1, embedding_size), jnp.float32, -bound, bound)
    params["linear"]["w"] = jnp.pad(w_lin, ((0, H_pad - H), (0, 0))).astype(compute_dtype)
    params["linear"]["b"] = b_lin.astype(jnp.float32)
    return params


# ----------------------------------------------------------------------------
# Full forward: MelLSTMClf.forward(utterances)
# ----------------------------------------------------------------------------
def mel_lstm_clf_forward(params, utterances):
    """utterances: (B, T, input_size), batch_first like the PyTorch module."""
    B, T, D = utterances.shape
    num_layers = len(params["lstm"])
    H_pad = params["lstm"][0]["w_hh"].shape[0]
    E = params["linear"]["w"].shape[1]

    B_pad = _round_up(max(B, 1), 8)       # full sublane group
    TT = _choose_time_block(T)            # timesteps per grid step
    T_blocks = T // TT

    # Time-major, batch padded, flattened to a lane-friendly 2D slab: rows [t*B_pad:(t+1)*B_pad].
    x = jnp.transpose(utterances, (1, 0, 2)).astype(jnp.bfloat16)     # (T, B, D)
    x = jnp.pad(x, ((0, 0), (0, B_pad - B), (0, 0)))                  # (T, B_pad, D)
    x2d = x.reshape(T * B_pad, D)

    in_arrays = [x2d]
    in_specs = [pl.BlockSpec((TT * B_pad, D), lambda tb: (tb, 0))]
    for lp in params["lstm"]:
        d_in = lp["w_ih"].shape[0]
        in_arrays += [lp["w_ih"], lp["w_hh"], lp["b"]]
        in_specs += [
            pl.BlockSpec((d_in, 4 * H_pad), lambda tb: (0, 0)),   # W_ih (resident)
            pl.BlockSpec((H_pad, 4 * H_pad), lambda tb: (0, 0)),  # W_hh (resident)
            pl.BlockSpec((1, 4 * H_pad), lambda tb: (0, 0)),      # bias (resident)
        ]
    in_arrays += [params["linear"]["w"], params["linear"]["b"]]
    in_specs += [pl.BlockSpec((H_pad, E), lambda tb: (0, 0)),
                 pl.BlockSpec((1, E), lambda tb: (0, 0))]

    scratch_shapes = []
    for _ in range(num_layers):
        scratch_shapes += [pltpu.VMEM((B_pad, H_pad), jnp.float32),   # h state
                           pltpu.VMEM((B_pad, H_pad), jnp.float32)]   # c state
    scratch_shapes += [pltpu.VMEM((TT * B_pad, 4 * H_pad), jnp.float32),  # hoisted proj
                       pltpu.VMEM((TT * B_pad, H_pad), jnp.float32)]      # block hidden seq

    kernel = _make_fused_kernel(num_layers, TT, B_pad, H_pad)

    out = pl.pallas_call(
        kernel,
        out_shape=jax.ShapeDtypeStruct((B_pad, E), jnp.float32),
        grid_spec=pltpu.PrefetchScalarGridSpec(
            num_scalar_prefetch=0,
            grid=(T_blocks,),
            in_specs=in_specs,
            out_specs=pl.BlockSpec((B_pad, E), lambda tb: (0, 0)),
            scratch_shapes=scratch_shapes,
        ),
        compiler_params=pltpu.CompilerParams(
            dimension_semantics=("arbitrary",)),   # time axis is a recurrence
    )(*in_arrays)
    return out[:B]


if __name__ == "__main__":
    # Small shapes consistent with the module's forward:
    # batch=2, seq=8, input_size=16, hidden=32, embedding=16, layers=2
    B, T = 2, 8
    input_size, hidden_size, embedding_size, num_layers = 16, 32, 16, 2

    key = jax.random.PRNGKey(0)
    k_param, k_data = jax.random.split(key)
    params = init_params(k_param, input_size, hidden_size, embedding_size, num_layers)
    utterances = jax.random.normal(k_data, (B, T, input_size), dtype=jnp.float32)

    out = jax.jit(mel_lstm_clf_forward)(params, utterances)
    jax.block_until_ready(out)
    assert out.shape == (B, embedding_size)
    assert bool(jnp.all(jnp.isfinite(out)))
    print("KERNEL_OK")
</pallas_src>

<mosaic_0001>
module attributes {stable_mosaic.version = 11 : i64} {
  func.func @kernel(%arg0: i32, %arg1: memref<64x16xbf16, #tpu.memory_space<vmem>>, %arg2: memref<16x512xbf16, #tpu.memory_space<vmem>>, %arg3: memref<128x512xbf16, #tpu.memory_space<vmem>>, %arg4: memref<1x512xf32, #tpu.memory_space<vmem>>, %arg5: memref<128x512xbf16, #tpu.memory_space<vmem>>, %arg6: memref<128x512xbf16, #tpu.memory_space<vmem>>, %arg7: memref<1x512xf32, #tpu.memory_space<vmem>>, %arg8: memref<128x16xbf16, #tpu.memory_space<vmem>>, %arg9: memref<1x16xf32, #tpu.memory_space<vmem>>, %arg10: memref<8x16xf32, #tpu.memory_space<vmem>>, %arg11: memref<8x128xf32, #tpu.memory_space<vmem>>, %arg12: memref<8x128xf32, #tpu.memory_space<vmem>>, %arg13: memref<8x128xf32, #tpu.memory_space<vmem>>, %arg14: memref<8x128xf32, #tpu.memory_space<vmem>>, %arg15: memref<64x512xf32, #tpu.memory_space<vmem>>, %arg16: memref<64x128xf32, #tpu.memory_space<vmem>>) attributes {dimension_semantics = [#tpu.dimension_semantics<arbitrary>], iteration_bounds = array<i64: 1>, scalar_prefetch = 0 : i64, scratch_operands = 6 : i64, tpu.core_type = #tpu.core_type<tc>, window_params = [{transform_indices = @transform_0, window_bounds = array<i64: 64, 16>}, {pipeline_mode = #tpu.pipeline_mode<synchronous>, transform_indices = @transform_1, window_bounds = array<i64: 16, 512>}, {pipeline_mode = #tpu.pipeline_mode<synchronous>, transform_indices = @transform_2, window_bounds = array<i64: 128, 512>}, {pipeline_mode = #tpu.pipeline_mode<synchronous>, transform_indices = @transform_3, window_bounds = array<i64: 1, 512>}, {pipeline_mode = #tpu.pipeline_mode<synchronous>, transform_indices = @transform_4, window_bounds = array<i64: 128, 512>}, {pipeline_mode = #tpu.pipeline_mode<synchronous>, transform_indices = @transform_5, window_bounds = array<i64: 128, 512>}, {pipeline_mode = #tpu.pipeline_mode<synchronous>, transform_indices = @transform_6, window_bounds = array<i64: 1, 512>}, {pipeline_mode = #tpu.pipeline_mode<synchronous>, transform_indices = @transform_7, window_bounds = array<i64: 128, 16>}, {pipeline_mode = #tpu.pipeline_mode<synchronous>, transform_indices = @transform_8, window_bounds = array<i64: 1, 16>}, {pipeline_mode = #tpu.pipeline_mode<synchronous>, transform_indices = @transform_9, window_bounds = array<i64: 8, 16>}]} {
    %c0_i32 = arith.constant 0 : i32
    %0 = arith.cmpi eq, %arg0, %c0_i32 : i32
    %1 = arith.extui %0 : i1 to i32
    %c0_i32_0 = arith.constant 0 : i32
    %2 = arith.cmpi ne, %1, %c0_i32_0 : i32
    scf.if %2 {
      %cst_293 = arith.constant 0.000000e+00 : f32
      %629 = vector.broadcast %cst_293 : f32 to vector<8x128xf32>
      %c0_294 = arith.constant 0 : index
      %c0_295 = arith.constant 0 : index
      %630 = vector.load %arg11[%c0_294, %c0_295] : memref<8x128xf32, #tpu.memory_space<vmem>>, vector<8x128xf32>
      tpu.vector_store %arg11[%c0_294, %c0_295], %629 {strides = array<i32>} : memref<8x128xf32, #tpu.memory_space<vmem>>, vector<8x128xf32>,
      %cst_296 = arith.constant 0.000000e+00 : f32
      %631 = vector.broadcast %cst_296 : f32 to vector<8x128xf32>
      %c0_297 = arith.constant 0 : index
      %c0_298 = arith.constant 0 : index
      %632 = vector.load %arg12[%c0_297, %c0_298] : memref<8x128xf32, #tpu.memory_space<vmem>>, vector<8x128xf32>
      tpu.vector_store %arg12[%c0_297, %c0_298], %631 {strides = array<i32>} : memref<8x128xf32, #tpu.memory_space<vmem>>, vector<8x128xf32>,
      %cst_299 = arith.constant 0.000000e+00 : f32
      %633 = vector.broadcast %cst_299 : f32 to vector<8x128xf32>
      %c0_300 = arith.constant 0 : index
      %c0_301 = arith.constant 0 : index
      %634 = vector.load %arg13[%c0_300, %c0_301] : memref<8x128xf32, #tpu.memory_space<vmem>>, vector<8x128xf32>
      tpu.vector_store %arg13[%c0_300, %c0_301], %633 {strides = array<i32>} : memref<8x128xf32, #tpu.memory_space<vmem>>, vector<8x128xf32>,
      %cst_302 = arith.constant 0.000000e+00 : f32
      %635 = vector.broadcast %cst_302 : f32 to vector<8x128xf32>
      %c0_303 = arith.constant 0 : index
      %c0_304 = arith.constant 0 : index
      %636 = vector.load %arg14[%c0_303, %c0_304] : memref<8x128xf32, #tpu.memory_space<vmem>>, vector<8x128xf32>
      tpu.vector_store %arg14[%c0_303, %c0_304], %635 {strides = array<i32>} : memref<8x128xf32, #tpu.memory_space<vmem>>, vector<8x128xf32>,
    } else {
    }
    %c0 = arith.constant 0 : index
    %c0_1 = arith.constant 0 : index
    %3 = vector.load %arg1[%c0, %c0_1] : memref<64x16xbf16, #tpu.memory_space<vmem>>, vector<64x16xbf16>
    %c0_2 = arith.constant 0 : index
    %c0_3 = arith.constant 0 : index
    %4 = vector.load %arg2[%c0_2, %c0_3] : memref<16x512xbf16, #tpu.memory_space<vmem>>, vector<16x512xbf16>
    %cst = arith.constant dense<0.000000e+00> : vector<64x512xf32>
    %5 = tpu.matmul %3, %4, %cst {dimension_numbers = #tpu.dot_dimension_numbers<[1], [0], [0], [1], [0, 0, 1, 1], [], []>} : vector<64x16xbf16>, vector<16x512xbf16>, vector<64x512xf32> -> vector<64x512xf32>
    %c0_4 = arith.constant 0 : index
    %c0_5 = arith.constant 0 : index
    %6 = vector.load %arg4[%c0_4, %c0_5] : memref<1x512xf32, #tpu.memory_space<vmem>>, vector<1x512xf32>
    %7 = vector.broadcast %6 : vector<1x512xf32> to vector<64x512xf32>
    %8 = arith.addf %5, %7 : vector<64x512xf32>
    %c0_6 = arith.constant 0 : index
    %c0_7 = arith.constant 0 : index
    %9 = vector.load %arg15[%c0_6, %c0_7] : memref<64x512xf32, #tpu.memory_space<vmem>>, vector<64x512xf32>
    tpu.vector_store %arg15[%c0_6, %c0_7], %8 {strides = array<i32>} : memref<64x512xf32, #tpu.memory_space<vmem>>, vector<64x512xf32>,
    %c0_i32_8 = arith.constant 0 : i32
    %c8_i32 = arith.constant 8 : i32
    %10 = arith.muli %c0_i32_8, %c8_i32 : i32
    %11 = tpu.assume_multiple %10, 8 : i32
    %c0_9 = arith.constant 0 : index
    %c0_10 = arith.constant 0 : index
    %12 = vector.load %arg11[%c0_9, %c0_10] : memref<8x128xf32, #tpu.memory_space<vmem>>, vector<8x128xf32>
    %c0_11 = arith.constant 0 : index
    %c0_12 = arith.constant 0 : index
    %13 = vector.load %arg12[%c0_11, %c0_12] : memref<8x128xf32, #tpu.memory_space<vmem>>, vector<8x128xf32>
    %14 = arith.index_cast %11 : i32 to index
    %c0_13 = arith.constant 0 : index
    %15 = vector.load %arg15[%14, %c0_13] : memref<64x512xf32, #tpu.memory_space<vmem>>, vector<8x512xf32>
    %16 = arith.truncf %12 : vector<8x128xf32> to vector<8x128xbf16>
    %c0_14 = arith.constant 0 : index
    %c0_15 = arith.constant 0 : index
    %17 = vector.load %arg3[%c0_14, %c0_15] : memref<128x512xbf16, #tpu.memory_space<vmem>>, vector<128x512xbf16>
    %cst_16 = arith.constant dense<0.000000e+00> : vector<8x512xf32>
    %18 = tpu.matmul %16, %17, %cst_16 {dimension_numbers = #tpu.dot_dimension_numbers<[1], [0], [0], [1], [0, 0, 1, 1], [], []>} : vector<8x128xbf16>, vector<128x512xbf16>, vector<8x512xf32> -> vector<8x512xf32>
    %19 = arith.addf %15, %18 : vector<8x512xf32>
    %20 = vector.extract_strided_slice %19 {offsets = [0, 0], sizes = [8, 128], strides = [1, 1]} : vector<8x512xf32> to vector<8x128xf32>
    %21 = arith.negf %20 : vector<8x128xf32>
    %22 = math.exp %21 : vector<8x128xf32>
    %cst_17 = arith.constant 1.000000e+00 : f32
    %23 = vector.broadcast %cst_17 : f32 to vector<8x128xf32>
    %24 = arith.addf %23, %22 : vector<8x128xf32>
    %25 = arith.divf %23, %24 : vector<8x128xf32>
    %26 = vector.extract_strided_slice %19 {offsets = [0, 128], sizes = [8, 128], strides = [1, 1]} : vector<8x512xf32> to vector<8x128xf32>
    %27 = arith.negf %26 : vector<8x128xf32>
    %28 = math.exp %27 : vector<8x128xf32>
    %cst_18 = arith.constant 1.000000e+00 : f32
    %29 = vector.broadcast %cst_18 : f32 to vector<8x128xf32>
    %30 = arith.addf %29, %28 : vector<8x128xf32>
    %31 = arith.divf %29, %30 : vector<8x128xf32>
    %32 = vector.extract_strided_slice %19 {offsets = [0, 256], sizes = [8, 128], strides = [1, 1]} : vector<8x512xf32> to vector<8x128xf32>
    %33 = math.tanh %32 : vector<8x128xf32>
    %34 = vector.extract_strided_slice %19 {offsets = [0, 384], sizes = [8, 128], strides = [1, 1]} : vector<8x512xf32> to vector<8x128xf32>
    %35 = arith.negf %34 : vector<8x128xf32>
    %36 = math.exp %35 : vector<8x128xf32>
    %cst_19 = arith.constant 1.000000e+00 : f32
    %37 = vector.broadcast %cst_19 : f32 to vector<8x128xf32>
    %38 = arith.addf %37, %36 : vector<8x128xf32>
    %39 = arith.divf %37, %38 : vector<8x128xf32>
    %40 = arith.mulf %31, %13 : vector<8x128xf32>
    %41 = arith.mulf %25, %33 : vector<8x128xf32>
    %42 = arith.addf %40, %41 : vector<8x128xf32>
    %43 = math.tanh %42 : vector<8x128xf32>
    %44 = arith.mulf %39, %43 : vector<8x128xf32>
    %c0_20 = arith.constant 0 : index
    %c0_21 = arith.constant 0 : index
    %45 = vector.load %arg12[%c0_20, %c0_21] : memref<8x128xf32, #tpu.memory_space<vmem>>, vector<8x128xf32>
    tpu.vector_store %arg12[%c0_20, %c0_21], %42 {strides = array<i32>} : memref<8x128xf32, #tpu.memory_space<vmem>>, vector<8x128xf32>,
    %c0_22 = arith.constant 0 : index
    %c0_23 = arith.constant 0 : index
    %46 = vector.load %arg11[%c0_22, %c0_23] : memref<8x128xf32, #tpu.memory_space<vmem>>, vector<8x128xf32>
    tpu.vector_store %arg11[%c0_22, %c0_23], %44 {strides = array<i32>} : memref<8x128xf32, #tpu.memory_space<vmem>>, vector<8x128xf32>,
    %47 = arith.index_cast %11 : i32 to index
    %c0_24 = arith.constant 0 : index
    %48 = vector.load %arg16[%47, %c0_24] : memref<64x128xf32, #tpu.memory_space<vmem>>, vector<8x128xf32>
    tpu.vector_store %arg16[%47, %c0_24], %44 {strides = array<i32>} : memref<64x128xf32, #tpu.memory_space<vmem>>, vector<8x128xf32>,
    %c1_i32 = arith.constant 1 : i32
    %c8_i32_25 = arith.constant 8 : i32
    %49 = arith.muli %c1_i32, %c8_i32_25 : i32
    %50 = tpu.assume_multiple %49, 8 : i32
    %c0_26 = arith.constant 0 : index
    %c0_27 = arith.constant 0 : index
    %51 = vector.load %arg11[%c0_26, %c0_27] : memref<8x128xf32, #tpu.memory_space<vmem>>, vector<8x128xf32>
    %c0_28 = arith.constant 0 : index
    %c0_29 = arith.constant 0 : index
    %52 = vector.load %arg12[%c0_28, %c0_29] : memref<8x128xf32, #tpu.memory_space<vmem>>, vector<8x128xf32>
    %53 = arith.index_cast %50 : i32 to index
    %c0_30 = arith.constant 0 : index
    %54 = vector.load %arg15[%53, %c0_30] : memref<64x512xf32, #tpu.memory_space<vmem>>, vector<8x512xf32>
    %55 = arith.truncf %51 : vector<8x128xf32> to vector<8x128xbf16>
    %c0_31 = arith.constant 0 : index
    %c0_32 = arith.constant 0 : index
    %56 = vector.load %arg3[%c0_31, %c0_32] : memref<128x512xbf16, #tpu.memory_space<vmem>>, vector<128x512xbf16>
    %cst_33 = arith.constant dense<0.000000e+00> : vector<8x512xf32>
    %57 = tpu.matmul %55, %56, %cst_33 {dimension_numbers = #tpu.dot_dimension_numbers<[1], [0], [0], [1], [0, 0, 1, 1], [], []>} : vector<8x128xbf16>, vector<128x512xbf16>, vector<8x512xf32> -> vector<8x512xf32>
    %58 = arith.addf %54, %57 : vector<8x512xf32>
    %59 = vector.extract_strided_slice %58 {offsets = [0, 0], sizes = [8, 128], strides = [1, 1]} : vector<8x512xf32> to vector<8x128xf32>
    %60 = arith.negf %59 : vector<8x128xf32>
    %61 = math.exp %60 : vector<8x128xf32>
    %cst_34 = arith.constant 1.000000e+00 : f32
    %62 = vector.broadcast %cst_34 : f32 to vector<8x128xf32>
    %63 = arith.addf %62, %61 : vector<8x128xf32>
    %64 = arith.divf %62, %63 : vector<8x128xf32>
    %65 = vector.extract_strided_slice %58 {offsets = [0, 128], sizes = [8, 128], strides = [1, 1]} : vector<8x512xf32> to vector<8x128xf32>
    %66 = arith.negf %65 : vector<8x128xf32>
    %67 = math.exp %66 : vector<8x128xf32>
    %cst_35 = arith.constant 1.000000e+00 : f32
    %68 = vector.broadcast %cst_35 : f32 to vector<8x128xf32>
    %69 = arith.addf %68, %67 : vector<8x128xf32>
    %70 = arith.divf %68, %69 : vector<8x128xf32>
    %71 = vector.extract_strided_slice %58 {offsets = [0, 256], sizes = [8, 128], strides = [1, 1]} : vector<8x512xf32> to vector<8x128xf32>
    %72 = math.tanh %71 : vector<8x128xf32>
    %73 = vector.extract_strided_slice %58 {offsets = [0, 384], sizes = [8, 128], strides = [1, 1]} : vector<8x512xf32> to vector<8x128xf32>
    %74 = arith.negf %73 : vector<8x128xf32>
    %75 = math.exp %74 : vector<8x128xf32>
    %cst_36 = arith.constant 1.000000e+00 : f32
    %76 = vector.broadcast %cst_36 : f32 to vector<8x128xf32>
    %77 = arith.addf %76, %75 : vector<8x128xf32>
    %78 = arith.divf %76, %77 : vector<8x128xf32>
    %79 = arith.mulf %70, %52 : vector<8x128xf32>
    %80 = arith.mulf %64, %72 : vector<8x128xf32>
    %81 = arith.addf %79, %80 : vector<8x128xf32>
    %82 = math.tanh %81 : vector<8x128xf32>
    %83 = arith.mulf %78, %82 : vector<8x128xf32>
    %c0_37 = arith.constant 0 : index
    %c0_38 = arith.constant 0 : index
    %84 = vector.load %arg12[%c0_37, %c0_38] : memref<8x128xf32, #tpu.memory_space<vmem>>, vector<8x128xf32>
    tpu.vector_store %arg12[%c0_37, %c0_38], %81 {strides = array<i32>} : memref<8x128xf32, #tpu.memory_space<vmem>>, vector<8x128xf32>,
    %c0_39 = arith.constant 0 : index
    %c0_40 = arith.constant 0 : index
    %85 = vector.load %arg11[%c0_39, %c0_40] : memref<8x128xf32, #tpu.memory_space<vmem>>, vector<8x128xf32>
    tpu.vector_store %arg11[%c0_39, %c0_40], %83 {strides = array<i32>} : memref<8x128xf32, #tpu.memory_space<vmem>>, vector<8x128xf32>,
    %86 = arith.index_cast %50 : i32 to index
    %c0_41 = arith.constant 0 : index
    %87 = vector.load %arg16[%86, %c0_41] : memref<64x128xf32, #tpu.memory_space<vmem>>, vector<8x128xf32>
    tpu.vector_store %arg16[%86, %c0_41], %83 {strides = array<i32>} : memref<64x128xf32, #tpu.memory_space<vmem>>, vector<8x128xf32>,
    %c2_i32 = arith.constant 2 : i32
    %c8_i32_42 = arith.constant 8 : i32
    %88 = arith.muli %c2_i32, %c8_i32_42 : i32
    %89 = tpu.assume_multiple %88, 8 : i32
    %c0_43 = arith.constant 0 : index
    %c0_44 = arith.constant 0 : index
    %90 = vector.load %arg11[%c0_43, %c0_44] : memref<8x128xf32, #tpu.memory_space<vmem>>, vector<8x128xf32>
    %c0_45 = arith.constant 0 : index
    %c0_46 = arith.constant 0 : index
    %91 = vector.load %arg12[%c0_45, %c0_46] : memref<8x128xf32, #tpu.memory_space<vmem>>, vector<8x128xf32>
    %92 = arith.index_cast %89 : i32 to index
    %c0_47 = arith.constant 0 : index
    %93 = vector.load %arg15[%92, %c0_47] : memref<64x512xf32, #tpu.memory_space<vmem>>, vector<8x512xf32>
    %94 = arith.truncf %90 : vector<8x128xf32> to vector<8x128xbf16>
    %c0_48 = arith.constant 0 : index
    %c0_49 = arith.constant 0 : index
    %95 = vector.load %arg3[%c0_48, %c0_49] : memref<128x512xbf16, #tpu.memory_space<vmem>>, vector<128x512xbf16>
    %cst_50 = arith.constant dense<0.000000e+00> : vector<8x512xf32>
    %96 = tpu.matmul %94, %95, %cst_50 {dimension_numbers = #tpu.dot_dimension_numbers<[1], [0], [0], [1], [0, 0, 1, 1], [], []>} : vector<8x128xbf16>, vector<128x512xbf16>, vector<8x512xf32> -> vector<8x512xf32>
    %97 = arith.addf %93, %96 : vector<8x512xf32>
    %98 = vector.extract_strided_slice %97 {offsets = [0, 0], sizes = [8, 128], strides = [1, 1]} : vector<8x512xf32> to vector<8x128xf32>
    %99 = arith.negf %98 : vector<8x128xf32>
    %100 = math.exp %99 : vector<8x128xf32>
    %cst_51 = arith.constant 1.000000e+00 : f32
    %101 = vector.broadcast %cst_51 : f32 to vector<8x128xf32>
    %102 = arith.addf %101, %100 : vector<8x128xf32>
    %103 = arith.divf %101, %102 : vector<8x128xf32>
    %104 = vector.extract_strided_slice %97 {offsets = [0, 128], sizes = [8, 128], strides = [1, 1]} : vector<8x512xf32> to vector<8x128xf32>
    %105 = arith.negf %104 : vector<8x128xf32>
    %106 = math.exp %105 : vector<8x128xf32>
    %cst_52 = arith.constant 1.000000e+00 : f32
    %107 = vector.broadcast %cst_52 : f32 to vector<8x128xf32>
    %108 = arith.addf %107, %106 : vector<8x128xf32>
    %109 = arith.divf %107, %108 : vector<8x128xf32>
    %110 = vector.extract_strided_slice %97 {offsets = [0, 256], sizes = [8, 128], strides = [1, 1]} : vector<8x512xf32> to vector<8x128xf32>
    %111 = math.tanh %110 : vector<8x128xf32>
    %112 = vector.extract_strided_slice %97 {offsets = [0, 384], sizes = [8, 128], strides = [1, 1]} : vector<8x512xf32> to vector<8x128xf32>
    %113 = arith.negf %112 : vector<8x128xf32>
    %114 = math.exp %113 : vector<8x128xf32>
    %cst_53 = arith.constant 1.000000e+00 : f32
    %115 = vector.broadcast %cst_53 : f32 to vector<8x128xf32>
    %116 = arith.addf %115, %114 : vector<8x128xf32>
    %117 = arith.divf %115, %116 : vector<8x128xf32>
    %118 = arith.mulf %109, %91 : vector<8x128xf32>
    %119 = arith.mulf %103, %111 : vector<8x128xf32>
    %120 = arith.addf %118, %119 : vector<8x128xf32>
    %121 = math.tanh %120 : vector<8x128xf32>
    %122 = arith.mulf %117, %121 : vector<8x128xf32>
    %c0_54 = arith.constant 0 : index
    %c0_55 = arith.constant 0 : index
    %123 = vector.load %arg12[%c0_54, %c0_55] : memref<8x128xf32, #tpu.memory_space<vmem>>, vector<8x128xf32>
    tpu.vector_store %arg12[%c0_54, %c0_55], %120 {strides = array<i32>} : memref<8x128xf32, #tpu.memory_space<vmem>>, vector<8x128xf32>,
    %c0_56 = arith.constant 0 : index
    %c0_57 = arith.constant 0 : index
    %124 = vector.load %arg11[%c0_56, %c0_57] : memref<8x128xf32, #tpu.memory_space<vmem>>, vector<8x128xf32>
    tpu.vector_store %arg11[%c0_56, %c0_57], %122 {strides = array<i32>} : memref<8x128xf32, #tpu.memory_space<vmem>>, vector<8x128xf32>,
    %125 = arith.index_cast %89 : i32 to index
    %c0_58 = arith.constant 0 : index
    %126 = vector.load %arg16[%125, %c0_58] : memref<64x128xf32, #tpu.memory_space<vmem>>, vector<8x128xf32>
    tpu.vector_store %arg16[%125, %c0_58], %122 {strides = array<i32>} : memref<64x128xf32, #tpu.memory_space<vmem>>, vector<8x128xf32>,
    %c3_i32 = arith.constant 3 : i32
    %c8_i32_59 = arith.constant 8 : i32
    %127 = arith.muli %c3_i32, %c8_i32_59 : i32
    %128 = tpu.assume_multiple %127, 8 : i32
    %c0_60 = arith.constant 0 : index
    %c0_61 = arith.constant 0 : index
    %129 = vector.load %arg11[%c0_60, %c0_61] : memref<8x128xf32, #tpu.memory_space<vmem>>, vector<8x128xf32>
    %c0_62 = arith.constant 0 : index
    %c0_63 = arith.constant 0 : index
    %130 = vector.load %arg12[%c0_62, %c0_63] : memref<8x128xf32, #tpu.memory_space<vmem>>, vector<8x128xf32>
    %131 = arith.index_cast %128 : i32 to index
    %c0_64 = arith.constant 0 : index
    %132 = vector.load %arg15[%131, %c0_64] : memref<64x512xf32, #tpu.memory_space<vmem>>, vector<8x512xf32>
    %133 = arith.truncf %129 : vector<8x128xf32> to vector<8x128xbf16>
    %c0_65 = arith.constant 0 : index
    %c0_66 = arith.constant 0 : index
    %134 = vector.load %arg3[%c0_65, %c0_66] : memref<128x512xbf16, #tpu.memory_space<vmem>>, vector<128x512xbf16>
    %cst_67 = arith.constant dense<0.000000e+00> : vector<8x512xf32>
    %135 = tpu.matmul %133, %134, %cst_67 {dimension_numbers = #tpu.dot_dimension_numbers<[1], [0], [0], [1], [0, 0, 1, 1], [], []>} : vector<8x128xbf16>, vector<128x512xbf16>, vector<8x512xf32> -> vector<8x512xf32>
    %136 = arith.addf %132, %135 : vector<8x512xf32>
    %137 = vector.extract_strided_slice %136 {offsets = [0, 0], sizes = [8, 128], strides = [1, 1]} : vector<8x512xf32> to vector<8x128xf32>
    %138 = arith.negf %137 : vector<8x128xf32>
    %139 = math.exp %138 : vector<8x128xf32>
    %cst_68 = arith.constant 1.000000e+00 : f32
    %140 = vector.broadcast %cst_68 : f32 to vector<8x128xf32>
    %141 = arith.addf %140, %139 : vector<8x128xf32>
    %142 = arith.divf %140, %141 : vector<8x128xf32>
    %143 = vector.extract_strided_slice %136 {offsets = [0, 128], sizes = [8, 128], strides = [1, 1]} : vector<8x512xf32> to vector<8x128xf32>
    %144 = arith.negf %143 : vector<8x128xf32>
    %145 = math.exp %144 : vector<8x128xf32>
    %cst_69 = arith.constant 1.000000e+00 : f32
    %146 = vector.broadcast %cst_69 : f32 to vector<8x128xf32>
    %147 = arith.addf %146, %145 : vector<8x128xf32>
    %148 = arith.divf %146, %147 : vector<8x128xf32>
    %149 = vector.extract_strided_slice %136 {offsets = [0, 256], sizes = [8, 128], strides = [1, 1]} : vector<8x512xf32> to vector<8x128xf32>
    %150 = math.tanh %149 : vector<8x128xf32>
    %151 = vector.extract_strided_slice %136 {offsets = [0, 384], sizes = [8, 128], strides = [1, 1]} : vector<8x512xf32> to vector<8x128xf32>
    %152 = arith.negf %151 : vector<8x128xf32>
    %153 = math.exp %152 : vector<8x128xf32>
    %cst_70 = arith.constant 1.000000e+00 : f32
    %154 = vector.broadcast %cst_70 : f32 to vector<8x128xf32>
    %155 = arith.addf %154, %153 : vector<8x128xf32>
    %156 = arith.divf %154, %155 : vector<8x128xf32>
    %157 = arith.mulf %148, %130 : vector<8x128xf32>
    %158 = arith.mulf %142, %150 : vector<8x128xf32>
    %159 = arith.addf %157, %158 : vector<8x128xf32>
    %160 = math.tanh %159 : vector<8x128xf32>
    %161 = arith.mulf %156, %160 : vector<8x128xf32>
    %c0_71 = arith.constant 0 : index
    %c0_72 = arith.constant 0 : index
    %162 = vector.load %arg12[%c0_71, %c0_72] : memref<8x128xf32, #tpu.memory_space<vmem>>, vector<8x128xf32>
    tpu.vector_store %arg12[%c0_71, %c0_72], %159 {strides = array<i32>} : memref<8x128xf32, #tpu.memory_space<vmem>>, vector<8x128xf32>,
    %c0_73 = arith.constant 0 : index
    %c0_74 = arith.constant 0 : index
    %163 = vector.load %arg11[%c0_73, %c0_74] : memref<8x128xf32, #tpu.memory_space<vmem>>, vector<8x128xf32>
    tpu.vector_store %arg11[%c0_73, %c0_74], %161 {strides = array<i32>} : memref<8x128xf32, #tpu.memory_space<vmem>>, vector<8x128xf32>,
    %164 = arith.index_cast %128 : i32 to index
    %c0_75 = arith.constant 0 : index
    %165 = vector.load %arg16[%164, %c0_75] : memref<64x128xf32, #tpu.memory_space<vmem>>, vector<8x128xf32>
    tpu.vector_store %arg16[%164, %c0_75], %161 {strides = array<i32>} : memref<64x128xf32, #tpu.memory_space<vmem>>, vector<8x128xf32>,
    %c4_i32 = arith.constant 4 : i32
    %c8_i32_76 = arith.constant 8 : i32
    %166 = arith.muli %c4_i32, %c8_i32_76 : i32
    %167 = tpu.assume_multiple %166, 8 : i32
    %c0_77 = arith.constant 0 : index
    %c0_78 = arith.constant 0 : index
    %168 = vector.load %arg11[%c0_77, %c0_78] : memref<8x128xf32, #tpu.memory_space<vmem>>, vector<8x128xf32>
    %c0_79 = arith.constant 0 : index
    %c0_80 = arith.constant 0 : index
    %169 = vector.load %arg12[%c0_79, %c0_80] : memref<8x128xf32, #tpu.memory_space<vmem>>, vector<8x128xf32>
    %170 = arith.index_cast %167 : i32 to index
    %c0_81 = arith.constant 0 : index
    %171 = vector.load %arg15[%170, %c0_81] : memref<64x512xf32, #tpu.memory_space<vmem>>, vector<8x512xf32>
    %172 = arith.truncf %168 : vector<8x128xf32> to vector<8x128xbf16>
    %c0_82 = arith.constant 0 : index
    %c0_83 = arith.constant 0 : index
    %173 = vector.load %arg3[%c0_82, %c0_83] : memref<128x512xbf16, #tpu.memory_space<vmem>>, vector<128x512xbf16>
    %cst_84 = arith.constant dense<0.000000e+00> : vector<8x512xf32>
    %174 = tpu.matmul %172, %173, %cst_84 {dimension_numbers = #tpu.dot_dimension_numbers<[1], [0], [0], [1], [0, 0, 1, 1], [], []>} : vector<8x128xbf16>, vector<128x512xbf16>, vector<8x512xf32> -> vector<8x512xf32>
    %175 = arith.addf %171, %174 : vector<8x512xf32>
    %176 = vector.extract_strided_slice %175 {offsets = [0, 0], sizes = [8, 128], strides = [1, 1]} : vector<8x512xf32> to vector<8x128xf32>
    %177 = arith.negf %176 : vector<8x128xf32>
    %178 = math.exp %177 : vector<8x128xf32>
    %cst_85 = arith.constant 1.000000e+00 : f32
    %179 = vector.broadcast %cst_85 : f32 to vector<8x128xf32>
    %180 = arith.addf %179, %178 : vector<8x128xf32>
    %181 = arith.divf %179, %180 : vector<8x128xf32>
    %182 = vector.extract_strided_slice %175 {offsets = [0, 128], sizes = [8, 128], strides = [1, 1]} : vector<8x512xf32> to vector<8x128xf32>
    %183 = arith.negf %182 : vector<8x128xf32>
    %184 = math.exp %183 : vector<8x128xf32>
    %cst_86 = arith.constant 1.000000e+00 : f32
    %185 = vector.broadcast %cst_86 : f32 to vector<8x128xf32>
    %186 = arith.addf %185, %184 : vector<8x128xf32>
    %187 = arith.divf %185, %186 : vector<8x128xf32>
    %188 = vector.extract_strided_slice %175 {offsets = [0, 256], sizes = [8, 128], strides = [1, 1]} : vector<8x512xf32> to vector<8x128xf32>
    %189 = math.tanh %188 : vector<8x128xf32>
    %190 = vector.extract_strided_slice %175 {offsets = [0, 384], sizes = [8, 128], strides = [1, 1]} : vector<8x512xf32> to vector<8x128xf32>
    %191 = arith.negf %190 : vector<8x128xf32>
    %192 = math.exp %191 : vector<8x128xf32>
    %cst_87 = arith.constant 1.000000e+00 : f32
    %193 = vector.broadcast %cst_87 : f32 to vector<8x128xf32>
    %194 = arith.addf %193, %192 : vector<8x128xf32>
    %195 = arith.divf %193, %194 : vector<8x128xf32>
    %196 = arith.mulf %187, %169 : vector<8x128xf32>
    %197 = arith.mulf %181, %189 : vector<8x128xf32>
    %198 = arith.addf %196, %197 : vector<8x128xf32>
    %199 = math.tanh %198 : vector<8x128xf32>
    %200 = arith.mulf %195, %199 : vector<8x128xf32>
    %c0_88 = arith.constant 0 : index
    %c0_89 = arith.constant 0 : index
    %201 = vector.load %arg12[%c0_88, %c0_89] : memref<8x128xf32, #tpu.memory_space<vmem>>, vector<8x128xf32>
    tpu.vector_store %arg12[%c0_88, %c0_89], %198 {strides = array<i32>} : memref<8x128xf32, #tpu.memory_space<vmem>>, vector<8x128xf32>,
    %c0_90 = arith.constant 0 : index
    %c0_91 = arith.constant 0 : index
    %202 = vector.load %arg11[%c0_90, %c0_91] : memref<8x128xf32, #tpu.memory_space<vmem>>, vector<8x128xf32>
    tpu.vector_store %arg11[%c0_90, %c0_91], %200 {strides = array<i32>} : memref<8x128xf32, #tpu.memory_space<vmem>>, vector<8x128xf32>,
    %203 = arith.index_cast %167 : i32 to index
    %c0_92 = arith.constant 0 : index
    %204 = vector.load %arg16[%203, %c0_92] : memref<64x128xf32, #tpu.memory_space<vmem>>, vector<8x128xf32>
    tpu.vector_store %arg16[%203, %c0_92], %200 {strides = array<i32>} : memref<64x128xf32, #tpu.memory_space<vmem>>, vector<8x128xf32>,
    %c5_i32 = arith.constant 5 : i32
    %c8_i32_93 = arith.constant 8 : i32
    %205 = arith.muli %c5_i32, %c8_i32_93 : i32
    %206 = tpu.assume_multiple %205, 8 : i32
    %c0_94 = arith.constant 0 : index
    %c0_95 = arith.constant 0 : index
    %207 = vector.load %arg11[%c0_94, %c0_95] : memref<8x128xf32, #tpu.memory_space<vmem>>, vector<8x128xf32>
    %c0_96 = arith.constant 0 : index
    %c0_97 = arith.constant 0 : index
    %208 = vector.load %arg12[%c0_96, %c0_97] : memref<8x128xf32, #tpu.memory_space<vmem>>, vector<8x128xf32>
    %209 = arith.index_cast %206 : i32 to index
    %c0_98 = arith.constant 0 : index
    %210 = vector.load %arg15[%209, %c0_98] : memref<64x512xf32, #tpu.memory_space<vmem>>, vector<8x512xf32>
    %211 = arith.truncf %207 : vector<8x128xf32> to vector<8x128xbf16>
    %c0_99 = arith.constant 0 : index
    %c0_100 = arith.constant 0 : index
    %212 = vector.load %arg3[%c0_99, %c0_100] : memref<128x512xbf16, #tpu.memory_space<vmem>>, vector<128x512xbf16>
    %cst_101 = arith.constant dense<0.000000e+00> : vector<8x512xf32>
    %213 = tpu.matmul %211, %212, %cst_101 {dimension_numbers = #tpu.dot_dimension_numbers<[1], [0], [0], [1], [0, 0, 1, 1], [], []>} : vector<8x128xbf16>, vector<128x512xbf16>, vector<8x512xf32> -> vector<8x512xf32>
    %214 = arith.addf %210, %213 : vector<8x512xf32>
    %215 = vector.extract_strided_slice %214 {offsets = [0, 0], sizes = [8, 128], strides = [1, 1]} : vector<8x512xf32> to vector<8x128xf32>
    %216 = arith.negf %215 : vector<8x128xf32>
    %217 = math.exp %216 : vector<8x128xf32>
    %cst_102 = arith.constant 1.000000e+00 : f32
    %218 = vector.broadcast %cst_102 : f32 to vector<8x128xf32>
    %219 = arith.addf %218, %217 : vector<8x128xf32>
    %220 = arith.divf %218, %219 : vector<8x128xf32>
    %221 = vector.extract_strided_slice %214 {offsets = [0, 128], sizes = [8, 128], strides = [1, 1]} : vector<8x512xf32> to vector<8x128xf32>
    %222 = arith.negf %221 : vector<8x128xf32>
    %223 = math.exp %222 : vector<8x128xf32>
    %cst_103 = arith.constant 1.000000e+00 : f32
    %224 = vector.broadcast %cst_103 : f32 to vector<8x128xf32>
    %225 = arith.addf %224, %223 : vector<8x128xf32>
    %226 = arith.divf %224, %225 : vector<8x128xf32>
    %227 = vector.extract_strided_slice %214 {offsets = [0, 256], sizes = [8, 128], strides = [1, 1]} : vector<8x512xf32> to vector<8x128xf32>
    %228 = math.tanh %227 : vector<8x128xf32>
    %229 = vector.extract_strided_slice %214 {offsets = [0, 384], sizes = [8, 128], strides = [1, 1]} : vector<8x512xf32> to vector<8x128xf32>
    %230 = arith.negf %229 : vector<8x128xf32>
    %231 = math.exp %230 : vector<8x128xf32>
    %cst_104 = arith.constant 1.000000e+00 : f32
    %232 = vector.broadcast %cst_104 : f32 to vector<8x128xf32>
    %233 = arith.addf %232, %231 : vector<8x128xf32>
    %234 = arith.divf %232, %233 : vector<8x128xf32>
    %235 = arith.mulf %226, %208 : vector<8x128xf32>
    %236 = arith.mulf %220, %228 : vector<8x128xf32>
    %237 = arith.addf %235, %236 : vector<8x128xf32>
    %238 = math.tanh %237 : vector<8x128xf32>
    %239 = arith.mulf %234, %238 : vector<8x128xf32>
    %c0_105 = arith.constant 0 : index
    %c0_106 = arith.constant 0 : index
    %240 = vector.load %arg12[%c0_105, %c0_106] : memref<8x128xf32, #tpu.memory_space<vmem>>, vector<8x128xf32>
    tpu.vector_store %arg12[%c0_105, %c0_106], %237 {strides = array<i32>} : memref<8x128xf32, #tpu.memory_space<vmem>>, vector<8x128xf32>,
    %c0_107 = arith.constant 0 : index
    %c0_108 = arith.constant 0 : index
    %241 = vector.load %arg11[%c0_107, %c0_108] : memref<8x128xf32, #tpu.memory_space<vmem>>, vector<8x128xf32>
    tpu.vector_store %arg11[%c0_107, %c0_108], %239 {strides = array<i32>} : memref<8x128xf32, #tpu.memory_space<vmem>>, vector<8x128xf32>,
    %242 = arith.index_cast %206 : i32 to index
    %c0_109 = arith.constant 0 : index
    %243 = vector.load %arg16[%242, %c0_109] : memref<64x128xf32, #tpu.memory_space<vmem>>, vector<8x128xf32>
    tpu.vector_store %arg16[%242, %c0_109], %239 {strides = array<i32>} : memref<64x128xf32, #tpu.memory_space<vmem>>, vector<8x128xf32>,
    %c6_i32 = arith.constant 6 : i32
    %c8_i32_110 = arith.constant 8 : i32
    %244 = arith.muli %c6_i32, %c8_i32_110 : i32
    %245 = tpu.assume_multiple %244, 8 : i32
    %c0_111 = arith.constant 0 : index
    %c0_112 = arith.constant 0 : index
    %246 = vector.load %arg11[%c0_111, %c0_112] : memref<8x128xf32, #tpu.memory_space<vmem>>, vector<8x128xf32>
    %c0_113 = arith.constant 0 : index
    %c0_114 = arith.constant 0 : index
    %247 = vector.load %arg12[%c0_113, %c0_114] : memref<8x128xf32, #tpu.memory_space<vmem>>, vector<8x128xf32>
    %248 = arith.index_cast %245 : i32 to index
    %c0_115 = arith.constant 0 : index
    %249 = vector.load %arg15[%248, %c0_115] : memref<64x512xf32, #tpu.memory_space<vmem>>, vector<8x512xf32>
    %250 = arith.truncf %246 : vector<8x128xf32> to vector<8x128xbf16>
    %c0_116 = arith.constant 0 : index
    %c0_117 = arith.constant 0 : index
    %251 = vector.load %arg3[%c0_116, %c0_117] : memref<128x512xbf16, #tpu.memory_space<vmem>>, vector<128x512xbf16>
    %cst_118 = arith.constant dense<0.000000e+00> : vector<8x512xf32>
    %252 = tpu.matmul %250, %251, %cst_118 {dimension_numbers = #tpu.dot_dimension_numbers<[1], [0], [0], [1], [0, 0, 1, 1], [], []>} : vector<8x128xbf16>, vector<128x512xbf16>, vector<8x512xf32> -> vector<8x512xf32>
    %253 = arith.addf %249, %252 : vector<8x512xf32>
    %254 = vector.extract_strided_slice %253 {offsets = [0, 0], sizes = [8, 128], strides = [1, 1]} : vector<8x512xf32> to vector<8x128xf32>
    %255 = arith.negf %254 : vector<8x128xf32>
    %256 = math.exp %255 : vector<8x128xf32>
    %cst_119 = arith.constant 1.000000e+00 : f32
    %257 = vector.broadcast %cst_119 : f32 to vector<8x128xf32>
    %258 = arith.addf %257, %256 : vector<8x128xf32>
    %259 = arith.divf %257, %258 : vector<8x128xf32>
    %260 = vector.extract_strided_slice %253 {offsets = [0, 128], sizes = [8, 128], strides = [1, 1]} : vector<8x512xf32> to vector<8x128xf32>
    %261 = arith.negf %260 : vector<8x128xf32>
    %262 = math.exp %261 : vector<8x128xf32>
    %cst_120 = arith.constant 1.000000e+00 : f32
    %263 = vector.broadcast %cst_120 : f32 to vector<8x128xf32>
    %264 = arith.addf %263, %262 : vector<8x128xf32>
    %265 = arith.divf %263, %264 : vector<8x128xf32>
    %266 = vector.extract_strided_slice %253 {offsets = [0, 256], sizes = [8, 128], strides = [1, 1]} : vector<8x512xf32> to vector<8x128xf32>
    %267 = math.tanh %266 : vector<8x128xf32>
    %268 = vector.extract_strided_slice %253 {offsets = [0, 384], sizes = [8, 128], strides = [1, 1]} : vector<8x512xf32> to vector<8x128xf32>
    %269 = arith.negf %268 : vector<8x128xf32>
    %270 = math.exp %269 : vector<8x128xf32>
    %cst_121 = arith.constant 1.000000e+00 : f32
    %271 = vector.broadcast %cst_121 : f32 to vector<8x128xf32>
    %272 = arith.addf %271, %270 : vector<8x128xf32>
    %273 = arith.divf %271, %272 : vector<8x128xf32>
    %274 = arith.mulf %265, %247 : vector<8x128xf32>
    %275 = arith.mulf %259, %267 : vector<8x128xf32>
    %276 = arith.addf %274, %275 : vector<8x128xf32>
    %277 = math.tanh %276 : vector<8x128xf32>
    %278 = arith.mulf %273, %277 : vector<8x128xf32>
    %c0_122 = arith.constant 0 : index
    %c0_123 = arith.constant 0 : index
    %279 = vector.load %arg12[%c0_122, %c0_123] : memref<8x128xf32, #tpu.memory_space<vmem>>, vector<8x128xf32>
    tpu.vector_store %arg12[%c0_122, %c0_123], %276 {strides = array<i32>} : memref<8x128xf32, #tpu.memory_space<vmem>>, vector<8x128xf32>,
    %c0_124 = arith.constant 0 : index
    %c0_125 = arith.constant 0 : index
    %280 = vector.load %arg11[%c0_124, %c0_125] : memref<8x128xf32, #tpu.memory_space<vmem>>, vector<8x128xf32>
    tpu.vector_store %arg11[%c0_124, %c0_125], %278 {strides = array<i32>} : memref<8x128xf32, #tpu.memory_space<vmem>>, vector<8x128xf32>,
    %281 = arith.index_cast %245 : i32 to index
    %c0_126 = arith.constant 0 : index
    %282 = vector.load %arg16[%281, %c0_126] : memref<64x128xf32, #tpu.memory_space<vmem>>, vector<8x128xf32>
    tpu.vector_store %arg16[%281, %c0_126], %278 {strides = array<i32>} : memref<64x128xf32, #tpu.memory_space<vmem>>, vector<8x128xf32>,
    %c7_i32 = arith.constant 7 : i32
    %c8_i32_127 = arith.constant 8 : i32
    %283 = arith.muli %c7_i32, %c8_i32_127 : i32
    %284 = tpu.assume_multiple %283, 8 : i32
    %c0_128 = arith.constant 0 : index
    %c0_129 = arith.constant 0 : index
    %285 = vector.load %arg11[%c0_128, %c0_129] : memref<8x128xf32, #tpu.memory_space<vmem>>, vector<8x128xf32>
    %c0_130 = arith.constant 0 : index
    %c0_131 = arith.constant 0 : index
    %286 = vector.load %arg12[%c0_130, %c0_131] : memref<8x128xf32, #tpu.memory_space<vmem>>, vector<8x128xf32>
    %287 = arith.index_cast %284 : i32 to index
    %c0_132 = arith.constant 0 : index
    %288 = vector.load %arg15[%287, %c0_132] : memref<64x512xf32, #tpu.memory_space<vmem>>, vector<8x512xf32>
    %289 = arith.truncf %285 : vector<8x128xf32> to vector<8x128xbf16>
    %c0_133 = arith.constant 0 : index
    %c0_134 = arith.constant 0 : index
    %290 = vector.load %arg3[%c0_133, %c0_134] : memref<128x512xbf16, #tpu.memory_space<vmem>>, vector<128x512xbf16>
    %cst_135 = arith.constant dense<0.000000e+00> : vector<8x512xf32>
    %291 = tpu.matmul %289, %290, %cst_135 {dimension_numbers = #tpu.dot_dimension_numbers<[1], [0], [0], [1], [0, 0, 1, 1], [], []>} : vector<8x128xbf16>, vector<128x512xbf16>, vector<8x512xf32> -> vector<8x512xf32>
    %292 = arith.addf %288, %291 : vector<8x512xf32>
    %293 = vector.extract_strided_slice %292 {offsets = [0, 0], sizes = [8, 128], strides = [1, 1]} : vector<8x512xf32> to vector<8x128xf32>
    %294 = arith.negf %293 : vector<8x128xf32>
    %295 = math.exp %294 : vector<8x128xf32>
    %cst_136 = arith.constant 1.000000e+00 : f32
    %296 = vector.broadcast %cst_136 : f32 to vector<8x128xf32>
    %297 = arith.addf %296, %295 : vector<8x128xf32>
    %298 = arith.divf %296, %297 : vector<8x128xf32>
    %299 = vector.extract_strided_slice %292 {offsets = [0, 128], sizes = [8, 128], strides = [1, 1]} : vector<8x512xf32> to vector<8x128xf32>
    %300 = arith.negf %299 : vector<8x128xf32>
    %301 = math.exp %300 : vector<8x128xf32>
    %cst_137 = arith.constant 1.000000e+00 : f32
    %302 = vector.broadcast %cst_137 : f32 to vector<8x128xf32>
    %303 = arith.addf %302, %301 : vector<8x128xf32>
    %304 = arith.divf %302, %303 : vector<8x128xf32>
    %305 = vector.extract_strided_slice %292 {offsets = [0, 256], sizes = [8, 128], strides = [1, 1]} : vector<8x512xf32> to vector<8x128xf32>
    %306 = math.tanh %305 : vector<8x128xf32>
    %307 = vector.extract_strided_slice %292 {offsets = [0, 384], sizes = [8, 128], strides = [1, 1]} : vector<8x512xf32> to vector<8x128xf32>
    %308 = arith.negf %307 : vector<8x128xf32>
    %309 = math.exp %308 : vector<8x128xf32>
    %cst_138 = arith.constant 1.000000e+00 : f32
    %310 = vector.broadcast %cst_138 : f32 to vector<8x128xf32>
    %311 = arith.addf %310, %309 : vector<8x128xf32>
    %312 = arith.divf %310, %311 : vector<8x128xf32>
    %313 = arith.mulf %304, %286 : vector<8x128xf32>
    %314 = arith.mulf %298, %306 : vector<8x128xf32>
    %315 = arith.addf %313, %314 : vector<8x128xf32>
    %316 = math.tanh %315 : vector<8x128xf32>
    %317 = arith.mulf %312, %316 : vector<8x128xf32>
    %c0_139 = arith.constant 0 : index
    %c0_140 = arith.constant 0 : index
    %318 = vector.load %arg12[%c0_139, %c0_140] : memref<8x128xf32, #tpu.memory_space<vmem>>, vector<8x128xf32>
    tpu.vector_store %arg12[%c0_139, %c0_140], %315 {strides = array<i32>} : memref<8x128xf32, #tpu.memory_space<vmem>>, vector<8x128xf32>,
    %c0_141 = arith.constant 0 : index
    %c0_142 = arith.constant 0 : index
    %319 = vector.load %arg11[%c0_141, %c0_142] : memref<8x128xf32, #tpu.memory_space<vmem>>, vector<8x128xf32>
    tpu.vector_store %arg11[%c0_141, %c0_142], %317 {strides = array<i32>} : memref<8x128xf32, #tpu.memory_space<vmem>>, vector<8x128xf32>,
    %320 = arith.index_cast %284 : i32 to index
    %c0_143 = arith.constant 0 : index
    %321 = vector.load %arg16[%320, %c0_143] : memref<64x128xf32, #tpu.memory_space<vmem>>, vector<8x128xf32>
    tpu.vector_store %arg16[%320, %c0_143], %317 {strides = array<i32>} : memref<64x128xf32, #tpu.memory_space<vmem>>, vector<8x128xf32>,
    %c8_i32_144 = arith.constant 8 : i32
    %c0_145 = arith.constant 0 : index
    %c0_146 = arith.constant 0 : index
    %322 = vector.load %arg16[%c0_145, %c0_146] : memref<64x128xf32, #tpu.memory_space<vmem>>, vector<64x128xf32>
    %323 = arith.truncf %322 : vector<64x128xf32> to vector<64x128xbf16>
    %c0_147 = arith.constant 0 : index
    %c0_148 = arith.constant 0 : index
    %324 = vector.load %arg5[%c0_147, %c0_148] : memref<128x512xbf16, #tpu.memory_space<vmem>>, vector<128x512xbf16>
    %cst_149 = arith.constant dense<0.000000e+00> : vector<64x512xf32>
    %325 = tpu.matmul %323, %324, %cst_149 {dimension_numbers = #tpu.dot_dimension_numbers<[1], [0], [0], [1], [0, 0, 1, 1], [], []>} : vector<64x128xbf16>, vector<128x512xbf16>, vector<64x512xf32> -> vector<64x512xf32>
    %c0_150 = arith.constant 0 : index
    %c0_151 = arith.constant 0 : index
    %326 = vector.load %arg7[%c0_150, %c0_151] : memref<1x512xf32, #tpu.memory_space<vmem>>, vector<1x512xf32>
    %327 = vector.broadcast %326 : vector<1x512xf32> to vector<64x512xf32>
    %328 = arith.addf %325, %327 : vector<64x512xf32>
    %c0_152 = arith.constant 0 : index
    %c0_153 = arith.constant 0 : index
    %329 = vector.load %arg15[%c0_152, %c0_153] : memref<64x512xf32, #tpu.memory_space<vmem>>, vector<64x512xf32>
    tpu.vector_store %arg15[%c0_152, %c0_153], %328 {strides = array<i32>} : memref<64x512xf32, #tpu.memory_space<vmem>>, vector<64x512xf32>,
    %c0_i32_154 = arith.constant 0 : i32
    %c8_i32_155 = arith.constant 8 : i32
    %330 = arith.muli %c0_i32_154, %c8_i32_155 : i32
    %331 = tpu.assume_multiple %330, 8 : i32
    %c0_156 = arith.constant 0 : index
    %c0_157 = arith.constant 0 : index
    %332 = vector.load %arg13[%c0_156, %c0_157] : memref<8x128xf32, #tpu.memory_space<vmem>>, vector<8x128xf32>
    %c0_158 = arith.constant 0 : index
    %c0_159 = arith.constant 0 : index
    %333 = vector.load %arg14[%c0_158, %c0_159] : memref<8x128xf32, #tpu.memory_space<vmem>>, vector<8x128xf32>
    %334 = arith.index_cast %331 : i32 to index
    %c0_160 = arith.constant 0 : index
    %335 = vector.load %arg15[%334, %c0_160] : memref<64x512xf32, #tpu.memory_space<vmem>>, vector<8x512xf32>
    %336 = arith.truncf %332 : vector<8x128xf32> to vector<8x128xbf16>
    %c0_161 = arith.constant 0 : index
    %c0_162 = arith.constant 0 : index
    %337 = vector.load %arg6[%c0_161, %c0_162] : memref<128x512xbf16, #tpu.memory_space<vmem>>, vector<128x512xbf16>
    %cst_163 = arith.constant dense<0.000000e+00> : vector<8x512xf32>
    %338 = tpu.matmul %336, %337, %cst_163 {dimension_numbers = #tpu.dot_dimension_numbers<[1], [0], [0], [1], [0, 0, 1, 1], [], []>} : vector<8x128xbf16>, vector<128x512xbf16>, vector<8x512xf32> -> vector<8x512xf32>
    %339 = arith.addf %335, %338 : vector<8x512xf32>
    %340 = vector.extract_strided_slice %339 {offsets = [0, 0], sizes = [8, 128], strides = [1, 1]} : vector<8x512xf32> to vector<8x128xf32>
    %341 = arith.negf %340 : vector<8x128xf32>
    %342 = math.exp %341 : vector<8x128xf32>
    %cst_164 = arith.constant 1.000000e+00 : f32
    %343 = vector.broadcast %cst_164 : f32 to vector<8x128xf32>
    %344 = arith.addf %343, %342 : vector<8x128xf32>
    %345 = arith.divf %343, %344 : vector<8x128xf32>
    %346 = vector.extract_strided_slice %339 {offsets = [0, 128], sizes = [8, 128], strides = [1, 1]} : vector<8x512xf32> to vector<8x128xf32>
    %347 = arith.negf %346 : vector<8x128xf32>
    %348 = math.exp %347 : vector<8x128xf32>
    %cst_165 = arith.constant 1.000000e+00 : f32
    %349 = vector.broadcast %cst_165 : f32 to vector<8x128xf32>
    %350 = arith.addf %349, %348 : vector<8x128xf32>
    %351 = arith.divf %349, %350 : vector<8x128xf32>
    %352 = vector.extract_strided_slice %339 {offsets = [0, 256], sizes = [8, 128], strides = [1, 1]} : vector<8x512xf32> to vector<8x128xf32>
    %353 = math.tanh %352 : vector<8x128xf32>
    %354 = vector.extract_strided_slice %339 {offsets = [0, 384], sizes = [8, 128], strides = [1, 1]} : vector<8x512xf32> to vector<8x128xf32>
    %355 = arith.negf %354 : vector<8x128xf32>
    %356 = math.exp %355 : vector<8x128xf32>
    %cst_166 = arith.constant 1.000000e+00 : f32
    %357 = vector.broadcast %cst_166 : f32 to vector<8x128xf32>
    %358 = arith.addf %357, %356 : vector<8x128xf32>
    %359 = arith.divf %357, %358 : vector<8x128xf32>
    %360 = arith.mulf %351, %333 : vector<8x128xf32>
    %361 = arith.mulf %345, %353 : vector<8x128xf32>
    %362 = arith.addf %360, %361 : vector<8x128xf32>
    %363 = math.tanh %362 : vector<8x128xf32>
    %364 = arith.mulf %359, %363 : vector<8x128xf32>
    %c0_167 = arith.constant 0 : index
    %c0_168 = arith.constant 0 : index
    %365 = vector.load %arg14[%c0_167, %c0_168] : memref<8x128xf32, #tpu.memory_space<vmem>>, vector<8x128xf32>
    tpu.vector_store %arg14[%c0_167, %c0_168], %362 {strides = array<i32>} : memref<8x128xf32, #tpu.memory_space<vmem>>, vector<8x128xf32>,
    %c0_169 = arith.constant 0 : index
    %c0_170 = arith.constant 0 : index
    %366 = vector.load %arg13[%c0_169, %c0_170] : memref<8x128xf32, #tpu.memory_space<vmem>>, vector<8x128xf32>
    tpu.vector_store %arg13[%c0_169, %c0_170], %364 {strides = array<i32>} : memref<8x128xf32, #tpu.memory_space<vmem>>, vector<8x128xf32>,
    %c1_i32_171 = arith.constant 1 : i32
    %c8_i32_172 = arith.constant 8 : i32
    %367 = arith.muli %c1_i32_171, %c8_i32_172 : i32
    %368 = tpu.assume_multiple %367, 8 : i32
    %c0_173 = arith.constant 0 : index
    %c0_174 = arith.constant 0 : index
    %369 = vector.load %arg13[%c0_173, %c0_174] : memref<8x128xf32, #tpu.memory_space<vmem>>, vector<8x128xf32>
    %c0_175 = arith.constant 0 : index
    %c0_176 = arith.constant 0 : index
    %370 = vector.load %arg14[%c0_175, %c0_176] : memref<8x128xf32, #tpu.memory_space<vmem>>, vector<8x128xf32>
    %371 = arith.index_cast %368 : i32 to index
    %c0_177 = arith.constant 0 : index
    %372 = vector.load %arg15[%371, %c0_177] : memref<64x512xf32, #tpu.memory_space<vmem>>, vector<8x512xf32>
    %373 = arith.truncf %369 : vector<8x128xf32> to vector<8x128xbf16>
    %c0_178 = arith.constant 0 : index
    %c0_179 = arith.constant 0 : index
    %374 = vector.load %arg6[%c0_178, %c0_179] : memref<128x512xbf16, #tpu.memory_space<vmem>>, vector<128x512xbf16>
    %cst_180 = arith.constant dense<0.000000e+00> : vector<8x512xf32>
    %375 = tpu.matmul %373, %374, %cst_180 {dimension_numbers = #tpu.dot_dimension_numbers<[1], [0], [0], [1], [0, 0, 1, 1], [], []>} : vector<8x128xbf16>, vector<128x512xbf16>, vector<8x512xf32> -> vector<8x512xf32>
    %376 = arith.addf %372, %375 : vector<8x512xf32>
    %377 = vector.extract_strided_slice %376 {offsets = [0, 0], sizes = [8, 128], strides = [1, 1]} : vector<8x512xf32> to vector<8x128xf32>
    %378 = arith.negf %377 : vector<8x128xf32>
    %379 = math.exp %378 : vector<8x128xf32>
    %cst_181 = arith.constant 1.000000e+00 : f32
    %380 = vector.broadcast %cst_181 : f32 to vector<8x128xf32>
    %381 = arith.addf %380, %379 : vector<8x128xf32>
    %382 = arith.divf %380, %381 : vector<8x128xf32>
    %383 = vector.extract_strided_slice %376 {offsets = [0, 128], sizes = [8, 128], strides = [1, 1]} : vector<8x512xf32> to vector<8x128xf32>
    %384 = arith.negf %383 : vector<8x128xf32>
    %385 = math.exp %384 : vector<8x128xf32>
    %cst_182 = arith.constant 1.000000e+00 : f32
    %386 = vector.broadcast %cst_182 : f32 to vector<8x128xf32>
    %387 = arith.addf %386, %385 : vector<8x128xf32>
    %388 = arith.divf %386, %387 : vector<8x128xf32>
    %389 = vector.extract_strided_slice %376 {offsets = [0, 256], sizes = [8, 128], strides = [1, 1]} : vector<8x512xf32> to vector<8x128xf32>
    %390 = math.tanh %389 : vector<8x128xf32>
    %391 = vector.extract_strided_slice %376 {offsets = [0, 384], sizes = [8, 128], strides = [1, 1]} : vector<8x512xf32> to vector<8x128xf32>
    %392 = arith.negf %391 : vector<8x128xf32>
    %393 = math.exp %392 : vector<8x128xf32>
    %cst_183 = arith.constant 1.000000e+00 : f32
    %394 = vector.broadcast %cst_183 : f32 to vector<8x128xf32>
    %395 = arith.addf %394, %393 : vector<8x128xf32>
    %396 = arith.divf %394, %395 : vector<8x128xf32>
    %397 = arith.mulf %388, %370 : vector<8x128xf32>
    %398 = arith.mulf %382, %390 : vector<8x128xf32>
    %399 = arith.addf %397, %398 : vector<8x128xf32>
    %400 = math.tanh %399 : vector<8x128xf32>
    %401 = arith.mulf %396, %400 : vector<8x128xf32>
    %c0_184 = arith.constant 0 : index
    %c0_185 = arith.constant 0 : index
    %402 = vector.load %arg14[%c0_184, %c0_185] : memref<8x128xf32, #tpu.memory_space<vmem>>, vector<8x128xf32>
    tpu.vector_store %arg14[%c0_184, %c0_185], %399 {strides = array<i32>} : memref<8x128xf32, #tpu.memory_space<vmem>>, vector<8x128xf32>,
    %c0_186 = arith.constant 0 : index
    %c0_187 = arith.constant 0 : index
    %403 = vector.load %arg13[%c0_186, %c0_187] : memref<8x128xf32, #tpu.memory_space<vmem>>, vector<8x128xf32>
    tpu.vector_store %arg13[%c0_186, %c0_187], %401 {strides = array<i32>} : memref<8x128xf32, #tpu.memory_space<vmem>>, vector<8x128xf32>,
    %c2_i32_188 = arith.constant 2 : i32
    %c8_i32_189 = arith.constant 8 : i32
    %404 = arith.muli %c2_i32_188, %c8_i32_189 : i32
    %405 = tpu.assume_multiple %404, 8 : i32
    %c0_190 = arith.constant 0 : index
    %c0_191 = arith.constant 0 : index
    %406 = vector.load %arg13[%c0_190, %c0_191] : memref<8x128xf32, #tpu.memory_space<vmem>>, vector<8x128xf32>
    %c0_192 = arith.constant 0 : index
    %c0_193 = arith.constant 0 : index
    %407 = vector.load %arg14[%c0_192, %c0_193] : memref<8x128xf32, #tpu.memory_space<vmem>>, vector<8x128xf32>
    %408 = arith.index_cast %405 : i32 to index
    %c0_194 = arith.constant 0 : index
    %409 = vector.load %arg15[%408, %c0_194] : memref<64x512xf32, #tpu.memory_space<vmem>>, vector<8x512xf32>
    %410 = arith.truncf %406 : vector<8x128xf32> to vector<8x128xbf16>
    %c0_195 = arith.constant 0 : index
    %c0_196 = arith.constant 0 : index
    %411 = vector.load %arg6[%c0_195, %c0_196] : memref<128x512xbf16, #tpu.memory_space<vmem>>, vector<128x512xbf16>
    %cst_197 = arith.constant dense<0.000000e+00> : vector<8x512xf32>
    %412 = tpu.matmul %410, %411, %cst_197 {dimension_numbers = #tpu.dot_dimension_numbers<[1], [0], [0], [1], [0, 0, 1, 1], [], []>} : vector<8x128xbf16>, vector<128x512xbf16>, vector<8x512xf32> -> vector<8x512xf32>
    %413 = arith.addf %409, %412 : vector<8x512xf32>
    %414 = vector.extract_strided_slice %413 {offsets = [0, 0], sizes = [8, 128], strides = [1, 1]} : vector<8x512xf32> to vector<8x128xf32>
    %415 = arith.negf %414 : vector<8x128xf32>
    %416 = math.exp %415 : vector<8x128xf32>
    %cst_198 = arith.constant 1.000000e+00 : f32
    %417 = vector.broadcast %cst_198 : f32 to vector<8x128xf32>
    %418 = arith.addf %417, %416 : vector<8x128xf32>
    %419 = arith.divf %417, %418 : vector<8x128xf32>
    %420 = vector.extract_strided_slice %413 {offsets = [0, 128], sizes = [8, 128], strides = [1, 1]} : vector<8x512xf32> to vector<8x128xf32>
    %421 = arith.negf %420 : vector<8x128xf32>
    %422 = math.exp %421 : vector<8x128xf32>
    %cst_199 = arith.constant 1.000000e+00 : f32
    %423 = vector.broadcast %cst_199 : f32 to vector<8x128xf32>
    %424 = arith.addf %423, %422 : vector<8x128xf32>
    %425 = arith.divf %423, %424 : vector<8x128xf32>
    %426 = vector.extract_strided_slice %413 {offsets = [0, 256], sizes = [8, 128], strides = [1, 1]} : vector<8x512xf32> to vector<8x128xf32>
    %427 = math.tanh %426 : vector<8x128xf32>
    %428 = vector.extract_strided_slice %413 {offsets = [0, 384], sizes = [8, 128], strides = [1, 1]} : vector<8x512xf32> to vector<8x128xf32>
    %429 = arith.negf %428 : vector<8x128xf32>
    %430 = math.exp %429 : vector<8x128xf32>
    %cst_200 = arith.constant 1.000000e+00 : f32
    %431 = vector.broadcast %cst_200 : f32 to vector<8x128xf32>
    %432 = arith.addf %431, %430 : vector<8x128xf32>
    %433 = arith.divf %431, %432 : vector<8x128xf32>
    %434 = arith.mulf %425, %407 : vector<8x128xf32>
    %435 = arith.mulf %419, %427 : vector<8x128xf32>
    %436 = arith.addf %434, %435 : vector<8x128xf32>
    %437 = math.tanh %436 : vector<8x128xf32>
    %438 = arith.mulf %433, %437 : vector<8x128xf32>
    %c0_201 = arith.constant 0 : index
    %c0_202 = arith.constant 0 : index
    %439 = vector.load %arg14[%c0_201, %c0_202] : memref<8x128xf32, #tpu.memory_space<vmem>>, vector<8x128xf32>
    tpu.vector_store %arg14[%c0_201, %c0_202], %436 {strides = array<i32>} : memref<8x128xf32, #tpu.memory_space<vmem>>, vector<8x128xf32>,
    %c0_203 = arith.constant 0 : index
    %c0_204 = arith.constant 0 : index
    %440 = vector.load %arg13[%c0_203, %c0_204] : memref<8x128xf32, #tpu.memory_space<vmem>>, vector<8x128xf32>
    tpu.vector_store %arg13[%c0_203, %c0_204], %438 {strides = array<i32>} : memref<8x128xf32, #tpu.memory_space<vmem>>, vector<8x128xf32>,
    %c3_i32_205 = arith.constant 3 : i32
    %c8_i32_206 = arith.constant 8 : i32
    %441 = arith.muli %c3_i32_205, %c8_i32_206 : i32
    %442 = tpu.assume_multiple %441, 8 : i32
    %c0_207 = arith.constant 0 : index
    %c0_208 = arith.constant 0 : index
    %443 = vector.load %arg13[%c0_207, %c0_208] : memref<8x128xf32, #tpu.memory_space<vmem>>, vector<8x128xf32>
    %c0_209 = arith.constant 0 : index
    %c0_210 = arith.constant 0 : index
    %444 = vector.load %arg14[%c0_209, %c0_210] : memref<8x128xf32, #tpu.memory_space<vmem>>, vector<8x128xf32>
    %445 = arith.index_cast %442 : i32 to index
    %c0_211 = arith.constant 0 : index
    %446 = vector.load %arg15[%445, %c0_211] : memref<64x512xf32, #tpu.memory_space<vmem>>, vector<8x512xf32>
    %447 = arith.truncf %443 : vector<8x128xf32> to vector<8x128xbf16>
    %c0_212 = arith.constant 0 : index
    %c0_213 = arith.constant 0 : index
    %448 = vector.load %arg6[%c0_212, %c0_213] : memref<128x512xbf16, #tpu.memory_space<vmem>>, vector<128x512xbf16>
    %cst_214 = arith.constant dense<0.000000e+00> : vector<8x512xf32>
    %449 = tpu.matmul %447, %448, %cst_214 {dimension_numbers = #tpu.dot_dimension_numbers<[1], [0], [0], [1], [0, 0, 1, 1], [], []>} : vector<8x128xbf16>, vector<128x512xbf16>, vector<8x512xf32> -> vector<8x512xf32>
    %450 = arith.addf %446, %449 : vector<8x512xf32>
    %451 = vector.extract_strided_slice %450 {offsets = [0, 0], sizes = [8, 128], strides = [1, 1]} : vector<8x512xf32> to vector<8x128xf32>
    %452 = arith.negf %451 : vector<8x128xf32>
    %453 = math.exp %452 : vector<8x128xf32>
    %cst_215 = arith.constant 1.000000e+00 : f32
    %454 = vector.broadcast %cst_215 : f32 to vector<8x128xf32>
    %455 = arith.addf %454, %453 : vector<8x128xf32>
    %456 = arith.divf %454, %455 : vector<8x128xf32>
    %457 = vector.extract_strided_slice %450 {offsets = [0, 128], sizes = [8, 128], strides = [1, 1]} : vector<8x512xf32> to vector<8x128xf32>
    %458 = arith.negf %457 : vector<8x128xf32>
    %459 = math.exp %458 : vector<8x128xf32>
    %cst_216 = arith.constant 1.000000e+00 : f32
    %460 = vector.broadcast %cst_216 : f32 to vector<8x128xf32>
    %461 = arith.addf %460, %459 : vector<8x128xf32>
    %462 = arith.divf %460, %461 : vector<8x128xf32>
    %463 = vector.extract_strided_slice %450 {offsets = [0, 256], sizes = [8, 128], strides = [1, 1]} : vector<8x512xf32> to vector<8x128xf32>
    %464 = math.tanh %463 : vector<8x128xf32>
    %465 = vector.extract_strided_slice %450 {offsets = [0, 384], sizes = [8, 128], strides = [1, 1]} : vector<8x512xf32> to vector<8x128xf32>
    %466 = arith.negf %465 : vector<8x128xf32>
    %467 = math.exp %466 : vector<8x128xf32>
    %cst_217 = arith.constant 1.000000e+00 : f32
    %468 = vector.broadcast %cst_217 : f32 to vector<8x128xf32>
    %469 = arith.addf %468, %467 : vector<8x128xf32>
    %470 = arith.divf %468, %469 : vector<8x128xf32>
    %471 = arith.mulf %462, %444 : vector<8x128xf32>
    %472 = arith.mulf %456, %464 : vector<8x128xf32>
    %473 = arith.addf %471, %472 : vector<8x128xf32>
    %474 = math.tanh %473 : vector<8x128xf32>
    %475 = arith.mulf %470, %474 : vector<8x128xf32>
    %c0_218 = arith.constant 0 : index
    %c0_219 = arith.constant 0 : index
    %476 = vector.load %arg14[%c0_218, %c0_219] : memref<8x128xf32, #tpu.memory_space<vmem>>, vector<8x128xf32>
    tpu.vector_store %arg14[%c0_218, %c0_219], %473 {strides = array<i32>} : memref<8x128xf32, #tpu.memory_space<vmem>>, vector<8x128xf32>,
    %c0_220 = arith.constant 0 : index
    %c0_221 = arith.constant 0 : index
    %477 = vector.load %arg13[%c0_220, %c0_221] : memref<8x128xf32, #tpu.memory_space<vmem>>, vector<8x128xf32>
    tpu.vector_store %arg13[%c0_220, %c0_221], %475 {strides = array<i32>} : memref<8x128xf32, #tpu.memory_space<vmem>>, vector<8x128xf32>,
    %c4_i32_222 = arith.constant 4 : i32
    %c8_i32_223 = arith.constant 8 : i32
    %478 = arith.muli %c4_i32_222, %c8_i32_223 : i32
    %479 = tpu.assume_multiple %478, 8 : i32
    %c0_224 = arith.constant 0 : index
    %c0_225 = arith.constant 0 : index
    %480 = vector.load %arg13[%c0_224, %c0_225] : memref<8x128xf32, #tpu.memory_space<vmem>>, vector<8x128xf32>
    %c0_226 = arith.constant 0 : index
    %c0_227 = arith.constant 0 : index
    %481 = vector.load %arg14[%c0_226, %c0_227] : memref<8x128xf32, #tpu.memory_space<vmem>>, vector<8x128xf32>
    %482 = arith.index_cast %479 : i32 to index
    %c0_228 = arith.constant 0 : index
    %483 = vector.load %arg15[%482, %c0_228] : memref<64x512xf32, #tpu.memory_space<vmem>>, vector<8x512xf32>
    %484 = arith.truncf %480 : vector<8x128xf32> to vector<8x128xbf16>
    %c0_229 = arith.constant 0 : index
    %c0_230 = arith.constant 0 : index
    %485 = vector.load %arg6[%c0_229, %c0_230] : memref<128x512xbf16, #tpu.memory_space<vmem>>, vector<128x512xbf16>
    %cst_231 = arith.constant dense<0.000000e+00> : vector<8x512xf32>
    %486 = tpu.matmul %484, %485, %cst_231 {dimension_numbers = #tpu.dot_dimension_numbers<[1], [0], [0], [1], [0, 0, 1, 1], [], []>} : vector<8x128xbf16>, vector<128x512xbf16>, vector<8x512xf32> -> vector<8x512xf32>
    %487 = arith.addf %483, %486 : vector<8x512xf32>
    %488 = vector.extract_strided_slice %487 {offsets = [0, 0], sizes = [8, 128], strides = [1, 1]} : vector<8x512xf32> to vector<8x128xf32>
    %489 = arith.negf %488 : vector<8x128xf32>
    %490 = math.exp %489 : vector<8x128xf32>
    %cst_232 = arith.constant 1.000000e+00 : f32
    %491 = vector.broadcast %cst_232 : f32 to vector<8x128xf32>
    %492 = arith.addf %491, %490 : vector<8x128xf32>
    %493 = arith.divf %491, %492 : vector<8x128xf32>
    %494 = vector.extract_strided_slice %487 {offsets = [0, 128], sizes = [8, 128], strides = [1, 1]} : vector<8x512xf32> to vector<8x128xf32>
    %495 = arith.negf %494 : vector<8x128xf32>
    %496 = math.exp %495 : vector<8x128xf32>
    %cst_233 = arith.constant 1.000000e+00 : f32
    %497 = vector.broadcast %cst_233 : f32 to vector<8x128xf32>
    %498 = arith.addf %497, %496 : vector<8x128xf32>
    %499 = arith.divf %497, %498 : vector<8x128xf32>
    %500 = vector.extract_strided_slice %487 {offsets = [0, 256], sizes = [8, 128], strides = [1, 1]} : vector<8x512xf32> to vector<8x128xf32>
    %501 = math.tanh %500 : vector<8x128xf32>
    %502 = vector.extract_strided_slice %487 {offsets = [0, 384], sizes = [8, 128], strides = [1, 1]} : vector<8x512xf32> to vector<8x128xf32>
    %503 = arith.negf %502 : vector<8x128xf32>
    %504 = math.exp %503 : vector<8x128xf32>
    %cst_234 = arith.constant 1.000000e+00 : f32
    %505 = vector.broadcast %cst_234 : f32 to vector<8x128xf32>
    %506 = arith.addf %505, %504 : vector<8x128xf32>
    %507 = arith.divf %505, %506 : vector<8x128xf32>
    %508 = arith.mulf %499, %481 : vector<8x128xf32>
    %509 = arith.mulf %493, %501 : vector<8x128xf32>
    %510 = arith.addf %508, %509 : vector<8x128xf32>
    %511 = math.tanh %510 : vector<8x128xf32>
    %512 = arith.mulf %507, %511 : vector<8x128xf32>
    %c0_235 = arith.constant 0 : index
    %c0_236 = arith.constant 0 : index
    %513 = vector.load %arg14[%c0_235, %c0_236] : memref<8x128xf32, #tpu.memory_space<vmem>>, vector<8x128xf32>
    tpu.vector_store %arg14[%c0_235, %c0_236], %510 {strides = array<i32>} : memref<8x128xf32, #tpu.memory_space<vmem>>, vector<8x128xf32>,
    %c0_237 = arith.constant 0 : index
    %c0_238 = arith.constant 0 : index
    %514 = vector.load %arg13[%c0_237, %c0_238] : memref<8x128xf32, #tpu.memory_space<vmem>>, vector<8x128xf32>
    tpu.vector_store %arg13[%c0_237, %c0_238], %512 {strides = array<i32>} : memref<8x128xf32, #tpu.memory_space<vmem>>, vector<8x128xf32>,
    %c5_i32_239 = arith.constant 5 : i32
    %c8_i32_240 = arith.constant 8 : i32
    %515 = arith.muli %c5_i32_239, %c8_i32_240 : i32
    %516 = tpu.assume_multiple %515, 8 : i32
    %c0_241 = arith.constant 0 : index
    %c0_242 = arith.constant 0 : index
    %517 = vector.load %arg13[%c0_241, %c0_242] : memref<8x128xf32, #tpu.memory_space<vmem>>, vector<8x128xf32>
    %c0_243 = arith.constant 0 : index
    %c0_244 = arith.constant 0 : index
    %518 = vector.load %arg14[%c0_243, %c0_244] : memref<8x128xf32, #tpu.memory_space<vmem>>, vector<8x128xf32>
    %519 = arith.index_cast %516 : i32 to index
    %c0_245 = arith.constant 0 : index
    %520 = vector.load %arg15[%519, %c0_245] : memref<64x512xf32, #tpu.memory_space<vmem>>, vector<8x512xf32>
    %521 = arith.truncf %517 : vector<8x128xf32> to vector<8x128xbf16>
    %c0_246 = arith.constant 0 : index
    %c0_247 = arith.constant 0 : index
    %522 = vector.load %arg6[%c0_246, %c0_247] : memref<128x512xbf16, #tpu.memory_space<vmem>>, vector<128x512xbf16>
    %cst_248 = arith.constant dense<0.000000e+00> : vector<8x512xf32>
    %523 = tpu.matmul %521, %522, %cst_248 {dimension_numbers = #tpu.dot_dimension_numbers<[1], [0], [0], [1], [0, 0, 1, 1], [], []>} : vector<8x128xbf16>, vector<128x512xbf16>, vector<8x512xf32> -> vector<8x512xf32>
    %524 = arith.addf %520, %523 : vector<8x512xf32>
    %525 = vector.extract_strided_slice %524 {offsets = [0, 0], sizes = [8, 128], strides = [1, 1]} : vector<8x512xf32> to vector<8x128xf32>
    %526 = arith.negf %525 : vector<8x128xf32>
    %527 = math.exp %526 : vector<8x128xf32>
    %cst_249 = arith.constant 1.000000e+00 : f32
    %528 = vector.broadcast %cst_249 : f32 to vector<8x128xf32>
    %529 = arith.addf %528, %527 : vector<8x128xf32>
    %530 = arith.divf %528, %529 : vector<8x128xf32>
    %531 = vector.extract_strided_slice %524 {offsets = [0, 128], sizes = [8, 128], strides = [1, 1]} : vector<8x512xf32> to vector<8x128xf32>
    %532 = arith.negf %531 : vector<8x128xf32>
    %533 = math.exp %532 : vector<8x128xf32>
    %cst_250 = arith.constant 1.000000e+00 : f32
    %534 = vector.broadcast %cst_250 : f32 to vector<8x128xf32>
    %535 = arith.addf %534, %533 : vector<8x128xf32>
    %536 = arith.divf %534, %535 : vector<8x128xf32>
    %537 = vector.extract_strided_slice %524 {offsets = [0, 256], sizes = [8, 128], strides = [1, 1]} : vector<8x512xf32> to vector<8x128xf32>
    %538 = math.tanh %537 : vector<8x128xf32>
    %539 = vector.extract_strided_slice %524 {offsets = [0, 384], sizes = [8, 128], strides = [1, 1]} : vector<8x512xf32> to vector<8x128xf32>
    %540 = arith.negf %539 : vector<8x128xf32>
    %541 = math.exp %540 : vector<8x128xf32>
    %cst_251 = arith.constant 1.000000e+00 : f32
    %542 = vector.broadcast %cst_251 : f32 to vector<8x128xf32>
    %543 = arith.addf %542, %541 : vector<8x128xf32>
    %544 = arith.divf %542, %543 : vector<8x128xf32>
    %545 = arith.mulf %536, %518 : vector<8x128xf32>
    %546 = arith.mulf %530, %538 : vector<8x128xf32>
    %547 = arith.addf %545, %546 : vector<8x128xf32>
    %548 = math.tanh %547 : vector<8x128xf32>
    %549 = arith.mulf %544, %548 : vector<8x128xf32>
    %c0_252 = arith.constant 0 : index
    %c0_253 = arith.constant 0 : index
    %550 = vector.load %arg14[%c0_252, %c0_253] : memref<8x128xf32, #tpu.memory_space<vmem>>, vector<8x128xf32>
    tpu.vector_store %arg14[%c0_252, %c0_253], %547 {strides = array<i32>} : memref<8x128xf32, #tpu.memory_space<vmem>>, vector<8x128xf32>,
    %c0_254 = arith.constant 0 : index
    %c0_255 = arith.constant 0 : index
    %551 = vector.load %arg13[%c0_254, %c0_255] : memref<8x128xf32, #tpu.memory_space<vmem>>, vector<8x128xf32>
    tpu.vector_store %arg13[%c0_254, %c0_255], %549 {strides = array<i32>} : memref<8x128xf32, #tpu.memory_space<vmem>>, vector<8x128xf32>,
    %c6_i32_256 = arith.constant 6 : i32
    %c8_i32_257 = arith.constant 8 : i32
    %552 = arith.muli %c6_i32_256, %c8_i32_257 : i32
    %553 = tpu.assume_multiple %552, 8 : i32
    %c0_258 = arith.constant 0 : index
    %c0_259 = arith.constant 0 : index
    %554 = vector.load %arg13[%c0_258, %c0_259] : memref<8x128xf32, #tpu.memory_space<vmem>>, vector<8x128xf32>
    %c0_260 = arith.constant 0 : index
    %c0_261 = arith.constant 0 : index
    %555 = vector.load %arg14[%c0_260, %c0_261] : memref<8x128xf32, #tpu.memory_space<vmem>>, vector<8x128xf32>
    %556 = arith.index_cast %553 : i32 to index
    %c0_262 = arith.constant 0 : index
    %557 = vector.load %arg15[%556, %c0_262] : memref<64x512xf32, #tpu.memory_space<vmem>>, vector<8x512xf32>
    %558 = arith.truncf %554 : vector<8x128xf32> to vector<8x128xbf16>
    %c0_263 = arith.constant 0 : index
    %c0_264 = arith.constant 0 : index
    %559 = vector.load %arg6[%c0_263, %c0_264] : memref<128x512xbf16, #tpu.memory_space<vmem>>, vector<128x512xbf16>
    %cst_265 = arith.constant dense<0.000000e+00> : vector<8x512xf32>
    %560 = tpu.matmul %558, %559, %cst_265 {dimension_numbers = #tpu.dot_dimension_numbers<[1], [0], [0], [1], [0, 0, 1, 1], [], []>} : vector<8x128xbf16>, vector<128x512xbf16>, vector<8x512xf32> -> vector<8x512xf32>
    %561 = arith.addf %557, %560 : vector<8x512xf32>
    %562 = vector.extract_strided_slice %561 {offsets = [0, 0], sizes = [8, 128], strides = [1, 1]} : vector<8x512xf32> to vector<8x128xf32>
    %563 = arith.negf %562 : vector<8x128xf32>
    %564 = math.exp %563 : vector<8x128xf32>
    %cst_266 = arith.constant 1.000000e+00 : f32
    %565 = vector.broadcast %cst_266 : f32 to vector<8x128xf32>
    %566 = arith.addf %565, %564 : vector<8x128xf32>
    %567 = arith.divf %565, %566 : vector<8x128xf32>
    %568 = vector.extract_strided_slice %561 {offsets = [0, 128], sizes = [8, 128], strides = [1, 1]} : vector<8x512xf32> to vector<8x128xf32>
    %569 = arith.negf %568 : vector<8x128xf32>
    %570 = math.exp %569 : vector<8x128xf32>
    %cst_267 = arith.constant 1.000000e+00 : f32
    %571 = vector.broadcast %cst_267 : f32 to vector<8x128xf32>
    %572 = arith.addf %571, %570 : vector<8x128xf32>
    %573 = arith.divf %571, %572 : vector<8x128xf32>
    %574 = vector.extract_strided_slice %561 {offsets = [0, 256], sizes = [8, 128], strides = [1, 1]} : vector<8x512xf32> to vector<8x128xf32>
    %575 = math.tanh %574 : vector<8x128xf32>
    %576 = vector.extract_strided_slice %561 {offsets = [0, 384], sizes = [8, 128], strides = [1, 1]} : vector<8x512xf32> to vector<8x128xf32>
    %577 = arith.negf %576 : vector<8x128xf32>
    %578 = math.exp %577 : vector<8x128xf32>
    %cst_268 = arith.constant 1.000000e+00 : f32
    %579 = vector.broadcast %cst_268 : f32 to vector<8x128xf32>
    %580 = arith.addf %579, %578 : vector<8x128xf32>
    %581 = arith.divf %579, %580 : vector<8x128xf32>
    %582 = arith.mulf %573, %555 : vector<8x128xf32>
    %583 = arith.mulf %567, %575 : vector<8x128xf32>
    %584 = arith.addf %582, %583 : vector<8x128xf32>
    %585 = math.tanh %584 : vector<8x128xf32>
    %586 = arith.mulf %581, %585 : vector<8x128xf32>
    %c0_269 = arith.constant 0 : index
    %c0_270 = arith.constant 0 : index
    %587 = vector.load %arg14[%c0_269, %c0_270] : memref<8x128xf32, #tpu.memory_space<vmem>>, vector<8x128xf32>
    tpu.vector_store %arg14[%c0_269, %c0_270], %584 {strides = array<i32>} : memref<8x128xf32, #tpu.memory_space<vmem>>, vector<8x128xf32>,
    %c0_271 = arith.constant 0 : index
    %c0_272 = arith.constant 0 : index
    %588 = vector.load %arg13[%c0_271, %c0_272] : memref<8x128xf32, #tpu.memory_space<vmem>>, vector<8x128xf32>
    tpu.vector_store %arg13[%c0_271, %c0_272], %586 {strides = array<i32>} : memref<8x128xf32, #tpu.memory_space<vmem>>, vector<8x128xf32>,
    %c7_i32_273 = arith.constant 7 : i32
    %c8_i32_274 = arith.constant 8 : i32
    %589 = arith.muli %c7_i32_273, %c8_i32_274 : i32
    %590 = tpu.assume_multiple %589, 8 : i32
    %c0_275 = arith.constant 0 : index
    %c0_276 = arith.constant 0 : index
    %591 = vector.load %arg13[%c0_275, %c0_276] : memref<8x128xf32, #tpu.memory_space<vmem>>, vector<8x128xf32>
    %c0_277 = arith.constant 0 : index
    %c0_278 = arith.constant 0 : index
    %592 = vector.load %arg14[%c0_277, %c0_278] : memref<8x128xf32, #tpu.memory_space<vmem>>, vector<8x128xf32>
    %593 = arith.index_cast %590 : i32 to index
    %c0_279 = arith.constant 0 : index
    %594 = vector.load %arg15[%593, %c0_279] : memref<64x512xf32, #tpu.memory_space<vmem>>, vector<8x512xf32>
    %595 = arith.truncf %591 : vector<8x128xf32> to vector<8x128xbf16>
    %c0_280 = arith.constant 0 : index
    %c0_281 = arith.constant 0 : index
    %596 = vector.load %arg6[%c0_280, %c0_281] : memref<128x512xbf16, #tpu.memory_space<vmem>>, vector<128x512xbf16>
    %cst_282 = arith.constant dense<0.000000e+00> : vector<8x512xf32>
    %597 = tpu.matmul %595, %596, %cst_282 {dimension_numbers = #tpu.dot_dimension_numbers<[1], [0], [0], [1], [0, 0, 1, 1], [], []>} : vector<8x128xbf16>, vector<128x512xbf16>, vector<8x512xf32> -> vector<8x512xf32>
    %598 = arith.addf %594, %597 : vector<8x512xf32>
    %599 = vector.extract_strided_slice %598 {offsets = [0, 0], sizes = [8, 128], strides = [1, 1]} : vector<8x512xf32> to vector<8x128xf32>
    %600 = arith.negf %599 : vector<8x128xf32>
    %601 = math.exp %600 : vector<8x128xf32>
    %cst_283 = arith.constant 1.000000e+00 : f32
    %602 = vector.broadcast %cst_283 : f32 to vector<8x128xf32>
    %603 = arith.addf %602, %601 : vector<8x128xf32>
    %604 = arith.divf %602, %603 : vector<8x128xf32>
    %605 = vector.extract_strided_slice %598 {offsets = [0, 128], sizes = [8, 128], strides = [1, 1]} : vector<8x512xf32> to vector<8x128xf32>
    %606 = arith.negf %605 : vector<8x128xf32>
    %607 = math.exp %606 : vector<8x128xf32>
    %cst_284 = arith.constant 1.000000e+00 : f32
    %608 = vector.broadcast %cst_284 : f32 to vector<8x128xf32>
    %609 = arith.addf %608, %607 : vector<8x128xf32>
    %610 = arith.divf %608, %609 : vector<8x128xf32>
    %611 = vector.extract_strided_slice %598 {offsets = [0, 256], sizes = [8, 128], strides = [1, 1]} : vector<8x512xf32> to vector<8x128xf32>
    %612 = math.tanh %611 : vector<8x128xf32>
    %613 = vector.extract_strided_slice %598 {offsets = [0, 384], sizes = [8, 128], strides = [1, 1]} : vector<8x512xf32> to vector<8x128xf32>
    %614 = arith.negf %613 : vector<8x128xf32>
    %615 = math.exp %614 : vector<8x128xf32>
    %cst_285 = arith.constant 1.000000e+00 : f32
    %616 = vector.broadcast %cst_285 : f32 to vector<8x128xf32>
    %617 = arith.addf %616, %615 : vector<8x128xf32>
    %618 = arith.divf %616, %617 : vector<8x128xf32>
    %619 = arith.mulf %610, %592 : vector<8x128xf32>
    %620 = arith.mulf %604, %612 : vector<8x128xf32>
    %621 = arith.addf %619, %620 : vector<8x128xf32>
    %622 = math.tanh %621 : vector<8x128xf32>
    %623 = arith.mulf %618, %622 : vector<8x128xf32>
    %c0_286 = arith.constant 0 : index
    %c0_287 = arith.constant 0 : index
    %624 = vector.load %arg14[%c0_286, %c0_287] : memref<8x128xf32, #tpu.memory_space<vmem>>, vector<8x128xf32>
    tpu.vector_store %arg14[%c0_286, %c0_287], %621 {strides = array<i32>} : memref<8x128xf32, #tpu.memory_space<vmem>>, vector<8x128xf32>,
    %c0_288 = arith.constant 0 : index
    %c0_289 = arith.constant 0 : index
    %625 = vector.load %arg13[%c0_288, %c0_289] : memref<8x128xf32, #tpu.memory_space<vmem>>, vector<8x128xf32>
    tpu.vector_store %arg13[%c0_288, %c0_289], %623 {strides = array<i32>} : memref<8x128xf32, #tpu.memory_space<vmem>>, vector<8x128xf32>,
    %c8_i32_290 = arith.constant 8 : i32
    %c0_i32_291 = arith.constant 0 : i32
    %626 = arith.cmpi eq, %arg0, %c0_i32_291 : i32
    %627 = arith.extui %626 : i1 to i32
    %c0_i32_292 = arith.constant 0 : i32
    %628 = arith.cmpi ne, %627, %c0_i32_292 : i32
    scf.if %628 {
      %c0_293 = arith.constant 0 : index
      %c0_294 = arith.constant 0 : index
      %629 = vector.load %arg13[%c0_293, %c0_294] : memref<8x128xf32, #tpu.memory_space<vmem>>, vector<8x128xf32>
      %630 = arith.truncf %629 : vector<8x128xf32> to vector<8x128xbf16>
      %c0_295 = arith.constant 0 : index
      %c0_296 = arith.constant 0 : index
      %631 = vector.load %arg8[%c0_295, %c0_296] : memref<128x16xbf16, #tpu.memory_space<vmem>>, vector<128x16xbf16>
      %cst_297 = arith.constant dense<0.000000e+00> : vector<8x16xf32>
      %632 = tpu.matmul %630, %631, %cst_297 {dimension_numbers = #tpu.dot_dimension_numbers<[1], [0], [0], [1], [0, 0, 1, 1], [], []>} : vector<8x128xbf16>, vector<128x16xbf16>, vector<8x16xf32> -> vector<8x16xf32>
      %c0_298 = arith.constant 0 : index
      %c0_299 = arith.constant 0 : index
      %633 = vector.load %arg9[%c0_298, %c0_299] : memref<1x16xf32, #tpu.memory_space<vmem>>, vector<1x16xf32>
      %634 = vector.broadcast %633 : vector<1x16xf32> to vector<8x16xf32>
      %635 = arith.addf %632, %634 : vector<8x16xf32>
      %c0_300 = arith.constant 0 : index
      %c0_301 = arith.constant 0 : index
      %636 = vector.load %arg10[%c0_300, %c0_301] : memref<8x16xf32, #tpu.memory_space<vmem>>, vector<8x16xf32>
      tpu.vector_store %arg10[%c0_300, %c0_301], %635 {strides = array<i32>} : memref<8x16xf32, #tpu.memory_space<vmem>>, vector<8x16xf32>,
    } else {
    }
    return
  }
  func.func @transform_0(%arg0: i32) -> (i32, i32) {
    %c0_i32 = arith.constant 0 : i32
    %c0_i32_0 = arith.constant 0 : i32
    return %arg0, %c0_i32 : i32, i32
  }
  func.func @transform_1(%arg0: i32) -> (i32, i32) {
    %c0_i32 = arith.constant 0 : i32
    %c0_i32_0 = arith.constant 0 : i32
    %c0_i32_1 = arith.constant 0 : i32
    return %c0_i32, %c0_i32_0 : i32, i32
  }
  func.func @transform_2(%arg0: i32) -> (i32, i32) {
    %c0_i32 = arith.constant 0 : i32
    %c0_i32_0 = arith.constant 0 : i32
    %c0_i32_1 = arith.constant 0 : i32
    return %c0_i32, %c0_i32_0 : i32, i32
  }
  func.func @transform_3(%arg0: i32) -> (i32, i32) {
    %c0_i32 = arith.constant 0 : i32
    %c0_i32_0 = arith.constant 0 : i32
    %c0_i32_1 = arith.constant 0 : i32
    return %c0_i32, %c0_i32_0 : i32, i32
  }
  func.func @transform_4(%arg0: i32) -> (i32, i32) {
    %c0_i32 = arith.constant 0 : i32
    %c0_i32_0 = arith.constant 0 : i32
    %c0_i32_1 = arith.constant 0 : i32
    return %c0_i32, %c0_i32_0 : i32, i32
  }
  func.func @transform_5(%arg0: i32) -> (i32, i32) {
    %c0_i32 = arith.constant 0 : i32
    %c0_i32_0 = arith.constant 0 : i32
    %c0_i32_1 = arith.constant 0 : i32
    return %c0_i32, %c0_i32_0 : i32, i32
  }
  func.func @transform_6(%arg0: i32) -> (i32, i32) {
    %c0_i32 = arith.constant 0 : i32
    %c0_i32_0 = arith.constant 0 : i32
    %c0_i32_1 = arith.constant 0 : i32
    return %c0_i32, %c0_i32_0 : i32, i32
  }
  func.func @transform_7(%arg0: i32) -> (i32, i32) {
    %c0_i32 = arith.constant 0 : i32
    %c0_i32_0 = arith.constant 0 : i32
    %c0_i32_1 = arith.constant 0 : i32
    return %c0_i32, %c0_i32_0 : i32, i32
  }
  func.func @transform_8(%arg0: i32) -> (i32, i32) {
    %c0_i32 = arith.constant 0 : i32
    %c0_i32_0 = arith.constant 0 : i32
    %c0_i32_1 = arith.constant 0 : i32
    return %c0_i32, %c0_i32_0 : i32, i32
  }
  func.func @transform_9(%arg0: i32) -> (i32, i32) {
    %c0_i32 = arith.constant 0 : i32
    %c0_i32_0 = arith.constant 0 : i32
    %c0_i32_1 = arith.constant 0 : i32
    return %c0_i32, %c0_i32_0 : i32, i32
  }
}

</mosaic_0001>

<bundles_post_ra>
// kernel: mel_lstm_clf_forward.1
= control target key start
LH: loop header
LB: loop body
LE: loop exit
PB: predicated region body
PF: predicated region fallthrough
CT: control target
= control target key end

     0   :  { %14 = vsyncpa [#allocation9], 0  ;;  %s8494_s0 = inlined_call_operand.vmem [shape: bf16[64,16], index: 0, kind: input, shape index: {}]   ;;  %s8495_s1 = inlined_call_operand.vmem [shape: bf16[16,512], index: 1, kind: input, shape index: {}]   ;;  %s8496_s2 = inlined_call_operand.hbm [shape: bf16[128,512], index: 2, kind: input, shape index: {}]   ;;  %s8497_s3 = inlined_call_operand.vmem [shape: f32[1,512], index: 3, kind: input, shape index: {}]   ;;  %s8498_s4 = inlined_call_operand.hbm [shape: bf16[128,512], index: 4, kind: input, shape index: {}]   ;;  %s8499_s5 = inlined_call_operand.hbm [shape: bf16[128,512], index: 5, kind: input, shape index: {}]   ;;  %s8500_s6 = inlined_call_operand.vmem [shape: f32[1,512], index: 6, kind: input, shape index: {}]   ;;  %s8501_s7 = inlined_call_operand.vmem [shape: bf16[128,16], index: 7, kind: input, shape index: {}]   ;;  %s8502_s8 = inlined_call_operand.vmem [shape: f32[1,16], index: 8, kind: input, shape index: {}]   ;;  %s8503_s9 = inlined_call_operand.vmem [shape: f32[8,16], index: 9, kind: output, shape index: {}]  }
   0x1   :  { %15 = vsyncpa [#allocation11], 0  ;;  %s7135_s30 = smov [#allocation10]   ;;  %s7136_s11 = smov [#allocation8]  }
   0x2   :  { %s39_s10 = sshll.u32 %s7135_s30, 4  ;;  %s25_s12 = sshll.u32 %s7136_s11, 4  ;;  %s40_s10 = int_to_ptr.vmem [resolvable:$true] %s39_s10  ;;  %s7194_s12 = int_to_ptr.vmem [resolvable:$true] %s25_s12 }
   0x3   :  { %s7065_s15 = scalar_lea.hbm %s8498_s4, 4096 }
   0x4   :  { %p7066_p0 = scmp.ne.s32.totalorder %s8498_s4, %s7065_s15  ;;  %p7069_p1 = scmp.lt.u32.totalorder %s7065_s15, %s8498_s4 }
   0x6   :  { %p7071_p2 = pnand %p7069_p1, %p7066_p0 }
   0x8   :  { %7074 = shalt.err (!%p7071_p2)
}
   0x9   :  { %s7075_s20 = scalar_lea.vmem %s40_s10, 4096  ;;  %p7080_p4 = scmp.lt.s32.totalorder %s40_s10, %s40_s10 }
   0xa   :  { %p7076_p3 = scmp.ne.s32.totalorder %s40_s10, %s7075_s20  ;;  %p7081_p5 = scmp.lt.s32.totalorder %s7075_s20, %s7075_s20 }
   0xc   :  { %p7082_p6 = por %p7081_p5, %p7080_p4 }
   0xe   :  { %p7083_p7 = pnand %p7082_p6, %p7076_p3 }
  0x10   :  { %7086 = shalt.err (!%p7083_p7)
}
  0x11   :  { %s7137_s21 = smov 256   ;;  %s7138_s22 = smov 16  }
  0x12   :  { %45 = dma.hbm_to_vmem [thread:$0]  %s8498_s4, 4096, %s40_s10, [#allocation11], %s7137_s21, %s7137_s21, %s7138_s22  }
  0x13   :  { %s7087_s27 = scalar_lea.hbm %s8496_s2, 4096 }
  0x14   :  { %p7088_p8 = scmp.ne.s32.totalorder %s8496_s2, %s7087_s27  ;;  %p7091_p9 = scmp.lt.u32.totalorder %s7087_s27, %s8496_s2 }
  0x16   :  { %p7093_p10 = pnand %p7091_p9, %p7088_p8 }
  0x18   :  { %7096 = shalt.err (!%p7093_p10)
}
  0x19   :  { %s7097_s13 = scalar_lea.vmem %s7194_s12, 4096  ;;  %p7102_p12 = scmp.lt.s32.totalorder %s7194_s12, %s7194_s12 }
  0x1a   :  { %p7098_p11 = scmp.ne.s32.totalorder %s7194_s12, %s7097_s13  ;;  %p7103_p13 = scmp.lt.s32.totalorder %s7097_s13, %s7097_s13 }
  0x1c   :  { %p7104_p0 = por %p7103_p13, %p7102_p12 }
  0x1e   :  { %p7105_p1 = pnand %p7104_p0, %p7098_p11 }
  0x20   :  { %7108 = shalt.err (!%p7105_p1)
}
  0x21   :  { %31 = dma.hbm_to_vmem [thread:$0]  %s8496_s2, 4096, %s7194_s12, [#allocation9], %s7137_s21, %s7137_s21, %s7138_s22  }
  0x22   :  { %s7139_s14 = smov [#allocation12]   ;;  %s7109_s18 = scalar_lea.hbm %s8499_s5, 4096 }
  0x23   :  { %s51_s15 = sshll.u32 %s7139_s14, 4  ;;  %p7110_p2 = scmp.ne.s32.totalorder %s8499_s5, %s7109_s18  ;;  %s52_s15 = int_to_ptr.vmem [resolvable:$true] %s51_s15 }
  0x24   :  { %p7113_p3 = scmp.lt.u32.totalorder %s7109_s18, %s8499_s5 }
  0x26   :  { %p7115_p4 = pnand %p7113_p3, %p7110_p2 }
  0x28   :  { %7118 = shalt.err (!%p7115_p4)
}
  0x29   :  { %s7119_s25 = scalar_lea.vmem %s52_s15, 4096  ;;  %p7124_p6 = scmp.lt.s32.totalorder %s52_s15, %s52_s15 }
  0x2a   :  { %p7120_p5 = scmp.ne.s32.totalorder %s52_s15, %s7119_s25  ;;  %p7125_p7 = scmp.lt.s32.totalorder %s7119_s25, %s7119_s25 }
  0x2c   :  { %p7126_p8 = por %p7125_p7, %p7124_p6 }
  0x2e   :  { %p7127_p9 = pnand %p7126_p8, %p7120_p5 }
  0x30   :  { %7130 = shalt.err (!%p7127_p9)
}
  0x31   :  { %57 = dma.hbm_to_vmem [thread:$0]  %s8499_s5, 4096, %s52_s15, [#allocation11], %s7137_s21, %s7137_s21, %s7138_s22  }
  0x32   :  { %7131 = dma.done.wait [#allocation9], 4096  }
  0x33   :  { %7132 = vsyncadd [#allocation9], 4294963200 }
  0x34   :  { %7133 = dma.done.wait [#allocation11], 8192  }
  0x35   :  { %7134 = vsyncadd [#allocation11], 4294959104  ;;  %v8510_v0 = vmov 0   ;;  %v6551_v1 = vld [vmem:[%s8495_s1 + $0x4] ss:$16 sps:$4 sm:$0xff]   ;;  %vm156_vm0 = vcmask 130048   ;;  %v96_v42 = vlaneseq }
  0x36   :  { %201 = vmatprep.mubr.bf16.mxu0 %v8510_v0  ;;  %274 = vmatprep.mubr.bf16.mxu1 %v8510_v0  ;;  %v6553_v2 = vld [vmem:[%s8495_s1 + $0xc] ss:$16 sps:$4 sm:$0xff]   ;;  %v6555_v3 = vld [vmem:[%s8495_s1] ss:$16 sps:$4 sm:$0xff]   ;;  %v6556_v4 = vld [vmem:[%s8495_s1 + $0x8] ss:$16 sps:$4 sm:$0xff]  }
  0x37   :  { %169 = vmatprep.subr.bf16.mxu0 %v6551_v1  ;;  %242 = vmatprep.subr.bf16.mxu1 %v6553_v2  ;;  %v6557_v5 = vld [vmem:[%s8494_s0] sm:$0xff]   ;;  %v7267_v8 = vld [vmem:[#allocation8 + $0x8] ss:$16 sps:$4 sm:$0xff]   ;;  %v7270_v9 = vld [vmem:[#allocation8 + $0xc] ss:$16 sps:$4 sm:$0xff]   ;;  %v8508_v41 = vmov 0.0|0.0  }
  0x38   :  { %170 = vmatpush1.bf16.msra.mxu0 %v6555_v3  ;;  %243 = vmatpush1.bf16.msra.mxu1 %v6556_v4  ;;  %v7263_v6 = vld [vmem:[#allocation8] ss:$16 sps:$4 sm:$0xff]   ;;  %v7265_v7 = vld [vmem:[#allocation8 + $0x4] ss:$16 sps:$4 sm:$0xff]   ;;  %v7280_v12 = vld [vmem:[#allocation8 + $0x2c] ss:$16 sps:$4 sm:$0xff]  }
  0x39   :  { %549 = vmatprep.subr.bf16.mxu0 %v7265_v7  ;;  %v7274_v10 = vld [vmem:[#allocation8 + $0x24] ss:$16 sps:$4 sm:$0xff]   ;;  %590 = vmatprep.subr.bf16.mxu1 %v7270_v9  ;;  %v7278_v11 = vld [vmem:[#allocation8 + $0x20] ss:$16 sps:$4 sm:$0xff]   ;;  %v7284_v13 = vld [vmem:[#allocation8 + $0x28] ss:$16 sps:$4 sm:$0xff]  }
  0x3a   :  { %v6570_v14 = vld [vmem:[%s8494_s0 + $0x8] sm:$0xff]   ;;  %v7292_v15 = vld [vmem:[#allocation8 + $0x44] ss:$16 sps:$4 sm:$0xff]   ;;  %v7295_v16 = vld [vmem:[#allocation8 + $0x40] ss:$16 sps:$4 sm:$0xff]   ;;  %v7422_v43 = vshrl.u32 %v96_v42, 7 }
  0x3b   :  { %5904 = vmatmul.mubr.msk.bf16.vlgmr.msra.gmra.mrb[0].mxu0 %vm156_vm0, %v6557_v5  ;;  %5908 = vmatmul.mubr.msk.bf16.vlgmr.msra.gmra.mrb[0].mxu1 %vm156_vm0, %v6557_v5  ;;  %v7297_v17 = vld [vmem:[#allocation8 + $0x4c] ss:$16 sps:$4 sm:$0xff]   ;;  %v7301_v18 = vld [vmem:[#allocation8 + $0x48] ss:$16 sps:$4 sm:$0xff]   ;;  %v7303_v19 = vld [vmem:[#allocation8 + $0x64] ss:$16 sps:$4 sm:$0xff]  }
  0x3c   :  { %550 = vmatpush1.bf16.msra.mxu0 %v7263_v6  ;;  %591 = vmatpush1.bf16.msra.mxu1 %v7267_v8  ;;  %v7308_v20 = vld [vmem:[#allocation8 + $0x6c] ss:$16 sps:$4 sm:$0xff]   ;;  %v7311_v21 = vld [vmem:[#allocation8 + $0x60] ss:$16 sps:$4 sm:$0xff]   ;;  %v7316_v22 = vld [vmem:[#allocation8 + $0x68] ss:$16 sps:$4 sm:$0xff]  }
  0x3d   :  { %551 = vmatprep.subr.bf16.mxu0 %v7274_v10  ;;  %592 = vmatprep.subr.bf16.mxu1 %v7280_v12  ;;  %v7318_v23 = vld [vmem:[#allocation8 + $0x84] ss:$16 sps:$4 sm:$0xff]   ;;  %v7322_v24 = vld [vmem:[#allocation8 + $0x8c] ss:$16 sps:$4 sm:$0xff]   ;;  %v7328_v26 = vld [vmem:[#allocation8 + $0x80] ss:$16 sps:$4 sm:$0xff]  }
  0x3e   :  { %211 = vmatprep.mubr.bf16.mxu0 %v8510_v0  ;;  %284 = vmatprep.mubr.bf16.mxu1 %v8510_v0  ;;  %v6583_v25 = vld [vmem:[%s8494_s0 + $0x10] sm:$0xff]   ;;  %v7332_v27 = vld [vmem:[#allocation8 + $0x88] ss:$16 sps:$4 sm:$0xff]   ;;  %v7337_v29 = vld [vmem:[#allocation8 + $0xac] ss:$16 sps:$4 sm:$0xff]   ;;  %8514 = vst [vmem:[#allocation15_spill] sm:$0xff] %v7422_v43 }
  0x3f   :  { %v7334_v28 = vld [vmem:[#allocation8 + $0xa4] ss:$16 sps:$4 sm:$0xff]   ;;  %v7341_v30 = vld [vmem:[#allocation8 + $0xa0] ss:$16 sps:$4 sm:$0xff]   ;;  %v7344_v31 = vld [vmem:[#allocation8 + $0xa8] ss:$16 sps:$4 sm:$0xff]  }
  0x40   :  { %552 = vmatpush1.bf16.msra.mxu0 %v7278_v11  ;;  %593 = vmatpush1.bf16.msra.mxu1 %v7284_v13  ;;  %v6596_v32 = vld [vmem:[%s8494_s0 + $0x18] sm:$0xff]   ;;  %v7352_v33 = vld [vmem:[#allocation8 + $0xc4] ss:$16 sps:$4 sm:$0xff]   ;;  %v7356_v34 = vld [vmem:[#allocation8 + $0xc0] ss:$16 sps:$4 sm:$0xff]   ;;  %v8506_v44 = vsub.s32 2, %v7422_v43 }
  0x41   :  { %553 = vmatprep.subr.bf16.mxu0 %v7292_v15  ;;  %594 = vmatprep.subr.bf16.mxu1 %v7297_v17  ;;  %v7358_v35 = vld [vmem:[#allocation8 + $0xcc] ss:$16 sps:$4 sm:$0xff]   ;;  %v7360_v36 = vld [vmem:[#allocation8 + $0xc8] ss:$16 sps:$4 sm:$0xff]   ;;  %v7362_v37 = vld [vmem:[#allocation8 + $0xe4] ss:$16 sps:$4 sm:$0xff]  }
  0x42   :  { %v7365_v38 = vld [vmem:[#allocation8 + $0xec] ss:$16 sps:$4 sm:$0xff]   ;;  %v7370_v39 = vld [vmem:[#allocation8 + $0xe0] ss:$16 sps:$4 sm:$0xff]   ;;  %v7374_v40 = vld [vmem:[#allocation8 + $0xe8] ss:$16 sps:$4 sm:$0xff]  }
  0x43   :  { %5905 = vmatmul.mubr.msk.bf16.gmra.mrb[4].mxu0 %vm156_vm0, %v6570_v14  ;;  %5909 = vmatmul.mubr.msk.bf16.gmra.mrb[4].mxu1 %vm156_vm0, %v6570_v14  ;;  %v8504_v45 = vsub.s32 3, %v7422_v43  ;;  %v8507_v46 = vsub.s32 0, %v7422_v43  ;;  %v94_v47 = vld [vmem:[%s8497_s3] sm:$0xf]  ;;  %v8505_v48 = vsub.s32 1, %v7422_v43  ;;  %vm7143_vm1 = vmmov 0  }
  0x44   :  { %554 = vmatpush1.bf16.msra.mxu0 %v7295_v16  ;;  %221 = vmatprep.mubr.bf16.mxu0 %v8510_v0  ;;  %v7433_v49 = vrot.slane %v94_v47, %v8506_v44 }
  0x45   :  { %595 = vmatpush1.bf16.msra.mxu1 %v7301_v18  ;;  %555 = vmatprep.subr.bf16.mxu0 %v7303_v19  ;;  %v7441_v52 = vrot.slane %v94_v47, %v8504_v45  ;;  %v99_v53 = vrot.slane %v94_v47, %v8507_v46  ;;  %v103_v56 = vrot.slane %v94_v47, %v8505_v48 }
  0x46   :  { %596 = vmatprep.subr.bf16.mxu1 %v7308_v20  ;;  %294 = vmatprep.mubr.bf16.mxu1 %v8510_v0 }
  0x48   :  { %556 = vmatpush1.bf16.msra.mxu0 %v7311_v21 }
  0x49   :  { %597 = vmatpush1.bf16.msra.mxu1 %v7316_v22  ;;  %557 = vmatprep.subr.bf16.mxu0 %v7318_v23 }
  0x4a   :  { %598 = vmatprep.subr.bf16.mxu1 %v7322_v24 }
  0x4b   :  { %5906 = vmatmul.mubr.msk.bf16.gmra.mrb[8].mxu0 %vm156_vm0, %v6583_v25  ;;  %5910 = vmatmul.mubr.msk.bf16.gmra.mrb[8].mxu1 %vm156_vm0, %v6583_v25 }
  0x4c   :  { %558 = vmatpush1.bf16.msra.mxu0 %v7328_v26  ;;  %231 = vmatprep.mubr.bf16.mxu0 %v8510_v0 }
  0x4d   :  { %599 = vmatpush1.bf16.msra.mxu1 %v7332_v27  ;;  %559 = vmatprep.subr.bf16.mxu0 %v7334_v28 }
  0x4e   :  { %600 = vmatprep.subr.bf16.mxu1 %v7337_v29  ;;  %304 = vmatprep.mubr.bf16.mxu1 %v8510_v0 }
  0x50   :  { %560 = vmatpush1.bf16.msra.mxu0 %v7341_v30 }
  0x51   :  { %601 = vmatpush1.bf16.msra.mxu1 %v7344_v31  ;;  %561 = vmatprep.subr.bf16.mxu0 %v7352_v33 }
  0x52   :  { %602 = vmatprep.subr.bf16.mxu1 %v7358_v35 }
  0x53   :  { %5907 = vmatmul.mubr.msk.bf16.gmra.mrb[12].mxu0 %vm156_vm0, %v6596_v32  ;;  %5911 = vmatmul.mubr.msk.bf16.gmra.mrb[12].mxu1 %vm156_vm0, %v6596_v32 }
  0x54   :  { %562 = vmatpush1.bf16.msra.mxu0 %v7356_v34  ;;  %581 = vmatprep.mubr.bf16.mxu0 %v8510_v0 }
  0x55   :  { %603 = vmatpush1.bf16.msra.mxu1 %v7360_v36  ;;  %563 = vmatprep.subr.bf16.mxu0 %v7362_v37 }
  0x56   :  { %604 = vmatprep.subr.bf16.mxu1 %v7365_v38  ;;  %622 = vmatprep.mubr.bf16.mxu1 %v8510_v0 }
  0x58   :  { %564 = vmatpush1.bf16.msra.mxu0 %v7370_v39 }
  0x59   :  { %605 = vmatpush1.bf16.msra.mxu1 %v7374_v40  ;;  %864 = vmatprep.subr.bf16.mxu0 %v7265_v7 }
  0x5a   :  { %905 = vmatprep.subr.bf16.mxu1 %v7270_v9 }
  0x5b   :  { %582 = vmatmul.mubr.bf16.vlgmr.msra.gmra.mrb[16].mxu0 %v8508_v41 }
  0x5c   :  { %623 = vmatmul.mubr.bf16.vlgmr.msra.gmra.mrb[16].mxu1 %v8508_v41  ;;  %865 = vmatpush1.bf16.msra.mxu0 %v7263_v6 }
  0x5d   :  { %906 = vmatpush1.bf16.msra.mxu1 %v7267_v8  ;;  %866 = vmatprep.subr.bf16.mxu0 %v7274_v10 }
  0x5e   :  { %907 = vmatprep.subr.bf16.mxu1 %v7280_v12  ;;  %896 = vmatprep.mubr.bf16.mxu0 %v8510_v0 }
  0x5f   :  { %937 = vmatprep.mubr.bf16.mxu1 %v8510_v0 }
  0x60   :  { %867 = vmatpush1.bf16.msra.mxu0 %v7278_v11 }
  0x61   :  { %908 = vmatpush1.bf16.msra.mxu1 %v7284_v13  ;;  %868 = vmatprep.subr.bf16.mxu0 %v7292_v15 }
  0x62   :  { %909 = vmatprep.subr.bf16.mxu1 %v7297_v17 }
  0x64   :  { %869 = vmatpush1.bf16.msra.mxu0 %v7295_v16 }
  0x65   :  { %910 = vmatpush1.bf16.msra.mxu1 %v7301_v18  ;;  %870 = vmatprep.subr.bf16.mxu0 %v7303_v19 }
  0x66   :  { %911 = vmatprep.subr.bf16.mxu1 %v7308_v20 }
  0x68   :  { %871 = vmatpush1.bf16.msra.mxu0 %v7311_v21 }
  0x69   :  { %912 = vmatpush1.bf16.msra.mxu1 %v7316_v22  ;;  %872 = vmatprep.subr.bf16.mxu0 %v7318_v23 }
  0x6a   :  { %913 = vmatprep.subr.bf16.mxu1 %v7322_v24 }
  0x6c   :  { %873 = vmatpush1.bf16.msra.mxu0 %v7328_v26 }
  0x6d   :  { %914 = vmatpush1.bf16.msra.mxu1 %v7332_v27  ;;  %874 = vmatprep.subr.bf16.mxu0 %v7334_v28 }
  0x6e   :  { %915 = vmatprep.subr.bf16.mxu1 %v7337_v29 }
  0x70   :  { %875 = vmatpush1.bf16.msra.mxu0 %v7341_v30 }
  0x71   :  { %916 = vmatpush1.bf16.msra.mxu1 %v7344_v31  ;;  %876 = vmatprep.subr.bf16.mxu0 %v7352_v33 }
  0x72   :  { %917 = vmatprep.subr.bf16.mxu1 %v7358_v35 }
  0x74   :  { %877 = vmatpush1.bf16.msra.mxu0 %v7356_v34 }
  0x75   :  { %918 = vmatpush1.bf16.msra.mxu1 %v7360_v36  ;;  %878 = vmatprep.subr.bf16.mxu0 %v7362_v37 }
  0x76   :  { %919 = vmatprep.subr.bf16.mxu1 %v7365_v38 }
  0x78   :  { %879 = vmatpush1.bf16.msra.mxu0 %v7370_v39 }
  0x79   :  { %920 = vmatpush1.bf16.msra.mxu1 %v7374_v40  ;;  %1180 = vmatprep.subr.bf16.mxu0 %v7265_v7 }
  0x7a   :  { %1221 = vmatprep.subr.bf16.mxu1 %v7270_v9 }
 0x10e   :  { %v7435_v50 = vpop.f32.mrb[0].mxu0  ;;  %v7437_v51 = vpop.f32.mrb[0].mxu1 }
 0x10f   :  { %v205_v54 = vpop.f32.mrb[1].mxu0  ;;  %v278_v55 = vpop.f32.mrb[1].mxu1 }
 0x110   :  { %v207_v57 = vpop.f32.mrb[2].mxu0  ;;  %v280_v58 = vpop.f32.mrb[2].mxu1 }
 0x111   :  { %v7447_v59 = vadd.f32 %v207_v57, %v99_v53  ;;  %v209_v60 = vpop.f32.mrb[3].mxu0  ;;  %v7450_v61 = vadd.f32 %v280_v58, %v7433_v49  ;;  %v282_v62 = vpop.f32.mrb[3].mxu1 }
 0x112   :  { %v7452_v63 = vadd.f32 %v209_v60, %v103_v56  ;;  %v7455_v1 = vadd.f32 %v282_v62, %v7441_v52 }
 0x116   :  { %v213_v2 = vpop.f32.mrb[4].mxu0  ;;  %v286_v3 = vpop.f32.mrb[4].mxu1 }
 0x117   :  { %v7457_v4 = vadd.f32 %v213_v2, %v99_v53  ;;  %v215_v5 = vpop.f32.mrb[5].mxu0  ;;  %v7460_v14 = vadd.f32 %v286_v3, %v7433_v49  ;;  %v288_v25 = vpop.f32.mrb[5].mxu1 }
 0x118   :  { %v7462_v32 = vadd.f32 %v215_v5, %v103_v56  ;;  %v217_v42 = vpop.f32.mrb[6].mxu0  ;;  %v7465_v47 = vadd.f32 %v288_v25, %v7441_v52  ;;  %v290_v57 = vpop.f32.mrb[6].mxu1 }
 0x119   :  { %v7467_v58 = vadd.f32 %v217_v42, %v99_v53  ;;  %v219_v60 = vpop.f32.mrb[7].mxu0  ;;  %v7470_v62 = vadd.f32 %v290_v57, %v7433_v49  ;;  %v292_v2 = vpop.f32.mrb[7].mxu1 }
 0x11a   :  { %8515 = vst [vmem:[#allocation16_spill] sm:$0xff] %v7465_v47  ;;  %v7472_v45 = vadd.f32 %v219_v60, %v103_v56  ;;  %v7475_v3 = vadd.f32 %v292_v2, %v7441_v52 }
 0x11b   :  { %8516 = vst [vmem:[#allocation17_spill] sm:$0xff] %v7467_v58  ;;  %8517 = vst [vmem:[#allocation18_spill] sm:$0xff] %v7470_v62 }
 0x11c   :  { %8518 = vst [vmem:[#allocation19_spill] sm:$0xff] %v7472_v45  ;;  %8519 = vst [vmem:[#allocation20_spill] sm:$0xff] %v7475_v3 }
 0x11e   :  { %v223_v48 = vpop.f32.mrb[8].mxu0  ;;  %v296_v5 = vpop.f32.mrb[8].mxu1 }
 0x11f   :  { %v7477_v44 = vadd.f32 %v223_v48, %v99_v53  ;;  %v225_v46 = vpop.f32.mrb[9].mxu0  ;;  %v7480_v25 = vadd.f32 %v296_v5, %v7433_v49  ;;  %v298_v42 = vpop.f32.mrb[9].mxu1 }
 0x120   :  { %v7482_v41 = vadd.f32 %v225_v46, %v103_v56  ;;  %v227_v0 = vpop.f32.mrb[10].mxu0  ;;  %v7485_v57 = vadd.f32 %v298_v42, %v7441_v52  ;;  %v300_v60 = vpop.f32.mrb[10].mxu1 }
 0x121   :  { %8520 = vst [vmem:[#allocation21_spill] sm:$0xff] %v7477_v44  ;;  %8521 = vst [vmem:[#allocation22_spill] sm:$0xff] %v7480_v25  ;;  %v7487_v43 = vadd.f32 %v227_v0, %v99_v53  ;;  %v229_v2 = vpop.f32.mrb[11].mxu0  ;;  %v7490_v3 = vadd.f32 %v300_v60, %v7433_v49  ;;  %v302_v48 = vpop.f32.mrb[11].mxu1 }
 0x122   :  { %8522 = vst [vmem:[#allocation23_spill] sm:$0xff] %v7482_v41  ;;  %8523 = vst [vmem:[#allocation24_spill] sm:$0xff] %v7485_v57  ;;  %v7492_v44 = vadd.f32 %v229_v2, %v103_v56  ;;  %v7495_v5 = vadd.f32 %v302_v48, %v7441_v52 }
 0x123   :  { %8524 = vst [vmem:[#allocation25_spill] sm:$0xff] %v7487_v43  ;;  %8525 = vst [vmem:[#allocation26_spill] sm:$0xff] %v7490_v3 }
 0x124   :  { %8526 = vst [vmem:[#allocation27_spill] sm:$0xff] %v7492_v44  ;;  %8527 = vst [vmem:[#allocation28_spill] sm:$0xff] %v7495_v5 }
 0x126   :  { %v233_v25 = vpop.f32.mrb[12].mxu0  ;;  %v306_v46 = vpop.f32.mrb[12].mxu1 }
 0x127   :  { %v7497_v41 = vadd.f32 %v233_v25, %v99_v53  ;;  %v235_v45 = vpop.f32.mrb[13].mxu0  ;;  %v7500_v42 = vadd.f32 %v306_v46, %v7433_v49  ;;  %v308_v0 = vpop.f32.mrb[13].mxu1 }
 0x128   :  { %v7502_v43 = vadd.f32 %v235_v45, %v103_v56  ;;  %v237_v57 = vpop.f32.mrb[14].mxu0  ;;  %v7505_v60 = vadd.f32 %v308_v0, %v7441_v52  ;;  %v310_v2 = vpop.f32.mrb[14].mxu1  ;;  %v204_v45 = vadd.f32 %v7435_v50, %v99_v53  ;;  %v277_v0 = vadd.f32 %v7437_v51, %v7433_v49 }
 0x129   :  { %8528 = vst [vmem:[#allocation29_spill] sm:$0xff] %v7497_v41  ;;  %8529 = vst [vmem:[#allocation30_spill] sm:$0xff] %v7500_v42  ;;  %v7507_v44 = vadd.f32 %v237_v57, %v99_v53  ;;  %v239_v48 = vpop.f32.mrb[15].mxu0  ;;  %v7510_v5 = vadd.f32 %v310_v2, %v7433_v49  ;;  %v312_v25 = vpop.f32.mrb[15].mxu1  ;;  %v279_v57 = vadd.f32 %v278_v55, %v7441_v52 }
 0x12a   :  { %8530 = vst [vmem:[#allocation31_spill] sm:$0xff] %v7502_v43  ;;  %8531 = vst [vmem:[#allocation32_spill] sm:$0xff] %v7505_v60  ;;  %v7512_v41 = vadd.f32 %v239_v48, %v103_v56  ;;  %v7515_v46 = vadd.f32 %v312_v25, %v7441_v52  ;;  %v206_v43 = vadd.f32 %v205_v54, %v103_v56 }
 0x12b   :  { %8532 = vst [vmem:[#allocation33_spill] sm:$0xff] %v7507_v44  ;;  %8533 = vst [vmem:[#allocation34_spill] sm:$0xff] %v7510_v5 }
 0x12c   :  { %8534 = vst [vmem:[#allocation35_spill] sm:$0xff] %v7512_v41  ;;  %8535 = vst [vmem:[#allocation36_spill] sm:$0xff] %v7515_v46 }
 0x12e   :  { %v583_v60 = vpop.f32.mrb[16].mxu0 }
 0x12f   :  { %v631_v44 = vadd.f32 %v583_v60, %v204_v45  ;;  %v624_v42 = vpop.f32.mrb[16].mxu1  ;;  %v585_v3 = vpop.f32.mrb[17].mxu0 }
 0x130   :  { %v633_v2 = vadd.f32 %v624_v42, %v277_v0  ;;  %v632_v5 = vadd.f32 %v585_v3, %v206_v43  ;;  %v626_v62 = vpop.f32.mrb[17].mxu1  ;;  %v587_v48 = vpop.f32.mrb[18].mxu0 }
 0x131   :  { %v5944_v41 = vmul.f32 -1.442695, %v631_v44  ;;  %v634_v58 = vadd.f32 %v626_v62, %v279_v57  ;;  %v588_v25 = vpop.f32.mrb[19].mxu0  ;;  %v628_v46 = vpop.f32.mrb[18].mxu1 }
 0x132   :  { %v5945_v47 = vmul.f32 -1.442695, %v632_v5  ;;  %v629_v50 = vpop.f32.mrb[19].mxu1  ;;  %v8536_v46 = vmov 0  }
 0x133   :  { %6809 = vpow2.f32 %v5944_v41  ;;  %v5946_v53 = vmul.f32 -1.442695, %v634_v58 }
 0x134   :  { %6811 = vpow2.f32 %v5945_v47 }
 0x135   :  { %6813 = vpow2.f32 %v5946_v53 }
 0x136   :  { %6815 = vtanh.f32 %v633_v2 }
 0x13d   :  { %v6810_v49 = vpop.eup %6809 }
 0x13e   :  { %v6812_v51 = vpop.eup %6811  ;;  %v638_v54 = vadd.f32 1.0, %v6810_v49 }
 0x13f   :  { %v644_v52 = vadd.f32 1.0, %v6812_v51  ;;  %v6814_v43 = vpop.eup %6813 }
 0x140   :  { %6817 = vrcp.f32 %v638_v54  ;;  %v6816_v55 = vpop.eup %6815  ;;  %v651_v3 = vadd.f32 1.0, %v6814_v43 }
 0x141   :  { %6819 = vrcp.f32 %v644_v52 }
 0x142   :  { %6821 = vrcp.f32 %v651_v3 }
 0x14a   :  { %v6818_v56 = vpop.eup %6817 }
 0x14b   :  { %v6820_v44 = vpop.eup %6819  ;;  %v655_v62 = vmul.f32 %v6818_v56, %v6816_v55 }
 0x14c   :  { %v654_v42 = vmul.f32 0.0, %v6820_v44  ;;  %v6822_v41 = vpop.eup %6821 }
 0x14e   :  { %v7521_v5 = vadd.f32 %v655_v62, %v654_v42 }
 0x150   :  { %6823 = vtanh.f32 %v7521_v5 }
 0x15a   :  { %v6824_v47 = vpop.eup %6823 }
 0x15b   :  { %v7524_v58 = vmul.f32 %v6824_v47, %v6822_v41 }
 0x15d   :  { %v671_v60 = vpack.c.bf16 %v7524_v58, %v7524_v58 }
 0x15f   :  { %897 = vmatmul.mubr.bf16.vlgmr.msra.gmra.mrb[20].mxu0 %v671_v60  ;;  %938 = vmatmul.mubr.bf16.vlgmr.msra.gmra.mrb[20].mxu1 %v671_v60 }
 0x160   :  { %1181 = vmatpush1.bf16.msra.mxu0 %v7263_v6  ;;  %1222 = vmatpush1.bf16.msra.mxu1 %v7267_v8 }
 0x161   :  { %1182 = vmatprep.subr.bf16.mxu0 %v7274_v10  ;;  %1223 = vmatprep.subr.bf16.mxu1 %v7280_v12 }
 0x162   :  { %1212 = vmatprep.mubr.bf16.mxu0 %v8536_v46  ;;  %1253 = vmatprep.mubr.bf16.mxu1 %v8536_v46 }
 0x164   :  { %1183 = vmatpush1.bf16.msra.mxu0 %v7278_v11  ;;  %1224 = vmatpush1.bf16.msra.mxu1 %v7284_v13 }
 0x165   :  { %1184 = vmatprep.subr.bf16.mxu0 %v7292_v15  ;;  %1225 = vmatprep.subr.bf16.mxu1 %v7297_v17 }
 0x168   :  { %1185 = vmatpush1.bf16.msra.mxu0 %v7295_v16  ;;  %1226 = vmatpush1.bf16.msra.mxu1 %v7301_v18 }
 0x169   :  { %1186 = vmatprep.subr.bf16.mxu0 %v7303_v19  ;;  %1227 = vmatprep.subr.bf16.mxu1 %v7308_v20 }
 0x16c   :  { %1187 = vmatpush1.bf16.msra.mxu0 %v7311_v21  ;;  %1228 = vmatpush1.bf16.msra.mxu1 %v7316_v22 }
 0x16d   :  { %1188 = vmatprep.subr.bf16.mxu0 %v7318_v23  ;;  %1229 = vmatprep.subr.bf16.mxu1 %v7322_v24 }
 0x170   :  { %1189 = vmatpush1.bf16.msra.mxu0 %v7328_v26  ;;  %1230 = vmatpush1.bf16.msra.mxu1 %v7332_v27 }
 0x171   :  { %1190 = vmatprep.subr.bf16.mxu0 %v7334_v28  ;;  %1231 = vmatprep.subr.bf16.mxu1 %v7337_v29 }
 0x174   :  { %1191 = vmatpush1.bf16.msra.mxu0 %v7341_v30  ;;  %1232 = vmatpush1.bf16.msra.mxu1 %v7344_v31 }
 0x175   :  { %1192 = vmatprep.subr.bf16.mxu0 %v7352_v33  ;;  %1233 = vmatprep.subr.bf16.mxu1 %v7358_v35 }
 0x178   :  { %1193 = vmatpush1.bf16.msra.mxu0 %v7356_v34  ;;  %1234 = vmatpush1.bf16.msra.mxu1 %v7360_v36 }
 0x179   :  { %1194 = vmatprep.subr.bf16.mxu0 %v7362_v37  ;;  %1235 = vmatprep.subr.bf16.mxu1 %v7365_v38 }
 0x17c   :  { %1195 = vmatpush1.bf16.msra.mxu0 %v7370_v39  ;;  %1236 = vmatpush1.bf16.msra.mxu1 %v7374_v40 }
 0x17d   :  { %1496 = vmatprep.subr.bf16.mxu0 %v7265_v7  ;;  %1537 = vmatprep.subr.bf16.mxu1 %v7270_v9 }
 0x232   :  { %v898_v45 = vpop.f32.mrb[20].mxu0  ;;  %v939_v0 = vpop.f32.mrb[20].mxu1 }
 0x233   :  { %v946_v57 = vadd.f32 %v898_v45, %v7447_v59  ;;  %v948_v2 = vadd.f32 %v939_v0, %v7450_v61  ;;  %v900_v48 = vpop.f32.mrb[21].mxu0  ;;  %v941_v25 = vpop.f32.mrb[21].mxu1 }
 0x234   :  { %v947_v50 = vadd.f32 %v900_v48, %v7452_v63  ;;  %v949_v53 = vadd.f32 %v941_v25, %v7455_v1  ;;  %v902_v49 = vpop.f32.mrb[22].mxu0  ;;  %v943_v51 = vpop.f32.mrb[22].mxu1  ;;  %v7626_v48 = vld [vmem:[#allocation8 + $0x8] ss:$16 sps:$4 sm:$0xff]   ;;  %v7632_v25 = vld [vmem:[#allocation8 + $0x24] ss:$16 sps:$4 sm:$0xff]  }
 0x235   :  { %v5979_v54 = vmul.f32 -1.442695, %v946_v57  ;;  %v903_v52 = vpop.f32.mrb[23].mxu0  ;;  %v944_v43 = vpop.f32.mrb[23].mxu1  ;;  %v7638_v49 = vld [vmem:[#allocation8 + $0x28] ss:$16 sps:$4 sm:$0xff]  }
 0x236   :  { %v5980_v7 = vmul.f32 -1.442695, %v947_v50  ;;  %v5981_v9 = vmul.f32 -1.442695, %v949_v53  ;;  %v7634_v50 = vld [vmem:[#allocation8 + $0x2c] ss:$16 sps:$4 sm:$0xff]  }
 0x237   :  { %6825 = vpow2.f32 %v5979_v54  ;;  %v7636_v53 = vld [vmem:[#allocation8 + $0x20] ss:$16 sps:$4 sm:$0xff]   ;;  %v7644_v51 = vld [vmem:[#allocation8 + $0x44] ss:$16 sps:$4 sm:$0xff]   ;;  %v7646_v54 = vld [vmem:[#allocation8 + $0x4c] ss:$16 sps:$4 sm:$0xff]  }
 0x238   :  { %6827 = vpow2.f32 %v5980_v7  ;;  %v7648_v52 = vld [vmem:[#allocation8 + $0x40] ss:$16 sps:$4 sm:$0xff]   ;;  %v7650_v43 = vld [vmem:[#allocation8 + $0x48] ss:$16 sps:$4 sm:$0xff]   ;;  %v7656_v7 = vld [vmem:[#allocation8 + $0x64] ss:$16 sps:$4 sm:$0xff]  }
 0x239   :  { %6829 = vpow2.f32 %v5981_v9  ;;  %v7658_v9 = vld [vmem:[#allocation8 + $0x6c] ss:$16 sps:$4 sm:$0xff]  }
 0x23a   :  { %6831 = vtanh.f32 %v948_v2  ;;  %v7624_v2 = vld [vmem:[#allocation8] ss:$16 sps:$4 sm:$0xff]  }
 0x241   :  { %v6826_v55 = vpop.eup %6825 }
 0x242   :  { %v6828_v56 = vpop.eup %6827  ;;  %v953_v59 = vadd.f32 1.0, %v6826_v55  ;;  %v7660_v55 = vld [vmem:[#allocation8 + $0x60] ss:$16 sps:$4 sm:$0xff]  }
 0x243   :  { %v959_v61 = vadd.f32 1.0, %v6828_v56  ;;  %v6830_v63 = vpop.eup %6829  ;;  %v7662_v56 = vld [vmem:[#allocation8 + $0x68] ss:$16 sps:$4 sm:$0xff]  }
 0x244   :  { %6833 = vrcp.f32 %v953_v59  ;;  %v6832_v44 = vpop.eup %6831  ;;  %v966_v42 = vadd.f32 1.0, %v6830_v63  ;;  %v7668_v59 = vld [vmem:[#allocation8 + $0x84] ss:$16 sps:$4 sm:$0xff]   ;;  %v7672_v63 = vld [vmem:[#allocation8 + $0x80] ss:$16 sps:$4 sm:$0xff]  }
 0x245   :  { %6835 = vrcp.f32 %v959_v61  ;;  %v7670_v61 = vld [vmem:[#allocation8 + $0x8c] ss:$16 sps:$4 sm:$0xff]  }
 0x246   :  { %6837 = vrcp.f32 %v966_v42  ;;  %v7686_v42 = vld [vmem:[#allocation8 + $0xac] ss:$16 sps:$4 sm:$0xff]  }
 0x24e   :  { %v6834_v1 = vpop.eup %6833 }
 0x24f   :  { %v6836_v62 = vpop.eup %6835  ;;  %v970_v3 = vmul.f32 %v6834_v1, %v6832_v44  ;;  %v7674_v44 = vld [vmem:[#allocation8 + $0x88] ss:$16 sps:$4 sm:$0xff]   ;;  %v7678_v1 = vld [vmem:[#allocation8 + $0xa4] ss:$16 sps:$4 sm:$0xff]  }
 0x250   :  { %v969_v41 = vmul.f32 %v6836_v62, %v7521_v5  ;;  %v6838_v60 = vpop.eup %6837  ;;  %v7622_v5 = vld [vmem:[#allocation8 + $0xc] ss:$16 sps:$4 sm:$0xff]   ;;  %v7682_v62 = vld [vmem:[#allocation8 + $0xa0] ss:$16 sps:$4 sm:$0xff]  }
 0x252   :  { %v7567_v47 = vadd.f32 %v970_v3, %v969_v41  ;;  %v7684_v3 = vld [vmem:[#allocation8 + $0xa8] ss:$16 sps:$4 sm:$0xff]   ;;  %v7689_v41 = vld [vmem:[#allocation8 + $0xc4] ss:$16 sps:$4 sm:$0xff]  }
 0x254   :  { %6839 = vtanh.f32 %v7567_v47 }
 0x25e   :  { %v6840_v45 = vpop.eup %6839 }
 0x25f   :  { %v7570_v0 = vmul.f32 %v6840_v45, %v6838_v60  ;;  %v7696_v60 = vld [vmem:[#allocation8 + $0xc0] ss:$16 sps:$4 sm:$0xff]   ;;  %v7698_v45 = vld [vmem:[#allocation8 + $0xc8] ss:$16 sps:$4 sm:$0xff]  }
 0x261   :  { %v987_v57 = vpack.c.bf16 %v7570_v0, %v7570_v0 }
 0x263   :  { %1213 = vmatmul.mubr.bf16.vlgmr.msra.gmra.mrb[24].mxu0 %v987_v57  ;;  %1254 = vmatmul.mubr.bf16.vlgmr.msra.gmra.mrb[24].mxu1 %v987_v57  ;;  %v7702_v57 = vld [vmem:[#allocation8 + $0xe4] ss:$16 sps:$4 sm:$0xff]  }
 0x264   :  { %1497 = vmatpush1.bf16.msra.mxu0 %v7263_v6  ;;  %1538 = vmatpush1.bf16.msra.mxu1 %v7267_v8 }
 0x265   :  { %1498 = vmatprep.subr.bf16.mxu0 %v7274_v10  ;;  %1539 = vmatprep.subr.bf16.mxu1 %v7280_v12 }
 0x266   :  { %1528 = vmatprep.mubr.bf16.mxu0 %v8536_v46  ;;  %1569 = vmatprep.mubr.bf16.mxu1 %v8536_v46 }
 0x268   :  { %1499 = vmatpush1.bf16.msra.mxu0 %v7278_v11  ;;  %1540 = vmatpush1.bf16.msra.mxu1 %v7284_v13 }
 0x269   :  { %1500 = vmatprep.subr.bf16.mxu0 %v7292_v15  ;;  %1541 = vmatprep.subr.bf16.mxu1 %v7297_v17 }
 0x26c   :  { %1501 = vmatpush1.bf16.msra.mxu0 %v7295_v16  ;;  %1542 = vmatpush1.bf16.msra.mxu1 %v7301_v18  ;;  %v8537_v16 = vld [vmem:[#allocation16_spill] sm:$0xff] }
 0x26d   :  { %1502 = vmatprep.subr.bf16.mxu0 %v7303_v19  ;;  %1543 = vmatprep.subr.bf16.mxu1 %v7308_v20 }
 0x270   :  { %1503 = vmatpush1.bf16.msra.mxu0 %v7311_v21  ;;  %1544 = vmatpush1.bf16.msra.mxu1 %v7316_v22 }
 0x271   :  { %1504 = vmatprep.subr.bf16.mxu0 %v7318_v23  ;;  %1545 = vmatprep.subr.bf16.mxu1 %v7322_v24 }
 0x274   :  { %1505 = vmatpush1.bf16.msra.mxu0 %v7328_v26  ;;  %1546 = vmatpush1.bf16.msra.mxu1 %v7332_v27 }
 0x275   :  { %1506 = vmatprep.subr.bf16.mxu0 %v7334_v28  ;;  %1547 = vmatprep.subr.bf16.mxu1 %v7337_v29 }
 0x278   :  { %1507 = vmatpush1.bf16.msra.mxu0 %v7341_v30  ;;  %1548 = vmatpush1.bf16.msra.mxu1 %v7344_v31 }
 0x279   :  { %1508 = vmatprep.subr.bf16.mxu0 %v7352_v33  ;;  %1549 = vmatprep.subr.bf16.mxu1 %v7358_v35 }
 0x27c   :  { %1509 = vmatpush1.bf16.msra.mxu0 %v7356_v34  ;;  %1550 = vmatpush1.bf16.msra.mxu1 %v7360_v36 }
 0x27d   :  { %1510 = vmatprep.subr.bf16.mxu0 %v7362_v37  ;;  %1551 = vmatprep.subr.bf16.mxu1 %v7365_v38 }
 0x280   :  { %1511 = vmatpush1.bf16.msra.mxu0 %v7370_v39  ;;  %1552 = vmatpush1.bf16.msra.mxu1 %v7374_v40 }
 0x281   :  { %1853 = vmatprep.subr.bf16.mxu1 %v7622_v5 }
 0x336   :  { %v1214_v6 = vpop.f32.mrb[24].mxu0  ;;  %v1255_v8 = vpop.f32.mrb[24].mxu1 }
 0x337   :  { %v1262_v10 = vadd.f32 %v1214_v6, %v7457_v4  ;;  %v1264_v11 = vadd.f32 %v1255_v8, %v7460_v14  ;;  %v1216_v12 = vpop.f32.mrb[25].mxu0  ;;  %v1257_v13 = vpop.f32.mrb[25].mxu1  ;;  %v7704_v6 = vld [vmem:[#allocation8 + $0xec] ss:$16 sps:$4 sm:$0xff]   ;;  %v7708_v8 = vld [vmem:[#allocation8 + $0xe0] ss:$16 sps:$4 sm:$0xff]  }
 0x338   :  { %v1263_v15 = vadd.f32 %v1216_v12, %v7462_v32  ;;  %v1265_v17 = vadd.f32 %v1257_v13, %v8537_v16  ;;  %v1218_v18 = vpop.f32.mrb[26].mxu0  ;;  %v1259_v19 = vpop.f32.mrb[26].mxu1  ;;  %v7620_v32 = vld [vmem:[#allocation8 + $0x4] ss:$16 sps:$4 sm:$0xff]   ;;  %v8539_v16 = vld [vmem:[#allocation18_spill] sm:$0xff] }
 0x339   :  { %v6014_v20 = vmul.f32 -1.442695, %v1262_v10  ;;  %v1219_v21 = vpop.f32.mrb[27].mxu0  ;;  %v1260_v22 = vpop.f32.mrb[27].mxu1  ;;  %1812 = vmatprep.subr.bf16.mxu0 %v7620_v32  ;;  %v7710_v10 = vld [vmem:[#allocation8 + $0xe8] ss:$16 sps:$4 sm:$0xff]  }
 0x33a   :  { %v6015_v23 = vmul.f32 -1.442695, %v1263_v15  ;;  %v6016_v24 = vmul.f32 -1.442695, %v1265_v17  ;;  %v8538_v13 = vld [vmem:[#allocation17_spill] sm:$0xff]  ;;  %v8541_v22 = vld [vmem:[#allocation20_spill] sm:$0xff] }
 0x33b   :  { %6841 = vpow2.f32 %v6014_v20  ;;  %v8540_v20 = vld [vmem:[#allocation19_spill] sm:$0xff] }
 0x33c   :  { %6843 = vpow2.f32 %v6015_v23 }
 0x33d   :  { %6845 = vpow2.f32 %v6016_v24 }
 0x33e   :  { %6847 = vtanh.f32 %v1264_v11 }
 0x345   :  { %v6842_v26 = vpop.eup %6841 }
 0x346   :  { %v6844_v27 = vpop.eup %6843  ;;  %v1269_v28 = vadd.f32 1.0, %v6842_v26 }
 0x347   :  { %v1275_v29 = vadd.f32 1.0, %v6844_v27  ;;  %v6846_v30 = vpop.eup %6845 }
 0x348   :  { %6849 = vrcp.f32 %v1269_v28  ;;  %v6848_v31 = vpop.eup %6847  ;;  %v1282_v36 = vadd.f32 1.0, %v6846_v30 }
 0x349   :  { %6851 = vrcp.f32 %v1275_v29 }
 0x34a   :  { %6853 = vrcp.f32 %v1282_v36 }
 0x352   :  { %v6850_v33 = vpop.eup %6849 }
 0x353   :  { %v6852_v34 = vpop.eup %6851  ;;  %v1286_v35 = vmul.f32 %v6850_v33, %v6848_v31 }
 0x354   :  { %v1285_v37 = vmul.f32 %v6852_v34, %v7567_v47  ;;  %v6854_v39 = vpop.eup %6853  ;;  %v7691_v47 = vld [vmem:[#allocation8 + $0xcc] ss:$16 sps:$4 sm:$0xff]  }
 0x356   :  { %v7611_v38 = vadd.f32 %v1286_v35, %v1285_v37 }
 0x358   :  { %6855 = vtanh.f32 %v7611_v38 }
 0x362   :  { %v6856_v40 = vpop.eup %6855 }
 0x363   :  { %v7614_v4 = vmul.f32 %v6856_v40, %v6854_v39 }
 0x365   :  { %v1303_v14 = vpack.c.bf16 %v7614_v4, %v7614_v4 }
 0x367   :  { %1529 = vmatmul.mubr.bf16.vlgmr.msra.gmra.mrb[28].mxu0 %v1303_v14  ;;  %1570 = vmatmul.mubr.bf16.vlgmr.msra.gmra.mrb[28].mxu1 %v1303_v14 }
 0x368   :  { %1844 = vmatprep.mubr.bf16.mxu0 %v8536_v46  ;;  %1885 = vmatprep.mubr.bf16.mxu1 %v8536_v46 }
 0x369   :  { %1813 = vmatpush1.bf16.msra.mxu0 %v7624_v2  ;;  %1854 = vmatpush1.bf16.msra.mxu1 %v7626_v48 }
 0x36a   :  { %1814 = vmatprep.subr.bf16.mxu0 %v7632_v25  ;;  %1855 = vmatprep.subr.bf16.mxu1 %v7634_v50 }
 0x36d   :  { %1815 = vmatpush1.bf16.msra.mxu0 %v7636_v53  ;;  %1856 = vmatpush1.bf16.msra.mxu1 %v7638_v49 }
 0x36e   :  { %1816 = vmatprep.subr.bf16.mxu0 %v7644_v51  ;;  %1857 = vmatprep.subr.bf16.mxu1 %v7646_v54 }
 0x371   :  { %1817 = vmatpush1.bf16.msra.mxu0 %v7648_v52  ;;  %1858 = vmatpush1.bf16.msra.mxu1 %v7650_v43 }
 0x372   :  { %1818 = vmatprep.subr.bf16.mxu0 %v7656_v7  ;;  %1859 = vmatprep.subr.bf16.mxu1 %v7658_v9 }
 0x375   :  { %1819 = vmatpush1.bf16.msra.mxu0 %v7660_v55  ;;  %1860 = vmatpush1.bf16.msra.mxu1 %v7662_v56 }
 0x376   :  { %1820 = vmatprep.subr.bf16.mxu0 %v7668_v59  ;;  %1861 = vmatprep.subr.bf16.mxu1 %v7670_v61 }
 0x379   :  { %1821 = vmatpush1.bf16.msra.mxu0 %v7672_v63  ;;  %1862 = vmatpush1.bf16.msra.mxu1 %v7674_v44 }
 0x37a   :  { %1822 = vmatprep.subr.bf16.mxu0 %v7678_v1  ;;  %1863 = vmatprep.subr.bf16.mxu1 %v7686_v42 }
 0x37d   :  { %1823 = vmatpush1.bf16.msra.mxu0 %v7682_v62  ;;  %1864 = vmatpush1.bf16.msra.mxu1 %v7684_v3 }
 0x37e   :  { %1824 = vmatprep.subr.bf16.mxu0 %v7689_v41  ;;  %1865 = vmatprep.subr.bf16.mxu1 %v7691_v47 }
 0x381   :  { %1825 = vmatpush1.bf16.msra.mxu0 %v7696_v60  ;;  %1866 = vmatpush1.bf16.msra.mxu1 %v7698_v45 }
 0x382   :  { %1826 = vmatprep.subr.bf16.mxu0 %v7702_v57  ;;  %1867 = vmatprep.subr.bf16.mxu1 %v7704_v6 }
 0x385   :  { %1827 = vmatpush1.bf16.msra.mxu0 %v7708_v8  ;;  %1868 = vmatpush1.bf16.msra.mxu1 %v7710_v10 }
 0x386   :  { %2128 = vmatprep.subr.bf16.mxu0 %v7620_v32  ;;  %2169 = vmatprep.subr.bf16.mxu1 %v7622_v5 }
 0x43a   :  { %v1530_v11 = vpop.f32.mrb[28].mxu0  ;;  %v1571_v12 = vpop.f32.mrb[28].mxu1 }
 0x43b   :  { %v1578_v15 = vadd.f32 %v1530_v11, %v8538_v13  ;;  %v1580_v17 = vadd.f32 %v1571_v12, %v8539_v16  ;;  %v1532_v18 = vpop.f32.mrb[29].mxu0  ;;  %v1573_v19 = vpop.f32.mrb[29].mxu1 }
 0x43c   :  { %v1579_v21 = vadd.f32 %v1532_v18, %v8540_v20  ;;  %v1581_v23 = vadd.f32 %v1573_v19, %v8541_v22  ;;  %v1534_v24 = vpop.f32.mrb[30].mxu0  ;;  %v1575_v26 = vpop.f32.mrb[30].mxu1 }
 0x43d   :  { %v6049_v27 = vmul.f32 -1.442695, %v1578_v15  ;;  %v1535_v28 = vpop.f32.mrb[31].mxu0  ;;  %v1576_v29 = vpop.f32.mrb[31].mxu1 }
 0x43e   :  { %v6050_v30 = vmul.f32 -1.442695, %v1579_v21  ;;  %v6051_v31 = vmul.f32 -1.442695, %v1581_v23  ;;  %v8542_v21 = vld [vmem:[#allocation21_spill] sm:$0xff]  ;;  %v8543_v23 = vld [vmem:[#allocation22_spill] sm:$0xff] }
 0x43f   :  { %6857 = vpow2.f32 %v6049_v27  ;;  %v8544_v28 = vld [vmem:[#allocation23_spill] sm:$0xff] }
 0x440   :  { %6859 = vpow2.f32 %v6050_v30  ;;  %v8545_v30 = vld [vmem:[#allocation24_spill] sm:$0xff] }
 0x441   :  { %6861 = vpow2.f32 %v6051_v31 }
 0x442   :  { %6863 = vtanh.f32 %v1580_v17 }
 0x449   :  { %v6858_v33 = vpop.eup %6857 }
 0x44a   :  { %v6860_v34 = vpop.eup %6859  ;;  %v1585_v35 = vadd.f32 1.0, %v6858_v33 }
 0x44b   :  { %v1591_v36 = vadd.f32 1.0, %v6860_v34  ;;  %v6862_v37 = vpop.eup %6861 }
 0x44c   :  { %6865 = vrcp.f32 %v1585_v35  ;;  %v6864_v39 = vpop.eup %6863  ;;  %v1598_v12 = vadd.f32 1.0, %v6862_v37 }
 0x44d   :  { %6867 = vrcp.f32 %v1591_v36 }
 0x44e   :  { %6869 = vrcp.f32 %v1598_v12 }
 0x456   :  { %v6866_v40 = vpop.eup %6865 }
 0x457   :  { %v6868_v14 = vpop.eup %6867  ;;  %v1602_v11 = vmul.f32 %v6866_v40, %v6864_v39 }
 0x458   :  { %v1601_v13 = vmul.f32 %v6868_v14, %v7611_v38  ;;  %v6870_v16 = vpop.eup %6869 }
 0x45a   :  { %v7723_v15 = vadd.f32 %v1602_v11, %v1601_v13 }
 0x45c   :  { %6871 = vtanh.f32 %v7723_v15 }
 0x466   :  { %v6872_v18 = vpop.eup %6871 }
 0x467   :  { %v7726_v19 = vmul.f32 %v6872_v18, %v6870_v16 }
 0x469   :  { %v1619_v17 = vpack.c.bf16 %v7726_v19, %v7726_v19 }
 0x46b   :  { %1845 = vmatmul.mubr.bf16.vlgmr.msra.gmra.mrb[32].mxu0 %v1619_v17  ;;  %1886 = vmatmul.mubr.bf16.vlgmr.msra.gmra.mrb[32].mxu1 %v1619_v17 }
 0x46c   :  { %2129 = vmatpush1.bf16.msra.mxu0 %v7624_v2  ;;  %2170 = vmatpush1.bf16.msra.mxu1 %v7626_v48 }
 0x46d   :  { %2130 = vmatprep.subr.bf16.mxu0 %v7632_v25  ;;  %2171 = vmatprep.subr.bf16.mxu1 %v7634_v50 }
 0x46e   :  { %2160 = vmatprep.mubr.bf16.mxu0 %v8536_v46  ;;  %2201 = vmatprep.mubr.bf16.mxu1 %v8536_v46 }
 0x470   :  { %2131 = vmatpush1.bf16.msra.mxu0 %v7636_v53  ;;  %2172 = vmatpush1.bf16.msra.mxu1 %v7638_v49 }
 0x471   :  { %2132 = vmatprep.subr.bf16.mxu0 %v7644_v51  ;;  %2173 = vmatprep.subr.bf16.mxu1 %v7646_v54 }
 0x474   :  { %2133 = vmatpush1.bf16.msra.mxu0 %v7648_v52  ;;  %2174 = vmatpush1.bf16.msra.mxu1 %v7650_v43 }
 0x475   :  { %2134 = vmatprep.subr.bf16.mxu0 %v7656_v7  ;;  %2175 = vmatprep.subr.bf16.mxu1 %v7658_v9 }
 0x478   :  { %2135 = vmatpush1.bf16.msra.mxu0 %v7660_v55  ;;  %2176 = vmatpush1.bf16.msra.mxu1 %v7662_v56 }
 0x479   :  { %2136 = vmatprep.subr.bf16.mxu0 %v7668_v59  ;;  %2177 = vmatprep.subr.bf16.mxu1 %v7670_v61 }
 0x47c   :  { %2137 = vmatpush1.bf16.msra.mxu0 %v7672_v63  ;;  %2178 = vmatpush1.bf16.msra.mxu1 %v7674_v44 }
 0x47d   :  { %2138 = vmatprep.subr.bf16.mxu0 %v7678_v1  ;;  %2179 = vmatprep.subr.bf16.mxu1 %v7686_v42 }
 0x480   :  { %2139 = vmatpush1.bf16.msra.mxu0 %v7682_v62  ;;  %2180 = vmatpush1.bf16.msra.mxu1 %v7684_v3 }
 0x481   :  { %2140 = vmatprep.subr.bf16.mxu0 %v7689_v41  ;;  %2181 = vmatprep.subr.bf16.mxu1 %v7691_v47 }
 0x484   :  { %2141 = vmatpush1.bf16.msra.mxu0 %v7696_v60  ;;  %2182 = vmatpush1.bf16.msra.mxu1 %v7698_v45 }
 0x485   :  { %2142 = vmatprep.subr.bf16.mxu0 %v7702_v57  ;;  %2183 = vmatprep.subr.bf16.mxu1 %v7704_v6 }
 0x488   :  { %2143 = vmatpush1.bf16.msra.mxu0 %v7708_v8  ;;  %2184 = vmatpush1.bf16.msra.mxu1 %v7710_v10 }
 0x489   :  { %2444 = vmatprep.subr.bf16.mxu0 %v7620_v32  ;;  %2485 = vmatprep.subr.bf16.mxu1 %v7622_v5 }
 0x53e   :  { %v1846_v38 = vpop.f32.mrb[32].mxu0  ;;  %v1887_v20 = vpop.f32.mrb[32].mxu1 }
 0x53f   :  { %v1894_v22 = vadd.f32 %v1846_v38, %v8542_v21  ;;  %v1896_v24 = vadd.f32 %v1887_v20, %v8543_v23  ;;  %v1848_v26 = vpop.f32.mrb[33].mxu0  ;;  %v1889_v27 = vpop.f32.mrb[33].mxu1 }
 0x540   :  { %v1895_v29 = vadd.f32 %v1848_v26, %v8544_v28  ;;  %v1897_v31 = vadd.f32 %v1889_v27, %v8545_v30  ;;  %v1850_v33 = vpop.f32.mrb[34].mxu0  ;;  %v1891_v34 = vpop.f32.mrb[34].mxu1  ;;  %v8546_v30 = vld [vmem:[#allocation25_spill] sm:$0xff] }
 0x541   :  { %v6084_v35 = vmul.f32 -1.442695, %v1894_v22  ;;  %v1851_v36 = vpop.f32.mrb[35].mxu0  ;;  %v1892_v37 = vpop.f32.mrb[35].mxu1  ;;  %v8547_v33 = vld [vmem:[#allocation26_spill] sm:$0xff] }
 0x542   :  { %v6085_v39 = vmul.f32 -1.442695, %v1895_v29  ;;  %v6086_v40 = vmul.f32 -1.442695, %v1897_v31  ;;  %v8548_v37 = vld [vmem:[#allocation27_spill] sm:$0xff] }
 0x543   :  { %6873 = vpow2.f32 %v6084_v35 }
 0x544   :  { %6875 = vpow2.f32 %v6085_v39 }
 0x545   :  { %6877 = vpow2.f32 %v6086_v40  ;;  %v8549_v40 = vld [vmem:[#allocation28_spill] sm:$0xff] }
 0x546   :  { %6879 = vtanh.f32 %v1896_v24 }
 0x54d   :  { %v6874_v14 = vpop.eup %6873 }
 0x54e   :  { %v6876_v11 = vpop.eup %6875  ;;  %v1901_v12 = vadd.f32 1.0, %v6874_v14 }
 0x54f   :  { %v1907_v13 = vadd.f32 1.0, %v6876_v11  ;;  %v6878_v16 = vpop.eup %6877 }
 0x550   :  { %6881 = vrcp.f32 %v1901_v12  ;;  %v6880_v18 = vpop.eup %6879  ;;  %v1914_v21 = vadd.f32 1.0, %v6878_v16 }
 0x551   :  { %6883 = vrcp.f32 %v1907_v13 }
 0x552   :  { %6885 = vrcp.f32 %v1914_v21 }
 0x55a   :  { %v6882_v17 = vpop.eup %6881 }
 0x55b   :  { %v6884_v38 = vpop.eup %6883  ;;  %v1918_v20 = vmul.f32 %v6882_v17, %v6880_v18 }
 0x55c   :  { %v1917_v22 = vmul.f32 %v6884_v38, %v7723_v15  ;;  %v6886_v26 = vpop.eup %6885 }
 0x55e   :  { %v7769_v23 = vadd.f32 %v1918_v20, %v1917_v22 }
 0x560   :  { %6887 = vtanh.f32 %v7769_v23 }
 0x56a   :  { %v6888_v27 = vpop.eup %6887 }
 0x56b   :  { %v7772_v28 = vmul.f32 %v6888_v27, %v6886_v26 }
 0x56d   :  { %v1935_v24 = vpack.c.bf16 %v7772_v28, %v7772_v28 }
 0x56f   :  { %2161 = vmatmul.mubr.bf16.vlgmr.msra.gmra.mrb[36].mxu0 %v1935_v24  ;;  %2202 = vmatmul.mubr.bf16.vlgmr.msra.gmra.mrb[36].mxu1 %v1935_v24 }
 0x570   :  { %2445 = vmatpush1.bf16.msra.mxu0 %v7624_v2  ;;  %2486 = vmatpush1.bf16.msra.mxu1 %v7626_v48 }
 0x571   :  { %2446 = vmatprep.subr.bf16.mxu0 %v7632_v25  ;;  %2487 = vmatprep.subr.bf16.mxu1 %v7634_v50 }
 0x572   :  { %2476 = vmatprep.mubr.bf16.mxu0 %v8536_v46  ;;  %2517 = vmatprep.mubr.bf16.mxu1 %v8536_v46 }
 0x574   :  { %2447 = vmatpush1.bf16.msra.mxu0 %v7636_v53  ;;  %2488 = vmatpush1.bf16.msra.mxu1 %v7638_v49 }
 0x575   :  { %2448 = vmatprep.subr.bf16.mxu0 %v7644_v51  ;;  %2489 = vmatprep.subr.bf16.mxu1 %v7646_v54 }
 0x578   :  { %2449 = vmatpush1.bf16.msra.mxu0 %v7648_v52  ;;  %2490 = vmatpush1.bf16.msra.mxu1 %v7650_v43 }
 0x579   :  { %2450 = vmatprep.subr.bf16.mxu0 %v7656_v7  ;;  %2491 = vmatprep.subr.bf16.mxu1 %v7658_v9 }
 0x57c   :  { %2451 = vmatpush1.bf16.msra.mxu0 %v7660_v55  ;;  %2492 = vmatpush1.bf16.msra.mxu1 %v7662_v56 }
 0x57d   :  { %2452 = vmatprep.subr.bf16.mxu0 %v7668_v59  ;;  %2493 = vmatprep.subr.bf16.mxu1 %v7670_v61 }
 0x580   :  { %2453 = vmatpush1.bf16.msra.mxu0 %v7672_v63  ;;  %2494 = vmatpush1.bf16.msra.mxu1 %v7674_v44 }
 0x581   :  { %2454 = vmatprep.subr.bf16.mxu0 %v7678_v1  ;;  %2495 = vmatprep.subr.bf16.mxu1 %v7686_v42 }
 0x584   :  { %2455 = vmatpush1.bf16.msra.mxu0 %v7682_v62  ;;  %2496 = vmatpush1.bf16.msra.mxu1 %v7684_v3 }
 0x585   :  { %2456 = vmatprep.subr.bf16.mxu0 %v7689_v41  ;;  %2497 = vmatprep.subr.bf16.mxu1 %v7691_v47 }
 0x588   :  { %2457 = vmatpush1.bf16.msra.mxu0 %v7696_v60  ;;  %2498 = vmatpush1.bf16.msra.mxu1 %v7698_v45 }
 0x589   :  { %2458 = vmatprep.subr.bf16.mxu0 %v7702_v57  ;;  %2499 = vmatprep.subr.bf16.mxu1 %v7704_v6 }
 0x58c   :  { %2459 = vmatpush1.bf16.msra.mxu0 %v7708_v8  ;;  %2500 = vmatpush1.bf16.msra.mxu1 %v7710_v10 }
 0x58d   :  { %2760 = vmatprep.subr.bf16.mxu0 %v7620_v32  ;;  %2801 = vmatprep.subr.bf16.mxu1 %v7622_v5 }
 0x642   :  { %v2162_v15 = vpop.f32.mrb[36].mxu0  ;;  %v2203_v29 = vpop.f32.mrb[36].mxu1 }
 0x643   :  { %v2210_v31 = vadd.f32 %v2162_v15, %v8546_v30  ;;  %v2212_v34 = vadd.f32 %v2203_v29, %v8547_v33  ;;  %v2164_v35 = vpop.f32.mrb[37].mxu0  ;;  %v2205_v36 = vpop.f32.mrb[37].mxu1 }
 0x644   :  { %v2211_v39 = vadd.f32 %v2164_v35, %v8548_v37  ;;  %v2213_v14 = vadd.f32 %v2205_v36, %v8549_v40  ;;  %v2166_v11 = vpop.f32.mrb[38].mxu0  ;;  %v2207_v12 = vpop.f32.mrb[38].mxu1 }
 0x645   :  { %v6119_v13 = vmul.f32 -1.442695, %v2210_v31  ;;  %v2167_v16 = vpop.f32.mrb[39].mxu0  ;;  %v2208_v18 = vpop.f32.mrb[39].mxu1  ;;  %v6657_v12 = vld [vmem:[#allocation10] ss:$16 sps:$4 sm:$0xff]  }
 0x646   :  { %v6120_v32 = vmul.f32 -1.442695, %v2211_v39  ;;  %v6121_v5 = vmul.f32 -1.442695, %v2213_v14  ;;  %v6665_v18 = vld [vmem:[#allocation10 + $0x24] ss:$16 sps:$4 sm:$0xff]  }
 0x647   :  { %6889 = vpow2.f32 %v6119_v13  ;;  %v6660_v13 = vld [vmem:[#allocation10 + $0x8] ss:$16 sps:$4 sm:$0xff]  }
 0x648   :  { %6891 = vpow2.f32 %v6120_v32  ;;  %v6668_v32 = vld [vmem:[#allocation10 + $0x2c] ss:$16 sps:$4 sm:$0xff]  }
 0x649   :  { %6893 = vpow2.f32 %v6121_v5  ;;  %v6663_v5 = vld [vmem:[#allocation10 + $0x20] ss:$16 sps:$4 sm:$0xff]  }
 0x64a   :  { %6895 = vtanh.f32 %v2212_v34 }
 0x651   :  { %v6890_v17 = vpop.eup %6889 }
 0x652   :  { %v6892_v38 = vpop.eup %6891  ;;  %v2217_v20 = vadd.f32 1.0, %v6890_v17  ;;  %v6666_v17 = vld [vmem:[#allocation10 + $0x28] ss:$16 sps:$4 sm:$0xff]  }
 0x653   :  { %v2223_v21 = vadd.f32 1.0, %v6892_v38  ;;  %v6894_v22 = vpop.eup %6893  ;;  %v6671_v38 = vld [vmem:[#allocation10 + $0x44] ss:$16 sps:$4 sm:$0xff]  }
 0x654   :  { %6897 = vrcp.f32 %v2217_v20  ;;  %v6896_v26 = vpop.eup %6895  ;;  %v2230_v29 = vadd.f32 1.0, %v6894_v22  ;;  %v6674_v20 = vld [vmem:[#allocation10 + $0x4c] ss:$16 sps:$4 sm:$0xff]   ;;  %v6672_v22 = vld [vmem:[#allocation10 + $0x48] ss:$16 sps:$4 sm:$0xff]  }
 0x655   :  { %6899 = vrcp.f32 %v2223_v21  ;;  %v6669_v21 = vld [vmem:[#allocation10 + $0x40] ss:$16 sps:$4 sm:$0xff]  }
 0x656   :  { %6901 = vrcp.f32 %v2230_v29  ;;  %v6683_v29 = vld [vmem:[#allocation10 + $0x84] ss:$16 sps:$4 sm:$0xff]  }
 0x65e   :  { %v6898_v27 = vpop.eup %6897 }
 0x65f   :  { %v6900_v24 = vpop.eup %6899  ;;  %v2234_v15 = vmul.f32 %v6898_v27, %v6896_v26  ;;  %v6677_v26 = vld [vmem:[#allocation10 + $0x64] ss:$16 sps:$4 sm:$0xff]   ;;  %v6680_v27 = vld [vmem:[#allocation10 + $0x6c] ss:$16 sps:$4 sm:$0xff]  }
 0x660   :  { %v2233_v30 = vmul.f32 %v6900_v24, %v7769_v23  ;;  %v6902_v33 = vpop.eup %6901  ;;  %v6675_v24 = vld [vmem:[#allocation10 + $0x60] ss:$16 sps:$4 sm:$0xff]  }
 0x662   :  { %v7815_v31 = vadd.f32 %v2234_v15, %v2233_v30  ;;  %v6678_v15 = vld [vmem:[#allocation10 + $0x68] ss:$16 sps:$4 sm:$0xff]   ;;  %v6686_v30 = vld [vmem:[#allocation10 + $0x8c] ss:$16 sps:$4 sm:$0xff]  }
 0x664   :  { %6903 = vtanh.f32 %v7815_v31 }
 0x66e   :  { %v6904_v35 = vpop.eup %6903 }
 0x66f   :  { %v7818_v36 = vmul.f32 %v6904_v35, %v6902_v33  ;;  %v6684_v33 = vld [vmem:[#allocation10 + $0x88] ss:$16 sps:$4 sm:$0xff]   ;;  %v6689_v35 = vld [vmem:[#allocation10 + $0xa4] ss:$16 sps:$4 sm:$0xff]  }
 0x671   :  { %v2251_v34 = vpack.c.bf16 %v7818_v36, %v7818_v36 }
 0x673   :  { %2477 = vmatmul.mubr.bf16.vlgmr.msra.gmra.mrb[40].mxu0 %v2251_v34  ;;  %2518 = vmatmul.mubr.bf16.vlgmr.msra.gmra.mrb[40].mxu1 %v2251_v34  ;;  %v6692_v34 = vld [vmem:[#allocation10 + $0xac] ss:$16 sps:$4 sm:$0xff]  }
 0x674   :  { %2761 = vmatpush1.bf16.msra.mxu0 %v7624_v2  ;;  %2802 = vmatpush1.bf16.msra.mxu1 %v7626_v48  ;;  %v6659_v2 = vld [vmem:[#allocation10 + $0x4] ss:$16 sps:$4 sm:$0xff]   ;;  %v6662_v48 = vld [vmem:[#allocation10 + $0xc] ss:$16 sps:$4 sm:$0xff]  }
 0x675   :  { %2762 = vmatprep.subr.bf16.mxu0 %v7632_v25  ;;  %2803 = vmatprep.subr.bf16.mxu1 %v7634_v50 }
 0x676   :  { %2792 = vmatprep.mubr.bf16.mxu0 %v8536_v46  ;;  %2833 = vmatprep.mubr.bf16.mxu1 %v8536_v46 }
 0x678   :  { %2763 = vmatpush1.bf16.msra.mxu0 %v7636_v53  ;;  %2804 = vmatpush1.bf16.msra.mxu1 %v7638_v49  ;;  %v8550_v53 = vld [vmem:[#allocation29_spill] sm:$0xff] }
 0x679   :  { %2764 = vmatprep.subr.bf16.mxu0 %v7644_v51  ;;  %2805 = vmatprep.subr.bf16.mxu1 %v7646_v54  ;;  %v8551_v51 = vld [vmem:[#allocation30_spill] sm:$0xff] }
 0x67c   :  { %2765 = vmatpush1.bf16.msra.mxu0 %v7648_v52  ;;  %2806 = vmatpush1.bf16.msra.mxu1 %v7650_v43 }
 0x67d   :  { %2766 = vmatprep.subr.bf16.mxu0 %v7656_v7  ;;  %2807 = vmatprep.subr.bf16.mxu1 %v7658_v9  ;;  %v8552_v7 = vld [vmem:[#allocation31_spill] sm:$0xff] }
 0x680   :  { %2767 = vmatpush1.bf16.msra.mxu0 %v7660_v55  ;;  %2808 = vmatpush1.bf16.msra.mxu1 %v7662_v56  ;;  %v8553_v55 = vld [vmem:[#allocation32_spill] sm:$0xff] }
 0x681   :  { %2768 = vmatprep.subr.bf16.mxu0 %v7668_v59  ;;  %2809 = vmatprep.subr.bf16.mxu1 %v7670_v61 }
 0x684   :  { %2769 = vmatpush1.bf16.msra.mxu0 %v7672_v63  ;;  %2810 = vmatpush1.bf16.msra.mxu1 %v7674_v44 }
 0x685   :  { %2770 = vmatprep.subr.bf16.mxu0 %v7678_v1  ;;  %2811 = vmatprep.subr.bf16.mxu1 %v7686_v42 }
 0x688   :  { %2771 = vmatpush1.bf16.msra.mxu0 %v7682_v62  ;;  %2812 = vmatpush1.bf16.msra.mxu1 %v7684_v3 }
 0x689   :  { %2772 = vmatprep.subr.bf16.mxu0 %v7689_v41  ;;  %2813 = vmatprep.subr.bf16.mxu1 %v7691_v47 }
 0x68c   :  { %2773 = vmatpush1.bf16.msra.mxu0 %v7696_v60  ;;  %2814 = vmatpush1.bf16.msra.mxu1 %v7698_v45 }
 0x68d   :  { %2774 = vmatprep.subr.bf16.mxu0 %v7702_v57  ;;  %2815 = vmatprep.subr.bf16.mxu1 %v7704_v6 }
 0x690   :  { %2775 = vmatpush1.bf16.msra.mxu0 %v7708_v8  ;;  %2816 = vmatpush1.bf16.msra.mxu1 %v7710_v10 }
 0x691   :  { %3100 = vmatprep.subr.bf16.mxu0 %v6659_v2  ;;  %3173 = vmatprep.subr.bf16.mxu1 %v6662_v48  ;;  %v6687_v2 = vld [vmem:[#allocation10 + $0xa0] ss:$16 sps:$4 sm:$0xff]   ;;  %v6690_v48 = vld [vmem:[#allocation10 + $0xa8] ss:$16 sps:$4 sm:$0xff]  }
 0x746   :  { %v2478_v25 = vpop.f32.mrb[40].mxu0  ;;  %v2519_v50 = vpop.f32.mrb[40].mxu1 }
 0x747   :  { %v2526_v49 = vadd.f32 %v2478_v25, %v8550_v53  ;;  %v2528_v54 = vadd.f32 %v2519_v50, %v8551_v51  ;;  %v2480_v52 = vpop.f32.mrb[41].mxu0  ;;  %v2521_v43 = vpop.f32.mrb[41].mxu1  ;;  %v6695_v25 = vld [vmem:[#allocation10 + $0xc4] ss:$16 sps:$4 sm:$0xff]   ;;  %v6698_v50 = vld [vmem:[#allocation10 + $0xcc] ss:$16 sps:$4 sm:$0xff]  }
 0x748   :  { %v2527_v9 = vadd.f32 %v2480_v52, %v8552_v7  ;;  %v2529_v56 = vadd.f32 %v2521_v43, %v8553_v55  ;;  %v2482_v59 = vpop.f32.mrb[42].mxu0  ;;  %v2523_v61 = vpop.f32.mrb[42].mxu1  ;;  %v6693_v53 = vld [vmem:[#allocation10 + $0xc0] ss:$16 sps:$4 sm:$0xff]   ;;  %v6701_v51 = vld [vmem:[#allocation10 + $0xe4] ss:$16 sps:$4 sm:$0xff]   ;;  %v2882_v7 = vpack.c.bf16 %v7570_v0, %v7524_v58  ;;  %v2884_v55 = vpack.c.bf16 %v7818_v36, %v7772_v28 }
 0x749   :  { %v6154_v63 = vmul.f32 -1.442695, %v2526_v49  ;;  %v2483_v44 = vpop.f32.mrb[43].mxu0  ;;  %v2524_v1 = vpop.f32.mrb[43].mxu1  ;;  %v6696_v49 = vld [vmem:[#allocation10 + $0xc8] ss:$16 sps:$4 sm:$0xff]  }
 0x74a   :  { %v6155_v62 = vmul.f32 -1.442695, %v2527_v9  ;;  %v6156_v3 = vmul.f32 -1.442695, %v2529_v56  ;;  %v6699_v52 = vld [vmem:[#allocation10 + $0xe0] ss:$16 sps:$4 sm:$0xff]   ;;  %v2883_v9 = vpack.c.bf16 %v7726_v19, %v7614_v4 }
 0x74b   :  { %6905 = vpow2.f32 %v6154_v63  ;;  %v6702_v43 = vld [vmem:[#allocation10 + $0xe8] ss:$16 sps:$4 sm:$0xff]   ;;  %v7880_v58 = vld [vmem:[#allocation12 + $0x4] ss:$16 sps:$4 sm:$0xff]   ;;  %v7882_v0 = vld [vmem:[#allocation12 + $0xc] ss:$16 sps:$4 sm:$0xff]  }
 0x74c   :  { %6907 = vpow2.f32 %v6155_v62  ;;  %v7884_v4 = vld [vmem:[#allocation12] ss:$16 sps:$4 sm:$0xff]   ;;  %v7886_v19 = vld [vmem:[#allocation12 + $0x8] ss:$16 sps:$4 sm:$0xff]   ;;  %v7892_v28 = vld [vmem:[#allocation12 + $0x24] ss:$16 sps:$4 sm:$0xff]  }
 0x74d   :  { %6909 = vpow2.f32 %v6156_v3  ;;  %v7894_v36 = vld [vmem:[#allocation12 + $0x2c] ss:$16 sps:$4 sm:$0xff]   ;;  %v7896_v56 = vld [vmem:[#allocation12 + $0x20] ss:$16 sps:$4 sm:$0xff]   ;;  %v7898_v59 = vld [vmem:[#allocation12 + $0x28] ss:$16 sps:$4 sm:$0xff]  }
 0x74e   :  { %6911 = vtanh.f32 %v2528_v54  ;;  %v6704_v54 = vld [vmem:[#allocation10 + $0xec] ss:$16 sps:$4 sm:$0xff]   ;;  %v7904_v61 = vld [vmem:[#allocation12 + $0x44] ss:$16 sps:$4 sm:$0xff]   ;;  %v7908_v44 = vld [vmem:[#allocation12 + $0x40] ss:$16 sps:$4 sm:$0xff]  }
 0x74f   :  { %v7906_v63 = vld [vmem:[#allocation12 + $0x4c] ss:$16 sps:$4 sm:$0xff]   ;;  %v7910_v1 = vld [vmem:[#allocation12 + $0x48] ss:$16 sps:$4 sm:$0xff]   ;;  %v7916_v62 = vld [vmem:[#allocation12 + $0x60] ss:$16 sps:$4 sm:$0xff]  }
 0x750   :  { %v7918_v3 = vld [vmem:[#allocation12 + $0x64] ss:$16 sps:$4 sm:$0xff]  }
 0x755   :  { %v6906_v42 = vpop.eup %6905 }
 0x756   :  { %v6908_v41 = vpop.eup %6907  ;;  %v2533_v47 = vadd.f32 1.0, %v6906_v42  ;;  %v7920_v42 = vld [vmem:[#allocation12 + $0x68] ss:$16 sps:$4 sm:$0xff]  }
 0x757   :  { %v2539_v60 = vadd.f32 1.0, %v6908_v41  ;;  %v6910_v45 = vpop.eup %6909  ;;  %v7922_v41 = vld [vmem:[#allocation12 + $0x6c] ss:$16 sps:$4 sm:$0xff]  }
 0x758   :  { %6913 = vrcp.f32 %v2533_v47  ;;  %v6912_v57 = vpop.eup %6911  ;;  %v2546_v23 = vadd.f32 1.0, %v6910_v45  ;;  %v7928_v47 = vld [vmem:[#allocation12 + $0x84] ss:$16 sps:$4 sm:$0xff]   ;;  %v7932_v45 = vld [vmem:[#allocation12 + $0x80] ss:$16 sps:$4 sm:$0xff]  }
 0x759   :  { %6915 = vrcp.f32 %v2539_v60  ;;  %v7930_v60 = vld [vmem:[#allocation12 + $0x8c] ss:$16 sps:$4 sm:$0xff]  }
 0x75a   :  { %6917 = vrcp.f32 %v2546_v23  ;;  %v7946_v23 = vld [vmem:[#allocation12 + $0xac] ss:$16 sps:$4 sm:$0xff]  }
 0x762   :  { %v6914_v6 = vpop.eup %6913 }
 0x763   :  { %v6916_v8 = vpop.eup %6915  ;;  %v2550_v10 = vmul.f32 %v6914_v6, %v6912_v57  ;;  %v7934_v57 = vld [vmem:[#allocation12 + $0x88] ss:$16 sps:$4 sm:$0xff]   ;;  %v7940_v6 = vld [vmem:[#allocation12 + $0xa0] ss:$16 sps:$4 sm:$0xff]  }
 0x764   :  { %v2549_v37 = vmul.f32 %v6916_v8, %v7815_v31  ;;  %v6918_v40 = vpop.eup %6917  ;;  %v6681_v31 = vld [vmem:[#allocation10 + $0x80] ss:$16 sps:$4 sm:$0xff]   ;;  %v7942_v8 = vld [vmem:[#allocation12 + $0xa4] ss:$16 sps:$4 sm:$0xff]  }
 0x766   :  { %v7859_v39 = vadd.f32 %v2550_v10, %v2549_v37  ;;  %v7944_v10 = vld [vmem:[#allocation12 + $0xa8] ss:$16 sps:$4 sm:$0xff]   ;;  %v7952_v37 = vld [vmem:[#allocation12 + $0xc4] ss:$16 sps:$4 sm:$0xff]  }
 0x768   :  { %6919 = vtanh.f32 %v7859_v39 }
 0x772   :  { %v6920_v14 = vpop.eup %6919 }
 0x773   :  { %v7862_v11 = vmul.f32 %v6920_v14, %v6918_v40  ;;  %v7954_v40 = vld [vmem:[#allocation12 + $0xcc] ss:$16 sps:$4 sm:$0xff]   ;;  %v7956_v14 = vld [vmem:[#allocation12 + $0xc0] ss:$16 sps:$4 sm:$0xff]  }
 0x775   :  { %v2567_v16 = vpack.c.bf16 %v7862_v11, %v7862_v11 }
 0x777   :  { %2793 = vmatmul.mubr.bf16.vlgmr.msra.gmra.mrb[44].mxu0 %v2567_v16  ;;  %2834 = vmatmul.mubr.bf16.vlgmr.msra.gmra.mrb[44].mxu1 %v2567_v16  ;;  %v7966_v16 = vld [vmem:[#allocation12 + $0xe4] ss:$16 sps:$4 sm:$0xff]  }
 0x778   :  { %3101 = vmatpush1.bf16.msra.mxu0 %v6657_v12  ;;  %3174 = vmatpush1.bf16.msra.mxu1 %v6660_v13  ;;  %v7958_v12 = vld [vmem:[#allocation12 + $0xc8] ss:$16 sps:$4 sm:$0xff]   ;;  %v7964_v13 = vld [vmem:[#allocation12 + $0xe0] ss:$16 sps:$4 sm:$0xff]  }
 0x779   :  { %3102 = vmatprep.subr.bf16.mxu0 %v6665_v18  ;;  %3175 = vmatprep.subr.bf16.mxu1 %v6668_v32  ;;  %v7968_v18 = vld [vmem:[#allocation12 + $0xe8] ss:$16 sps:$4 sm:$0xff]   ;;  %v7970_v32 = vld [vmem:[#allocation12 + $0xec] ss:$16 sps:$4 sm:$0xff]  }
 0x77a   :  { %3132 = vmatprep.mubr.bf16.mxu0 %v8536_v46  ;;  %3205 = vmatprep.mubr.bf16.mxu1 %v8536_v46 }
 0x77c   :  { %3103 = vmatpush1.bf16.msra.mxu0 %v6663_v5  ;;  %3176 = vmatpush1.bf16.msra.mxu1 %v6666_v17 }
 0x77d   :  { %3104 = vmatprep.subr.bf16.mxu0 %v6671_v38  ;;  %3177 = vmatprep.subr.bf16.mxu1 %v6674_v20  ;;  %v8554_v38 = vld [vmem:[#allocation33_spill] sm:$0xff] }
 0x780   :  { %3105 = vmatpush1.bf16.msra.mxu0 %v6669_v21  ;;  %3178 = vmatpush1.bf16.msra.mxu1 %v6672_v22  ;;  %v8555_v21 = vld [vmem:[#allocation34_spill] sm:$0xff] }
 0x781   :  { %3106 = vmatprep.subr.bf16.mxu0 %v6677_v26  ;;  %3179 = vmatprep.subr.bf16.mxu1 %v6680_v27 }
 0x784   :  { %3107 = vmatpush1.bf16.msra.mxu0 %v6675_v24  ;;  %3180 = vmatpush1.bf16.msra.mxu1 %v6678_v15  ;;  %v8556_v24 = vld [vmem:[#allocation35_spill] sm:$0xff] }
 0x785   :  { %3108 = vmatprep.subr.bf16.mxu0 %v6683_v29  ;;  %3181 = vmatprep.subr.bf16.mxu1 %v6686_v30  ;;  %v8557_v29 = vld [vmem:[#allocation36_spill] sm:$0xff] }
 0x788   :  { %3109 = vmatpush1.bf16.msra.mxu0 %v6681_v31  ;;  %3182 = vmatpush1.bf16.msra.mxu1 %v6684_v33 }
 0x789   :  { %3110 = vmatprep.subr.bf16.mxu0 %v6689_v35  ;;  %3183 = vmatprep.subr.bf16.mxu1 %v6692_v34 }
 0x78c   :  { %3111 = vmatpush1.bf16.msra.mxu0 %v6687_v2  ;;  %3184 = vmatpush1.bf16.msra.mxu1 %v6690_v48 }
 0x78d   :  { %3112 = vmatprep.subr.bf16.mxu0 %v6695_v25  ;;  %3185 = vmatprep.subr.bf16.mxu1 %v6698_v50 }
 0x790   :  { %3113 = vmatpush1.bf16.msra.mxu0 %v6693_v53  ;;  %3186 = vmatpush1.bf16.msra.mxu1 %v6696_v49 }
 0x791   :  { %3114 = vmatprep.subr.bf16.mxu0 %v6701_v51  ;;  %3187 = vmatprep.subr.bf16.mxu1 %v6704_v54 }
 0x794   :  { %3115 = vmatpush1.bf16.msra.mxu0 %v6699_v52  ;;  %3188 = vmatpush1.bf16.msra.mxu1 %v6702_v43 }
 0x795   :  { %3477 = vmatprep.subr.bf16.mxu0 %v7880_v58  ;;  %3518 = vmatprep.subr.bf16.mxu1 %v7882_v0 }
 0x797   :  { %3133 = vmatmul.mubr.bf16.vlgmr.msra.gmra.mrb[48].mxu0 %v2882_v7  ;;  %3206 = vmatmul.mubr.bf16.vlgmr.msra.gmra.mrb[48].mxu1 %v2882_v7 }
 0x798   :  { %3142 = vmatprep.mubr.bf16.mxu0 %v8536_v46  ;;  %3215 = vmatprep.mubr.bf16.mxu1 %v8536_v46 }
 0x799   :  { %3478 = vmatpush1.bf16.msra.mxu0 %v7884_v4  ;;  %3519 = vmatpush1.bf16.msra.mxu1 %v7886_v19 }
 0x79a   :  { %3479 = vmatprep.subr.bf16.mxu0 %v7892_v28  ;;  %3520 = vmatprep.subr.bf16.mxu1 %v7894_v36 }
 0x79d   :  { %3480 = vmatpush1.bf16.msra.mxu0 %v7896_v56  ;;  %3521 = vmatpush1.bf16.msra.mxu1 %v7898_v59 }
 0x79e   :  { %3481 = vmatprep.subr.bf16.mxu0 %v7904_v61  ;;  %3522 = vmatprep.subr.bf16.mxu1 %v7906_v63 }
 0x79f   :  { %3143 = vmatmul.mubr.bf16.gmra.mrb[52].mxu0 %v2883_v9  ;;  %3216 = vmatmul.mubr.bf16.gmra.mrb[52].mxu1 %v2883_v9 }
 0x7a0   :  { %3152 = vmatprep.mubr.bf16.mxu0 %v8536_v46  ;;  %3225 = vmatprep.mubr.bf16.mxu1 %v8536_v46 }
 0x7a1   :  { %3482 = vmatpush1.bf16.msra.mxu0 %v7908_v44  ;;  %3523 = vmatpush1.bf16.msra.mxu1 %v7910_v1 }
 0x7a2   :  { %3483 = vmatprep.subr.bf16.mxu0 %v7918_v3  ;;  %3524 = vmatprep.subr.bf16.mxu1 %v7922_v41 }
 0x7a5   :  { %3484 = vmatpush1.bf16.msra.mxu0 %v7916_v62  ;;  %3525 = vmatpush1.bf16.msra.mxu1 %v7920_v42 }
 0x7a6   :  { %3485 = vmatprep.subr.bf16.mxu0 %v7928_v47  ;;  %3526 = vmatprep.subr.bf16.mxu1 %v7930_v60 }
 0x7a7   :  { %3153 = vmatmul.mubr.bf16.gmra.mrb[56].mxu0 %v2884_v55  ;;  %3226 = vmatmul.mubr.bf16.gmra.mrb[56].mxu1 %v2884_v55 }
 0x7a8   :  { %3162 = vmatprep.mubr.bf16.mxu0 %v8536_v46  ;;  %3235 = vmatprep.mubr.bf16.mxu1 %v8536_v46 }
 0x7a9   :  { %3486 = vmatpush1.bf16.msra.mxu0 %v7932_v45  ;;  %3527 = vmatpush1.bf16.msra.mxu1 %v7934_v57 }
 0x7aa   :  { %3487 = vmatprep.subr.bf16.mxu0 %v7942_v8  ;;  %3528 = vmatprep.subr.bf16.mxu1 %v7946_v23 }
 0x7ad   :  { %3488 = vmatpush1.bf16.msra.mxu0 %v7940_v6  ;;  %3529 = vmatpush1.bf16.msra.mxu1 %v7944_v10 }
 0x7ae   :  { %3489 = vmatprep.subr.bf16.mxu0 %v7952_v37  ;;  %3530 = vmatprep.subr.bf16.mxu1 %v7954_v40 }
 0x7b1   :  { %3490 = vmatpush1.bf16.msra.mxu0 %v7956_v14  ;;  %3531 = vmatpush1.bf16.msra.mxu1 %v7958_v12 }
 0x7b2   :  { %3491 = vmatprep.subr.bf16.mxu0 %v7966_v16  ;;  %3532 = vmatprep.subr.bf16.mxu1 %v7970_v32 }
 0x7b5   :  { %3492 = vmatpush1.bf16.msra.mxu0 %v7964_v13  ;;  %3533 = vmatpush1.bf16.msra.mxu1 %v7968_v18 }
 0x7b6   :  { %3788 = vmatprep.subr.bf16.mxu0 %v7880_v58  ;;  %3829 = vmatprep.subr.bf16.mxu1 %v7882_v0 }
 0x84a   :  { %v2794_v5 = vpop.f32.mrb[44].mxu0  ;;  %v2835_v17 = vpop.f32.mrb[44].mxu1 }
 0x84b   :  { %v2842_v20 = vadd.f32 %v2794_v5, %v8554_v38  ;;  %v2844_v22 = vadd.f32 %v2835_v17, %v8555_v21  ;;  %v2796_v26 = vpop.f32.mrb[45].mxu0  ;;  %v2837_v27 = vpop.f32.mrb[45].mxu1 }
 0x84c   :  { %v2843_v15 = vadd.f32 %v2796_v26, %v8556_v24  ;;  %v2845_v30 = vadd.f32 %v2837_v27, %v8557_v29  ;;  %v2798_v31 = vpop.f32.mrb[46].mxu0  ;;  %v2839_v33 = vpop.f32.mrb[46].mxu1 }
 0x84d   :  { %v6189_v35 = vmul.f32 -1.442695, %v2842_v20  ;;  %v2799_v34 = vpop.f32.mrb[47].mxu0  ;;  %v2840_v2 = vpop.f32.mrb[47].mxu1 }
 0x84e   :  { %v6190_v48 = vmul.f32 -1.442695, %v2843_v15  ;;  %v6191_v25 = vmul.f32 -1.442695, %v2845_v30 }
 0x84f   :  { %6921 = vpow2.f32 %v6189_v35 }
 0x850   :  { %6923 = vpow2.f32 %v6190_v48 }
 0x851   :  { %6925 = vpow2.f32 %v6191_v25 }
 0x852   :  { %6927 = vtanh.f32 %v2844_v22 }
 0x859   :  { %v6922_v50 = vpop.eup %6921 }
 0x85a   :  { %v6924_v53 = vpop.eup %6923  ;;  %v2849_v49 = vadd.f32 1.0, %v6922_v50 }
 0x85b   :  { %v2855_v51 = vadd.f32 1.0, %v6924_v53  ;;  %v6926_v54 = vpop.eup %6925 }
 0x85c   :  { %6929 = vrcp.f32 %v2849_v49  ;;  %v6928_v52 = vpop.eup %6927  ;;  %v2862_v55 = vadd.f32 1.0, %v6926_v54 }
 0x85d   :  { %6931 = vrcp.f32 %v2855_v51 }
 0x85e   :  { %6933 = vrcp.f32 %v2862_v55  ;;  %v8573_v55 = vmov 0.0|0.0  }
 0x866   :  { %v6930_v43 = vpop.eup %6929 }
 0x867   :  { %v6932_v7 = vpop.eup %6931  ;;  %v2866_v9 = vmul.f32 %v6930_v43, %v6928_v52 }
 0x868   :  { %v2865_v5 = vmul.f32 %v6932_v7, %v7859_v39  ;;  %v6934_v34 = vpop.eup %6933 }
 0x86a   :  { %v7983_v17 = vpop.f32.mrb[48].mxu0  ;;  %v7985_v38 = vpop.f32.mrb[48].mxu1  ;;  %v2867_v20 = vadd.f32 %v2866_v9, %v2865_v5  ;;  %v2918_v5 = vld [vmem:[%s8500_s6] sm:$0xf] }
 0x86b   :  { %v7987_v21 = vpop.f32.mrb[49].mxu0  ;;  %v7989_v22 = vpop.f32.mrb[49].mxu1 }
 0x86c   :  { %v7991_v26 = vpop.f32.mrb[50].mxu0  ;;  %v7993_v27 = vpop.f32.mrb[50].mxu1  ;;  %6935 = vtanh.f32 %v2867_v20 }
 0x86d   :  { %v7995_v24 = vpop.f32.mrb[51].mxu0  ;;  %v7997_v15 = vpop.f32.mrb[51].mxu1 }
 0x872   :  { %v7999_v39 = vpop.f32.mrb[52].mxu0  ;;  %v8001_v29 = vpop.f32.mrb[52].mxu1 }
 0x873   :  { %8558 = vst [vmem:[#allocation16_spill] sm:$0xff] %v8001_v29  ;;  %v8003_v30 = vpop.f32.mrb[53].mxu0  ;;  %v8005_v31 = vpop.f32.mrb[53].mxu1 }
 0x874   :  { %8559 = vst [vmem:[#allocation17_spill] sm:$0xff] %v8003_v30  ;;  %8560 = vst [vmem:[#allocation18_spill] sm:$0xff] %v8005_v31  ;;  %v8007_v33 = vpop.f32.mrb[54].mxu0  ;;  %v8009_v35 = vpop.f32.mrb[54].mxu1 }
 0x875   :  { %8561 = vst [vmem:[#allocation19_spill] sm:$0xff] %v8007_v33  ;;  %8562 = vst [vmem:[#allocation20_spill] sm:$0xff] %v8009_v35  ;;  %v8011_v2 = vpop.f32.mrb[55].mxu0  ;;  %v8013_v48 = vpop.f32.mrb[55].mxu1 }
 0x876   :  { %8563 = vst [vmem:[#allocation21_spill] sm:$0xff] %v8011_v2  ;;  %8564 = vst [vmem:[#allocation22_spill] sm:$0xff] %v8013_v48  ;;  %v6936_v25 = vpop.eup %6935 }
 0x877   :  { %v2869_v50 = vmul.f32 %v6936_v25, %v6934_v34 }
 0x879   :  { %v2885_v53 = vpack.c.bf16 %v2869_v50, %v7862_v11 }
 0x87a   :  { %v8016_v49 = vpop.f32.mrb[56].mxu0  ;;  %v8018_v51 = vpop.f32.mrb[56].mxu1 }
 0x87b   :  { %8565 = vst [vmem:[#allocation23_spill] sm:$0xff] %v8016_v49  ;;  %8566 = vst [vmem:[#allocation24_spill] sm:$0xff] %v8018_v51  ;;  %v8020_v54 = vpop.f32.mrb[57].mxu0  ;;  %v8022_v52 = vpop.f32.mrb[57].mxu1  ;;  %3163 = vmatmul.mubr.bf16.gmra.mrb[60].mxu0 %v2885_v53  ;;  %3236 = vmatmul.mubr.bf16.gmra.mrb[60].mxu1 %v2885_v53 }
 0x87c   :  { %8567 = vst [vmem:[#allocation25_spill] sm:$0xff] %v8020_v54  ;;  %8568 = vst [vmem:[#allocation26_spill] sm:$0xff] %v8022_v52  ;;  %v8024_v43 = vpop.f32.mrb[58].mxu0  ;;  %v8026_v7 = vpop.f32.mrb[58].mxu1  ;;  %3509 = vmatprep.mubr.bf16.mxu0 %v8536_v46  ;;  %3550 = vmatprep.mubr.bf16.mxu1 %v8536_v46 }
 0x87d   :  { %8569 = vst [vmem:[#allocation27_spill] sm:$0xff] %v8024_v43  ;;  %8570 = vst [vmem:[#allocation28_spill] sm:$0xff] %v8026_v7  ;;  %v8030_v9 = vpop.f32.mrb[59].mxu0  ;;  %v8032_v11 = vpop.f32.mrb[59].mxu1 }
 0x87e   :  { %8571 = vst [vmem:[#allocation29_spill] sm:$0xff] %v8030_v9  ;;  %8572 = vst [vmem:[#allocation30_spill] sm:$0xff] %v8032_v11  ;;  %v8580_v11 = vld [vmem:[#allocation15_spill] sm:$0xff] }
 0x87f   :  { %v8581_v9 = vsub.s32 0, %v8580_v11  ;;  %v8582_v43 = vsub.s32 2, %v8580_v11 }
 0x881   :  { %v8087_v7 = vrot.slane %v2918_v5, %v8581_v9  ;;  %v8091_v52 = vrot.slane %v2918_v5, %v8582_v43 }
 0x883   :  { %3510 = vmatmul.mubr.bf16.vlgmr.msra.gmra.mrb[64].mxu0 %v8573_v55  ;;  %3551 = vmatmul.mubr.bf16.vlgmr.msra.gmra.mrb[64].mxu1 %v8573_v55  ;;  %v3135_v9 = vadd.f32 %v7983_v17, %v8087_v7 }
 0x884   :  { %3789 = vmatpush1.bf16.msra.mxu0 %v7884_v4  ;;  %3830 = vmatpush1.bf16.msra.mxu1 %v7886_v19 }
 0x885   :  { %3790 = vmatprep.subr.bf16.mxu0 %v7892_v28  ;;  %3831 = vmatprep.subr.bf16.mxu1 %v7894_v36 }
 0x886   :  { %3820 = vmatprep.mubr.bf16.mxu0 %v8536_v46  ;;  %3861 = vmatprep.mubr.bf16.mxu1 %v8536_v46 }
 0x888   :  { %3791 = vmatpush1.bf16.msra.mxu0 %v7896_v56  ;;  %3832 = vmatpush1.bf16.msra.mxu1 %v7898_v59 }
 0x889   :  { %3792 = vmatprep.subr.bf16.mxu0 %v7904_v61  ;;  %3833 = vmatprep.subr.bf16.mxu1 %v7906_v63 }
 0x88c   :  { %3793 = vmatpush1.bf16.msra.mxu0 %v7908_v44  ;;  %3834 = vmatpush1.bf16.msra.mxu1 %v7910_v1 }
 0x88d   :  { %3794 = vmatprep.subr.bf16.mxu0 %v7918_v3  ;;  %3835 = vmatprep.subr.bf16.mxu1 %v7922_v41 }
 0x890   :  { %3795 = vmatpush1.bf16.msra.mxu0 %v7916_v62  ;;  %3836 = vmatpush1.bf16.msra.mxu1 %v7920_v42 }
 0x891   :  { %3796 = vmatprep.subr.bf16.mxu0 %v7928_v47  ;;  %3837 = vmatprep.subr.bf16.mxu1 %v7930_v60 }
 0x894   :  { %3797 = vmatpush1.bf16.msra.mxu0 %v7932_v45  ;;  %3838 = vmatpush1.bf16.msra.mxu1 %v7934_v57 }
 0x895   :  { %3798 = vmatprep.subr.bf16.mxu0 %v7942_v8  ;;  %3839 = vmatprep.subr.bf16.mxu1 %v7946_v23 }
 0x898   :  { %3799 = vmatpush1.bf16.msra.mxu0 %v7940_v6  ;;  %3840 = vmatpush1.bf16.msra.mxu1 %v7944_v10 }
 0x899   :  { %3800 = vmatprep.subr.bf16.mxu0 %v7952_v37  ;;  %3841 = vmatprep.subr.bf16.mxu1 %v7954_v40 }
 0x89c   :  { %3801 = vmatpush1.bf16.msra.mxu0 %v7956_v14  ;;  %3842 = vmatpush1.bf16.msra.mxu1 %v7958_v12 }
 0x89d   :  { %3802 = vmatprep.subr.bf16.mxu0 %v7966_v16  ;;  %3843 = vmatprep.subr.bf16.mxu1 %v7970_v32 }
 0x8a0   :  { %3803 = vmatpush1.bf16.msra.mxu0 %v7964_v13  ;;  %3844 = vmatpush1.bf16.msra.mxu1 %v7968_v18 }
 0x8a1   :  { %4099 = vmatprep.subr.bf16.mxu0 %v7880_v58  ;;  %4140 = vmatprep.subr.bf16.mxu1 %v7882_v0 }
 0x94e   :  { %v8073_v20 = vpop.f32.mrb[60].mxu0  ;;  %v8075_v34 = vpop.f32.mrb[60].mxu1 }
 0x94f   :  { %8574 = vst [vmem:[#allocation31_spill] sm:$0xff] %v8073_v20  ;;  %8575 = vst [vmem:[#allocation32_spill] sm:$0xff] %v8075_v34  ;;  %v8077_v25 = vpop.f32.mrb[61].mxu0  ;;  %v8079_v50 = vpop.f32.mrb[61].mxu1 }
 0x950   :  { %8576 = vst [vmem:[#allocation33_spill] sm:$0xff] %v8077_v25  ;;  %8577 = vst [vmem:[#allocation34_spill] sm:$0xff] %v8079_v50  ;;  %v8081_v53 = vpop.f32.mrb[62].mxu0  ;;  %v8083_v55 = vpop.f32.mrb[62].mxu1  ;;  %v8585_v25 = vsub.s32 1, %v8580_v11 }
 0x951   :  { %8578 = vst [vmem:[#allocation35_spill] sm:$0xff] %v8081_v53  ;;  %8579 = vst [vmem:[#allocation36_spill] sm:$0xff] %v8083_v55  ;;  %v8093_v54 = vpop.f32.mrb[63].mxu0  ;;  %v8095_v20 = vpop.f32.mrb[63].mxu1  ;;  %v8586_v53 = vsub.s32 3, %v8580_v11  ;;  %v3208_v55 = vadd.f32 %v7985_v38, %v8091_v52 }
 0x952   :  { %8583 = vst [vmem:[#allocation15_spill] sm:$0xff] %v8093_v54  ;;  %8584 = vst [vmem:[#allocation37_spill] sm:$0xff] %v8095_v20  ;;  %v8099_v34 = vrot.slane %v2918_v5, %v8585_v25 }
 0x953   :  { %v8103_v50 = vrot.slane %v2918_v5, %v8586_v53 }
 0x954   :  { %v3137_v43 = vadd.f32 %v7987_v21, %v8099_v34 }
 0x955   :  { %v3210_v20 = vadd.f32 %v7989_v22, %v8103_v50 }
 0x956   :  { %v3511_v54 = vpop.f32.mrb[64].mxu0  ;;  %v3552_v51 = vpop.f32.mrb[64].mxu1 }
 0x957   :  { %v3559_v25 = vadd.f32 %v3511_v54, %v3135_v9  ;;  %v3561_v49 = vadd.f32 %v3552_v51, %v3208_v55  ;;  %v3513_v48 = vpop.f32.mrb[65].mxu0  ;;  %v3554_v11 = vpop.f32.mrb[65].mxu1 }
 0x958   :  { %v3560_v5 = vadd.f32 %v3513_v48, %v3137_v43  ;;  %v3562_v53 = vadd.f32 %v3554_v11, %v3210_v20  ;;  %v3515_v2 = vpop.f32.mrb[66].mxu0  ;;  %v3556_v35 = vpop.f32.mrb[66].mxu1  ;;  %v3141_v11 = vadd.f32 %v7995_v24, %v8099_v34 }
 0x959   :  { %v6256_v17 = vmul.f32 -1.442695, %v3559_v25  ;;  %v3516_v33 = vpop.f32.mrb[67].mxu0  ;;  %v3557_v31 = vpop.f32.mrb[67].mxu1 }
 0x95a   :  { %v6257_v38 = vmul.f32 -1.442695, %v3560_v5  ;;  %v6258_v21 = vmul.f32 -1.442695, %v3562_v53  ;;  %v3214_v5 = vadd.f32 %v7997_v15, %v8103_v50 }
 0x95b   :  { %6937 = vpow2.f32 %v6256_v17 }
 0x95c   :  { %6939 = vpow2.f32 %v6257_v38 }
 0x95d   :  { %6941 = vpow2.f32 %v6258_v21 }
 0x95e   :  { %6943 = vtanh.f32 %v3561_v49  ;;  %v3212_v49 = vadd.f32 %v7993_v27, %v8091_v52 }
 0x965   :  { %v6938_v30 = vpop.eup %6937 }
 0x966   :  { %v6940_v29 = vpop.eup %6939  ;;  %v3566_v22 = vadd.f32 1.0, %v6938_v30 }
 0x967   :  { %v3572_v54 = vadd.f32 1.0, %v6940_v29  ;;  %v6942_v51 = vpop.eup %6941  ;;  %v3139_v29 = vadd.f32 %v7991_v26, %v8087_v7 }
 0x968   :  { %6945 = vrcp.f32 %v3566_v22  ;;  %v6944_v48 = vpop.eup %6943  ;;  %v3579_v55 = vadd.f32 1.0, %v6942_v51 }
 0x969   :  { %6947 = vrcp.f32 %v3572_v54 }
 0x96a   :  { %6949 = vrcp.f32 %v3579_v55 }
 0x972   :  { %v6946_v20 = vpop.eup %6945 }
 0x973   :  { %v6948_v2 = vpop.eup %6947  ;;  %v3583_v35 = vmul.f32 %v6946_v20, %v6944_v48 }
 0x974   :  { %v3582_v33 = vmul.f32 0.0, %v6948_v2  ;;  %v6950_v9 = vpop.eup %6949 }
 0x976   :  { %v8113_v31 = vadd.f32 %v3583_v35, %v3582_v33 }
 0x978   :  { %6951 = vtanh.f32 %v8113_v31 }
 0x982   :  { %v6952_v43 = vpop.eup %6951 }
 0x983   :  { %v3586_v30 = vmul.f32 %v6952_v43, %v6950_v9 }
 0x985   :  { %v3595_v25 = vpack.c.bf16 %v3586_v30, %v3586_v30 }
 0x987   :  { %3821 = vmatmul.mubr.bf16.vlgmr.msra.gmra.mrb[68].mxu0 %v3595_v25  ;;  %3862 = vmatmul.mubr.bf16.vlgmr.msra.gmra.mrb[68].mxu1 %v3595_v25 }
 0x988   :  { %4100 = vmatpush1.bf16.msra.mxu0 %v7884_v4  ;;  %4141 = vmatpush1.bf16.msra.mxu1 %v7886_v19 }
 0x989   :  { %4101 = vmatprep.subr.bf16.mxu0 %v7892_v28  ;;  %4142 = vmatprep.subr.bf16.mxu1 %v7894_v36 }
 0x98a   :  { %4131 = vmatprep.mubr.bf16.mxu0 %v8536_v46  ;;  %4172 = vmatprep.mubr.bf16.mxu1 %v8536_v46 }
 0x98c   :  { %4102 = vmatpush1.bf16.msra.mxu0 %v7896_v56  ;;  %4143 = vmatpush1.bf16.msra.mxu1 %v7898_v59 }
 0x98d   :  { %4103 = vmatprep.subr.bf16.mxu0 %v7904_v61  ;;  %4144 = vmatprep.subr.bf16.mxu1 %v7906_v63 }
 0x990   :  { %4104 = vmatpush1.bf16.msra.mxu0 %v7908_v44  ;;  %4145 = vmatpush1.bf16.msra.mxu1 %v7910_v1 }
 0x991   :  { %4105 = vmatprep.subr.bf16.mxu0 %v7918_v3  ;;  %4146 = vmatprep.subr.bf16.mxu1 %v7922_v41 }
 0x994   :  { %4106 = vmatpush1.bf16.msra.mxu0 %v7916_v62  ;;  %4147 = vmatpush1.bf16.msra.mxu1 %v7920_v42 }
 0x995   :  { %4107 = vmatprep.subr.bf16.mxu0 %v7928_v47  ;;  %4148 = vmatprep.subr.bf16.mxu1 %v7930_v60 }
 0x998   :  { %4108 = vmatpush1.bf16.msra.mxu0 %v7932_v45  ;;  %4149 = vmatpush1.bf16.msra.mxu1 %v7934_v57 }
 0x999   :  { %4109 = vmatprep.subr.bf16.mxu0 %v7942_v8  ;;  %4150 = vmatprep.subr.bf16.mxu1 %v7946_v23 }
 0x99c   :  { %4110 = vmatpush1.bf16.msra.mxu0 %v7940_v6  ;;  %4151 = vmatpush1.bf16.msra.mxu1 %v7944_v10 }
 0x99d   :  { %4111 = vmatprep.subr.bf16.mxu0 %v7952_v37  ;;  %4152 = vmatprep.subr.bf16.mxu1 %v7954_v40 }
 0x9a0   :  { %4112 = vmatpush1.bf16.msra.mxu0 %v7956_v14  ;;  %4153 = vmatpush1.bf16.msra.mxu1 %v7958_v12 }
 0x9a1   :  { %4113 = vmatprep.subr.bf16.mxu0 %v7966_v16  ;;  %4154 = vmatprep.subr.bf16.mxu1 %v7970_v32 }
 0x9a4   :  { %4114 = vmatpush1.bf16.msra.mxu0 %v7964_v13  ;;  %4155 = vmatpush1.bf16.msra.mxu1 %v7968_v18 }
 0x9a5   :  { %4410 = vmatprep.subr.bf16.mxu0 %v7880_v58  ;;  %4451 = vmatprep.subr.bf16.mxu1 %v7882_v0 }
 0xa5a   :  { %v3822_v53 = vpop.f32.mrb[68].mxu0  ;;  %v3863_v17 = vpop.f32.mrb[68].mxu1 }
 0xa5b   :  { %v3870_v38 = vadd.f32 %v3822_v53, %v3139_v29  ;;  %v3872_v21 = vadd.f32 %v3863_v17, %v3212_v49  ;;  %v3824_v22 = vpop.f32.mrb[69].mxu0  ;;  %v3865_v58 = vpop.f32.mrb[69].mxu1 }
 0xa5c   :  { %v3871_v54 = vadd.f32 %v3824_v22, %v3141_v11  ;;  %v3873_v0 = vadd.f32 %v3865_v58, %v3214_v5  ;;  %v3826_v51 = vpop.f32.mrb[70].mxu0  ;;  %v3867_v48 = vpop.f32.mrb[70].mxu1 }
 0xa5d   :  { %v6291_v26 = vmul.f32 -1.442695, %v3870_v38  ;;  %v3827_v20 = vpop.f32.mrb[71].mxu0  ;;  %v3868_v2 = vpop.f32.mrb[71].mxu1 }
 0xa5e   :  { %v6292_v27 = vmul.f32 -1.442695, %v3871_v54  ;;  %v6293_v24 = vmul.f32 -1.442695, %v3873_v0  ;;  %v8210_v20 = vld [vmem:[#allocation12 + $0xc] ss:$16 sps:$4 sm:$0xff]  }
 0xa5f   :  { %6953 = vpow2.f32 %v6291_v26  ;;  %v8208_v26 = vld [vmem:[#allocation12 + $0x4] ss:$16 sps:$4 sm:$0xff]   ;;  %v8212_v2 = vld [vmem:[#allocation12] ss:$16 sps:$4 sm:$0xff]  }
 0xa60   :  { %6955 = vpow2.f32 %v6292_v27  ;;  %v8214_v27 = vld [vmem:[#allocation12 + $0x8] ss:$16 sps:$4 sm:$0xff]  }
 0xa61   :  { %6957 = vpow2.f32 %v6293_v24  ;;  %v8220_v24 = vld [vmem:[#allocation12 + $0x24] ss:$16 sps:$4 sm:$0xff]  }
 0xa62   :  { %6959 = vtanh.f32 %v3872_v21 }
 0xa69   :  { %v6954_v35 = vpop.eup %6953 }
 0xa6a   :  { %v6956_v55 = vpop.eup %6955  ;;  %v3877_v15 = vadd.f32 1.0, %v6954_v35  ;;  %v8222_v35 = vld [vmem:[#allocation12 + $0x2c] ss:$16 sps:$4 sm:$0xff]  }
 0xa6b   :  { %v3883_v33 = vadd.f32 1.0, %v6956_v55  ;;  %v6958_v9 = vpop.eup %6957  ;;  %v8224_v55 = vld [vmem:[#allocation12 + $0x20] ss:$16 sps:$4 sm:$0xff]  }
 0xa6c   :  { %6961 = vrcp.f32 %v3877_v15  ;;  %v6960_v43 = vpop.eup %6959  ;;  %v3890_v49 = vadd.f32 1.0, %v6958_v9  ;;  %v8226_v15 = vld [vmem:[#allocation12 + $0x28] ss:$16 sps:$4 sm:$0xff]   ;;  %v8234_v9 = vld [vmem:[#allocation12 + $0x4c] ss:$16 sps:$4 sm:$0xff]  }
 0xa6d   :  { %6963 = vrcp.f32 %v3883_v33  ;;  %v8232_v33 = vld [vmem:[#allocation12 + $0x44] ss:$16 sps:$4 sm:$0xff]  }
 0xa6e   :  { %6965 = vrcp.f32 %v3890_v49  ;;  %v8248_v49 = vld [vmem:[#allocation12 + $0x60] ss:$16 sps:$4 sm:$0xff]  }
 0xa76   :  { %v6962_v30 = vpop.eup %6961 }
 0xa77   :  { %v6964_v25 = vpop.eup %6963  ;;  %v3894_v29 = vmul.f32 %v6962_v30, %v6960_v43  ;;  %v8236_v43 = vld [vmem:[#allocation12 + $0x40] ss:$16 sps:$4 sm:$0xff]   ;;  %v8238_v30 = vld [vmem:[#allocation12 + $0x48] ss:$16 sps:$4 sm:$0xff]  }
 0xa78   :  { %v3893_v11 = vmul.f32 %v6964_v25, %v8113_v31  ;;  %v6966_v53 = vpop.eup %6965  ;;  %v8244_v25 = vld [vmem:[#allocation12 + $0x64] ss:$16 sps:$4 sm:$0xff]  }
 0xa7a   :  { %v8159_v5 = vadd.f32 %v3894_v29, %v3893_v11  ;;  %v8246_v29 = vld [vmem:[#allocation12 + $0x6c] ss:$16 sps:$4 sm:$0xff]   ;;  %v8250_v11 = vld [vmem:[#allocation12 + $0x68] ss:$16 sps:$4 sm:$0xff]  }
 0xa7c   :  { %6967 = vtanh.f32 %v8159_v5 }
 0xa86   :  { %v6968_v17 = vpop.eup %6967 }
 0xa87   :  { %v3897_v38 = vmul.f32 %v6968_v17, %v6966_v53  ;;  %v8258_v53 = vld [vmem:[#allocation12 + $0x84] ss:$16 sps:$4 sm:$0xff]   ;;  %v8260_v17 = vld [vmem:[#allocation12 + $0x88] ss:$16 sps:$4 sm:$0xff]  }
 0xa89   :  { %v3906_v21 = vpack.c.bf16 %v3897_v38, %v3897_v38  ;;  %v8262_v38 = vld [vmem:[#allocation12 + $0x8c] ss:$16 sps:$4 sm:$0xff]  }
 0xa8b   :  { %4132 = vmatmul.mubr.bf16.vlgmr.msra.gmra.mrb[72].mxu0 %v3906_v21  ;;  %4173 = vmatmul.mubr.bf16.vlgmr.msra.gmra.mrb[72].mxu1 %v3906_v21  ;;  %v8264_v21 = vld [vmem:[#allocation12 + $0xa4] ss:$16 sps:$4 sm:$0xff]  }
 0xa8c   :  { %4411 = vmatpush1.bf16.msra.mxu0 %v7884_v4  ;;  %4452 = vmatpush1.bf16.msra.mxu1 %v7886_v19  ;;  %v3145_v4 = vadd.f32 %v7999_v39, %v8087_v7  ;;  %v8587_v19 = vld [vmem:[#allocation16_spill] sm:$0xff] }
 0xa8d   :  { %4412 = vmatprep.subr.bf16.mxu0 %v7892_v28  ;;  %4453 = vmatprep.subr.bf16.mxu1 %v7894_v36  ;;  %v3218_v28 = vadd.f32 %v8587_v19, %v8091_v52  ;;  %v8588_v36 = vld [vmem:[#allocation17_spill] sm:$0xff] }
 0xa8e   :  { %4442 = vmatprep.mubr.bf16.mxu0 %v8536_v46  ;;  %4483 = vmatprep.mubr.bf16.mxu1 %v8536_v46  ;;  %v8271_v19 = vld [vmem:[#allocation12 + $0xa0] ss:$16 sps:$4 sm:$0xff]  }
 0xa90   :  { %4413 = vmatpush1.bf16.msra.mxu0 %v7896_v56  ;;  %4454 = vmatpush1.bf16.msra.mxu1 %v7898_v59  ;;  %v3147_v56 = vadd.f32 %v8588_v36, %v8099_v34  ;;  %v8589_v59 = vld [vmem:[#allocation18_spill] sm:$0xff]  ;;  %v8277_v36 = vld [vmem:[#allocation12 + $0xc4] ss:$16 sps:$4 sm:$0xff]  }
 0xa91   :  { %4414 = vmatprep.subr.bf16.mxu0 %v7904_v61  ;;  %4455 = vmatprep.subr.bf16.mxu1 %v7906_v63  ;;  %v3220_v61 = vadd.f32 %v8589_v59, %v8103_v50  ;;  %v8283_v59 = vld [vmem:[#allocation12 + $0xc0] ss:$16 sps:$4 sm:$0xff]  }
 0xa94   :  { %4415 = vmatpush1.bf16.msra.mxu0 %v7908_v44  ;;  %4456 = vmatpush1.bf16.msra.mxu1 %v7910_v1 }
 0xa95   :  { %4416 = vmatprep.subr.bf16.mxu0 %v7918_v3  ;;  %4457 = vmatprep.subr.bf16.mxu1 %v7922_v41 }
 0xa98   :  { %4417 = vmatpush1.bf16.msra.mxu0 %v7916_v62  ;;  %4458 = vmatpush1.bf16.msra.mxu1 %v7920_v42 }
 0xa99   :  { %4418 = vmatprep.subr.bf16.mxu0 %v7928_v47  ;;  %4459 = vmatprep.subr.bf16.mxu1 %v7930_v60 }
 0xa9c   :  { %4419 = vmatpush1.bf16.msra.mxu0 %v7932_v45  ;;  %4460 = vmatpush1.bf16.msra.mxu1 %v7934_v57 }
 0xa9d   :  { %4420 = vmatprep.subr.bf16.mxu0 %v7942_v8  ;;  %4461 = vmatprep.subr.bf16.mxu1 %v7946_v23 }
 0xaa0   :  { %4421 = vmatpush1.bf16.msra.mxu0 %v7940_v6  ;;  %4462 = vmatpush1.bf16.msra.mxu1 %v7944_v10 }
 0xaa1   :  { %4422 = vmatprep.subr.bf16.mxu0 %v7952_v37  ;;  %4463 = vmatprep.subr.bf16.mxu1 %v7954_v40 }
 0xaa4   :  { %4423 = vmatpush1.bf16.msra.mxu0 %v7956_v14  ;;  %4464 = vmatpush1.bf16.msra.mxu1 %v7958_v12 }
 0xaa5   :  { %4424 = vmatprep.subr.bf16.mxu0 %v7966_v16  ;;  %4465 = vmatprep.subr.bf16.mxu1 %v7970_v32 }
 0xaa8   :  { %4425 = vmatpush1.bf16.msra.mxu0 %v7964_v13  ;;  %4466 = vmatpush1.bf16.msra.mxu1 %v7968_v18 }
 0xaa9   :  { %4721 = vmatprep.subr.bf16.mxu0 %v8208_v26  ;;  %4762 = vmatprep.subr.bf16.mxu1 %v8210_v20 }
 0xb5e   :  { %v4133_v63 = vpop.f32.mrb[72].mxu0  ;;  %v4174_v44 = vpop.f32.mrb[72].mxu1 }
 0xb5f   :  { %v4181_v1 = vadd.f32 %v4133_v63, %v3145_v4  ;;  %v4183_v62 = vadd.f32 %v4174_v44, %v3218_v28  ;;  %v4135_v3 = vpop.f32.mrb[73].mxu0  ;;  %v4176_v42 = vpop.f32.mrb[73].mxu1  ;;  %v8267_v4 = vld [vmem:[#allocation12 + $0xac] ss:$16 sps:$4 sm:$0xff]   ;;  %v8275_v28 = vld [vmem:[#allocation12 + $0xa8] ss:$16 sps:$4 sm:$0xff]  }
 0xb60   :  { %v4182_v41 = vadd.f32 %v4135_v3, %v3147_v56  ;;  %v4184_v47 = vadd.f32 %v4176_v42, %v3220_v61  ;;  %v4137_v60 = vpop.f32.mrb[74].mxu0  ;;  %v4178_v45 = vpop.f32.mrb[74].mxu1  ;;  %v8280_v56 = vld [vmem:[#allocation12 + $0xcc] ss:$16 sps:$4 sm:$0xff]   ;;  %v8287_v61 = vld [vmem:[#allocation12 + $0xc8] ss:$16 sps:$4 sm:$0xff]  }
 0xb61   :  { %v6326_v57 = vmul.f32 -1.442695, %v4181_v1  ;;  %v4138_v6 = vpop.f32.mrb[75].mxu0  ;;  %v4179_v8 = vpop.f32.mrb[75].mxu1  ;;  %v8289_v63 = vld [vmem:[#allocation12 + $0xe4] ss:$16 sps:$4 sm:$0xff]  }
 0xb62   :  { %v6327_v10 = vmul.f32 -1.442695, %v4182_v41  ;;  %v6328_v23 = vmul.f32 -1.442695, %v4184_v47  ;;  %v8292_v44 = vld [vmem:[#allocation12 + $0xec] ss:$16 sps:$4 sm:$0xff]  }
 0xb63   :  { %6969 = vpow2.f32 %v6326_v57  ;;  %v8295_v1 = vld [vmem:[#allocation12 + $0xe0] ss:$16 sps:$4 sm:$0xff]   ;;  %v8591_v41 = vld [vmem:[#allocation20_spill] sm:$0xff]  ;;  %v8593_v57 = vld [vmem:[#allocation22_spill] sm:$0xff] }
 0xb64   :  { %6971 = vpow2.f32 %v6327_v10  ;;  %v8590_v3 = vld [vmem:[#allocation19_spill] sm:$0xff]  ;;  %v3222_v47 = vadd.f32 %v8591_v41, %v8091_v52  ;;  %v8592_v60 = vld [vmem:[#allocation21_spill] sm:$0xff]  ;;  %v3224_v6 = vadd.f32 %v8593_v57, %v8103_v50 }
 0xb65   :  { %6973 = vpow2.f32 %v6328_v23  ;;  %v3149_v42 = vadd.f32 %v8590_v3, %v8087_v7  ;;  %v3151_v45 = vadd.f32 %v8592_v60, %v8099_v34 }
 0xb66   :  { %6975 = vtanh.f32 %v4183_v62  ;;  %v8299_v62 = vld [vmem:[#allocation12 + $0xe8] ss:$16 sps:$4 sm:$0xff]  }
 0xb6d   :  { %v6970_v37 = vpop.eup %6969 }
 0xb6e   :  { %v6972_v40 = vpop.eup %6971  ;;  %v4188_v14 = vadd.f32 1.0, %v6970_v37 }
 0xb6f   :  { %v4194_v12 = vadd.f32 1.0, %v6972_v40  ;;  %v6974_v13 = vpop.eup %6973 }
 0xb70   :  { %6977 = vrcp.f32 %v4188_v14  ;;  %v6976_v16 = vpop.eup %6975  ;;  %v4201_v31 = vadd.f32 1.0, %v6974_v13 }
 0xb71   :  { %6979 = vrcp.f32 %v4194_v12 }
 0xb72   :  { %6981 = vrcp.f32 %v4201_v31 }
 0xb7a   :  { %v6978_v18 = vpop.eup %6977 }
 0xb7b   :  { %v6980_v32 = vpop.eup %6979  ;;  %v4205_v39 = vmul.f32 %v6978_v18, %v6976_v16 }
 0xb7c   :  { %v4204_v22 = vmul.f32 %v6980_v32, %v8159_v5  ;;  %v6982_v54 = vpop.eup %6981  ;;  %v8256_v5 = vld [vmem:[#allocation12 + $0x80] ss:$16 sps:$4 sm:$0xff]  }
 0xb7e   :  { %v8203_v58 = vadd.f32 %v4205_v39, %v4204_v22 }
 0xb80   :  { %6983 = vtanh.f32 %v8203_v58 }
 0xb8a   :  { %v6984_v0 = vpop.eup %6983 }
 0xb8b   :  { %v4208_v51 = vmul.f32 %v6984_v0, %v6982_v54 }
 0xb8d   :  { %v4217_v48 = vpack.c.bf16 %v4208_v51, %v4208_v51 }
 0xb8f   :  { %4443 = vmatmul.mubr.bf16.vlgmr.msra.gmra.mrb[76].mxu0 %v4217_v48  ;;  %4484 = vmatmul.mubr.bf16.vlgmr.msra.gmra.mrb[76].mxu1 %v4217_v48 }
 0xb90   :  { %4753 = vmatprep.mubr.bf16.mxu0 %v8536_v46  ;;  %4794 = vmatprep.mubr.bf16.mxu1 %v8536_v46 }
 0xb91   :  { %4722 = vmatpush1.bf16.msra.mxu0 %v8212_v2  ;;  %4763 = vmatpush1.bf16.msra.mxu1 %v8214_v27 }
 0xb92   :  { %4723 = vmatprep.subr.bf16.mxu0 %v8220_v24  ;;  %4764 = vmatprep.subr.bf16.mxu1 %v8222_v35 }
 0xb95   :  { %4724 = vmatpush1.bf16.msra.mxu0 %v8224_v55  ;;  %4765 = vmatpush1.bf16.msra.mxu1 %v8226_v15 }
 0xb96   :  { %4725 = vmatprep.subr.bf16.mxu0 %v8232_v33  ;;  %4766 = vmatprep.subr.bf16.mxu1 %v8234_v9 }
 0xb99   :  { %4726 = vmatpush1.bf16.msra.mxu0 %v8236_v43  ;;  %4767 = vmatpush1.bf16.msra.mxu1 %v8238_v30 }
 0xb9a   :  { %4727 = vmatprep.subr.bf16.mxu0 %v8244_v25  ;;  %4768 = vmatprep.subr.bf16.mxu1 %v8246_v29 }
 0xb9d   :  { %4728 = vmatpush1.bf16.msra.mxu0 %v8248_v49  ;;  %4769 = vmatpush1.bf16.msra.mxu1 %v8250_v11 }
 0xb9e   :  { %4729 = vmatprep.subr.bf16.mxu0 %v8258_v53  ;;  %4770 = vmatprep.subr.bf16.mxu1 %v8262_v38 }
 0xba1   :  { %4730 = vmatpush1.bf16.msra.mxu0 %v8256_v5  ;;  %4771 = vmatpush1.bf16.msra.mxu1 %v8260_v17 }
 0xba2   :  { %4731 = vmatprep.subr.bf16.mxu0 %v8264_v21  ;;  %4772 = vmatprep.subr.bf16.mxu1 %v8267_v4 }
 0xba5   :  { %4732 = vmatpush1.bf16.msra.mxu0 %v8271_v19  ;;  %4773 = vmatpush1.bf16.msra.mxu1 %v8275_v28 }
 0xba6   :  { %4733 = vmatprep.subr.bf16.mxu0 %v8277_v36  ;;  %4774 = vmatprep.subr.bf16.mxu1 %v8280_v56 }
 0xba9   :  { %4734 = vmatpush1.bf16.msra.mxu0 %v8283_v59  ;;  %4775 = vmatpush1.bf16.msra.mxu1 %v8287_v61 }
 0xbaa   :  { %4735 = vmatprep.subr.bf16.mxu0 %v8289_v63  ;;  %4776 = vmatprep.subr.bf16.mxu1 %v8292_v44 }
 0xbad   :  { %4736 = vmatpush1.bf16.msra.mxu0 %v8295_v1  ;;  %4777 = vmatpush1.bf16.msra.mxu1 %v8299_v62 }
 0xbae   :  { %5032 = vmatprep.subr.bf16.mxu0 %v8208_v26  ;;  %5073 = vmatprep.subr.bf16.mxu1 %v8210_v20 }
 0xc62   :  { %v4444_v8 = vpop.f32.mrb[76].mxu0  ;;  %v4485_v10 = vpop.f32.mrb[76].mxu1 }
 0xc63   :  { %v4492_v23 = vadd.f32 %v4444_v8, %v3149_v42  ;;  %v4494_v37 = vadd.f32 %v4485_v10, %v3222_v47  ;;  %v4446_v40 = vpop.f32.mrb[77].mxu0  ;;  %v4487_v14 = vpop.f32.mrb[77].mxu1 }
 0xc64   :  { %v4493_v12 = vadd.f32 %v4446_v40, %v3151_v45  ;;  %v4495_v13 = vadd.f32 %v4487_v14, %v3224_v6  ;;  %v4448_v16 = vpop.f32.mrb[78].mxu0  ;;  %v4489_v18 = vpop.f32.mrb[78].mxu1 }
 0xc65   :  { %v6361_v32 = vmul.f32 -1.442695, %v4492_v23  ;;  %v4449_v39 = vpop.f32.mrb[79].mxu0  ;;  %v4490_v31 = vpop.f32.mrb[79].mxu1  ;;  %v8596_v16 = vld [vmem:[#allocation25_spill] sm:$0xff] }
 0xc66   :  { %v6362_v22 = vmul.f32 -1.442695, %v4493_v12  ;;  %v6363_v54 = vmul.f32 -1.442695, %v4495_v13  ;;  %v8595_v12 = vld [vmem:[#allocation24_spill] sm:$0xff]  ;;  %v3157_v18 = vadd.f32 %v8596_v16, %v8099_v34 }
 0xc67   :  { %6985 = vpow2.f32 %v6361_v32  ;;  %v3228_v13 = vadd.f32 %v8595_v12, %v8091_v52  ;;  %v8597_v32 = vld [vmem:[#allocation26_spill] sm:$0xff] }
 0xc68   :  { %6987 = vpow2.f32 %v6362_v22  ;;  %v3230_v39 = vadd.f32 %v8597_v32, %v8103_v50 }
 0xc69   :  { %6989 = vpow2.f32 %v6363_v54 }
 0xc6a   :  { %6991 = vtanh.f32 %v4494_v37 }
 0xc71   :  { %v6986_v0 = vpop.eup %6985 }
 0xc72   :  { %v6988_v51 = vpop.eup %6987  ;;  %v4499_v48 = vadd.f32 1.0, %v6986_v0 }
 0xc73   :  { %v4505_v3 = vadd.f32 1.0, %v6988_v51  ;;  %v6990_v42 = vpop.eup %6989 }
 0xc74   :  { %6993 = vrcp.f32 %v4499_v48  ;;  %v6992_v41 = vpop.eup %6991  ;;  %v4512_v57 = vadd.f32 1.0, %v6990_v42 }
 0xc75   :  { %6995 = vrcp.f32 %v4505_v3 }
 0xc76   :  { %6997 = vrcp.f32 %v4512_v57 }
 0xc7e   :  { %v6994_v47 = vpop.eup %6993 }
 0xc7f   :  { %v6996_v60 = vpop.eup %6995  ;;  %v4516_v45 = vmul.f32 %v6994_v47, %v6992_v41 }
 0xc80   :  { %v4515_v6 = vmul.f32 %v6996_v60, %v8203_v58  ;;  %v6998_v10 = vpop.eup %6997  ;;  %v8594_v58 = vld [vmem:[#allocation23_spill] sm:$0xff] }
 0xc81   :  { %v3155_v14 = vadd.f32 %v8594_v58, %v8087_v7 }
 0xc82   :  { %v8315_v8 = vadd.f32 %v4516_v45, %v4515_v6 }
 0xc84   :  { %6999 = vtanh.f32 %v8315_v8 }
 0xc8e   :  { %v7000_v23 = vpop.eup %6999 }
 0xc8f   :  { %v4519_v40 = vmul.f32 %v7000_v23, %v6998_v10 }
 0xc91   :  { %v4528_v37 = vpack.c.bf16 %v4519_v40, %v4519_v40 }
 0xc93   :  { %4754 = vmatmul.mubr.bf16.vlgmr.msra.gmra.mrb[80].mxu0 %v4528_v37  ;;  %4795 = vmatmul.mubr.bf16.vlgmr.msra.gmra.mrb[80].mxu1 %v4528_v37 }
 0xc94   :  { %5033 = vmatpush1.bf16.msra.mxu0 %v8212_v2  ;;  %5074 = vmatpush1.bf16.msra.mxu1 %v8214_v27 }
 0xc95   :  { %5034 = vmatprep.subr.bf16.mxu0 %v8220_v24  ;;  %5075 = vmatprep.subr.bf16.mxu1 %v8222_v35 }
 0xc96   :  { %5064 = vmatprep.mubr.bf16.mxu0 %v8536_v46  ;;  %5105 = vmatprep.mubr.bf16.mxu1 %v8536_v46 }
 0xc98   :  { %5035 = vmatpush1.bf16.msra.mxu0 %v8224_v55  ;;  %5076 = vmatpush1.bf16.msra.mxu1 %v8226_v15 }
 0xc99   :  { %5036 = vmatprep.subr.bf16.mxu0 %v8232_v33  ;;  %5077 = vmatprep.subr.bf16.mxu1 %v8234_v9 }
 0xc9c   :  { %5037 = vmatpush1.bf16.msra.mxu0 %v8236_v43  ;;  %5078 = vmatpush1.bf16.msra.mxu1 %v8238_v30 }
 0xc9d   :  { %5038 = vmatprep.subr.bf16.mxu0 %v8244_v25  ;;  %5079 = vmatprep.subr.bf16.mxu1 %v8246_v29 }
 0xca0   :  { %5039 = vmatpush1.bf16.msra.mxu0 %v8248_v49  ;;  %5080 = vmatpush1.bf16.msra.mxu1 %v8250_v11 }
 0xca1   :  { %5040 = vmatprep.subr.bf16.mxu0 %v8258_v53  ;;  %5081 = vmatprep.subr.bf16.mxu1 %v8262_v38 }
 0xca4   :  { %5041 = vmatpush1.bf16.msra.mxu0 %v8256_v5  ;;  %5082 = vmatpush1.bf16.msra.mxu1 %v8260_v17 }
 0xca5   :  { %5042 = vmatprep.subr.bf16.mxu0 %v8264_v21  ;;  %5083 = vmatprep.subr.bf16.mxu1 %v8267_v4 }
 0xca8   :  { %5043 = vmatpush1.bf16.msra.mxu0 %v8271_v19  ;;  %5084 = vmatpush1.bf16.msra.mxu1 %v8275_v28 }
 0xca9   :  { %5044 = vmatprep.subr.bf16.mxu0 %v8277_v36  ;;  %5085 = vmatprep.subr.bf16.mxu1 %v8280_v56 }
 0xcac   :  { %5045 = vmatpush1.bf16.msra.mxu0 %v8283_v59  ;;  %5086 = vmatpush1.bf16.msra.mxu1 %v8287_v61 }
 0xcad   :  { %5046 = vmatprep.subr.bf16.mxu0 %v8289_v63  ;;  %5087 = vmatprep.subr.bf16.mxu1 %v8292_v44 }
 0xcb0   :  { %5047 = vmatpush1.bf16.msra.mxu0 %v8295_v1  ;;  %5088 = vmatpush1.bf16.msra.mxu1 %v8299_v62 }
 0xcb1   :  { %5343 = vmatprep.subr.bf16.mxu0 %v8208_v26  ;;  %5384 = vmatprep.subr.bf16.mxu1 %v8210_v20 }
 0xd66   :  { %v4755_v31 = vpop.f32.mrb[80].mxu0  ;;  %v4796_v22 = vpop.f32.mrb[80].mxu1 }
 0xd67   :  { %v4803_v54 = vadd.f32 %v4755_v31, %v3155_v14  ;;  %v4805_v0 = vadd.f32 %v4796_v22, %v3228_v13  ;;  %v4757_v51 = vpop.f32.mrb[81].mxu0  ;;  %v4798_v48 = vpop.f32.mrb[81].mxu1 }
 0xd68   :  { %v4804_v3 = vadd.f32 %v4757_v51, %v3157_v18  ;;  %v4806_v42 = vadd.f32 %v4798_v48, %v3230_v39  ;;  %v4759_v41 = vpop.f32.mrb[82].mxu0  ;;  %v4800_v47 = vpop.f32.mrb[82].mxu1 }
 0xd69   :  { %v6396_v60 = vmul.f32 -1.442695, %v4803_v54  ;;  %v4760_v45 = vpop.f32.mrb[83].mxu0  ;;  %v4801_v57 = vpop.f32.mrb[83].mxu1  ;;  %v8600_v41 = vld [vmem:[#allocation29_spill] sm:$0xff] }
 0xd6a   :  { %v6397_v6 = vmul.f32 -1.442695, %v4804_v3  ;;  %v6398_v10 = vmul.f32 -1.442695, %v4806_v42  ;;  %v8599_v3 = vld [vmem:[#allocation28_spill] sm:$0xff]  ;;  %v3161_v47 = vadd.f32 %v8600_v41, %v8099_v34 }
 0xd6b   :  { %7001 = vpow2.f32 %v6396_v60  ;;  %v3232_v42 = vadd.f32 %v8599_v3, %v8091_v52  ;;  %v8601_v60 = vld [vmem:[#allocation30_spill] sm:$0xff] }
 0xd6c   :  { %7003 = vpow2.f32 %v6397_v6  ;;  %v3234_v45 = vadd.f32 %v8601_v60, %v8103_v50 }
 0xd6d   :  { %7005 = vpow2.f32 %v6398_v10 }
 0xd6e   :  { %7007 = vtanh.f32 %v4805_v0 }
 0xd75   :  { %v7002_v23 = vpop.eup %7001 }
 0xd76   :  { %v7004_v40 = vpop.eup %7003  ;;  %v4810_v37 = vadd.f32 1.0, %v7002_v23 }
 0xd77   :  { %v4816_v58 = vadd.f32 1.0, %v7004_v40  ;;  %v7006_v14 = vpop.eup %7005 }
 0xd78   :  { %7009 = vrcp.f32 %v4810_v37  ;;  %v7008_v12 = vpop.eup %7007  ;;  %v4823_v32 = vadd.f32 1.0, %v7006_v14 }
 0xd79   :  { %7011 = vrcp.f32 %v4816_v58 }
 0xd7a   :  { %7013 = vrcp.f32 %v4823_v32 }
 0xd82   :  { %v7010_v13 = vpop.eup %7009 }
 0xd83   :  { %v7012_v16 = vpop.eup %7011  ;;  %v4827_v18 = vmul.f32 %v7010_v13, %v7008_v12 }
 0xd84   :  { %v4826_v39 = vmul.f32 %v7012_v16, %v8315_v8  ;;  %v7014_v22 = vpop.eup %7013  ;;  %v8598_v8 = vld [vmem:[#allocation27_spill] sm:$0xff] }
 0xd85   :  { %v3159_v48 = vadd.f32 %v8598_v8, %v8087_v7 }
 0xd86   :  { %v8361_v31 = vadd.f32 %v4827_v18, %v4826_v39 }
 0xd88   :  { %7015 = vtanh.f32 %v8361_v31 }
 0xd92   :  { %v7016_v54 = vpop.eup %7015 }
 0xd93   :  { %v4830_v51 = vmul.f32 %v7016_v54, %v7014_v22 }
 0xd95   :  { %v4839_v0 = vpack.c.bf16 %v4830_v51, %v4830_v51 }
 0xd97   :  { %5065 = vmatmul.mubr.bf16.vlgmr.msra.gmra.mrb[84].mxu0 %v4839_v0  ;;  %5106 = vmatmul.mubr.bf16.vlgmr.msra.gmra.mrb[84].mxu1 %v4839_v0 }
 0xd98   :  { %5344 = vmatpush1.bf16.msra.mxu0 %v8212_v2  ;;  %5385 = vmatpush1.bf16.msra.mxu1 %v8214_v27 }
 0xd99   :  { %5345 = vmatprep.subr.bf16.mxu0 %v8220_v24  ;;  %5386 = vmatprep.subr.bf16.mxu1 %v8222_v35 }
 0xd9a   :  { %5375 = vmatprep.mubr.bf16.mxu0 %v8536_v46  ;;  %5416 = vmatprep.mubr.bf16.mxu1 %v8536_v46 }
 0xd9c   :  { %5346 = vmatpush1.bf16.msra.mxu0 %v8224_v55  ;;  %5387 = vmatpush1.bf16.msra.mxu1 %v8226_v15 }
 0xd9d   :  { %5347 = vmatprep.subr.bf16.mxu0 %v8232_v33  ;;  %5388 = vmatprep.subr.bf16.mxu1 %v8234_v9 }
 0xda0   :  { %5348 = vmatpush1.bf16.msra.mxu0 %v8236_v43  ;;  %5389 = vmatpush1.bf16.msra.mxu1 %v8238_v30 }
 0xda1   :  { %5349 = vmatprep.subr.bf16.mxu0 %v8244_v25  ;;  %5390 = vmatprep.subr.bf16.mxu1 %v8246_v29 }
 0xda4   :  { %5350 = vmatpush1.bf16.msra.mxu0 %v8248_v49  ;;  %5391 = vmatpush1.bf16.msra.mxu1 %v8250_v11 }
 0xda5   :  { %5351 = vmatprep.subr.bf16.mxu0 %v8258_v53  ;;  %5392 = vmatprep.subr.bf16.mxu1 %v8262_v38 }
 0xda8   :  { %5352 = vmatpush1.bf16.msra.mxu0 %v8256_v5  ;;  %5393 = vmatpush1.bf16.msra.mxu1 %v8260_v17 }
 0xda9   :  { %5353 = vmatprep.subr.bf16.mxu0 %v8264_v21  ;;  %5394 = vmatprep.subr.bf16.mxu1 %v8267_v4 }
 0xdac   :  { %5354 = vmatpush1.bf16.msra.mxu0 %v8271_v19  ;;  %5395 = vmatpush1.bf16.msra.mxu1 %v8275_v28 }
 0xdad   :  { %5355 = vmatprep.subr.bf16.mxu0 %v8277_v36  ;;  %5396 = vmatprep.subr.bf16.mxu1 %v8280_v56 }
 0xdb0   :  { %5356 = vmatpush1.bf16.msra.mxu0 %v8283_v59  ;;  %5397 = vmatpush1.bf16.msra.mxu1 %v8287_v61 }
 0xdb1   :  { %5357 = vmatprep.subr.bf16.mxu0 %v8289_v63  ;;  %5398 = vmatprep.subr.bf16.mxu1 %v8292_v44 }
 0xdb4   :  { %5358 = vmatpush1.bf16.msra.mxu0 %v8295_v1  ;;  %5399 = vmatpush1.bf16.msra.mxu1 %v8299_v62 }
 0xdb5   :  { %5654 = vmatprep.subr.bf16.mxu0 %v8208_v26  ;;  %5695 = vmatprep.subr.bf16.mxu1 %v8210_v20 }
 0xe6a   :  { %v5066_v57 = vpop.f32.mrb[84].mxu0  ;;  %v5107_v6 = vpop.f32.mrb[84].mxu1 }
 0xe6b   :  { %v5114_v10 = vadd.f32 %v5066_v57, %v3159_v48  ;;  %v5116_v23 = vadd.f32 %v5107_v6, %v3232_v42  ;;  %v5068_v40 = vpop.f32.mrb[85].mxu0  ;;  %v5109_v26 = vpop.f32.mrb[85].mxu1 }
 0xe6c   :  { %v5115_v37 = vadd.f32 %v5068_v40, %v3161_v47  ;;  %v5117_v20 = vadd.f32 %v5109_v26, %v3234_v45  ;;  %v5070_v58 = vpop.f32.mrb[86].mxu0  ;;  %v5111_v14 = vpop.f32.mrb[86].mxu1 }
 0xe6d   :  { %v6431_v12 = vmul.f32 -1.442695, %v5114_v10  ;;  %v5071_v13 = vpop.f32.mrb[87].mxu0  ;;  %v5112_v16 = vpop.f32.mrb[87].mxu1 }
 0xe6e   :  { %v6432_v18 = vmul.f32 -1.442695, %v5115_v37  ;;  %v6433_v32 = vmul.f32 -1.442695, %v5117_v20  ;;  %v7142_v13 = vmov 0.0   ;;  %v6802_v16 = vld [vmem:[%s8501_s7 + $0x8] sm:$0xff]  }
 0xe6f   :  { %7017 = vpow2.f32 %v6431_v12  ;;  %v6801_v12 = vld [vmem:[%s8501_s7] sm:$0xff]  }
 0xe70   :  { %7019 = vpow2.f32 %v6432_v18  ;;  %v6803_v18 = vld [vmem:[%s8501_s7 + $0x10] sm:$0xff]  }
 0xe71   :  { %7021 = vpow2.f32 %v6433_v32  ;;  %v6804_v32 = vld [vmem:[%s8501_s7 + $0x18] sm:$0xff]  }
 0xe72   :  { %7023 = vtanh.f32 %v5116_v23 }
 0xe79   :  { %v7018_v39 = vpop.eup %7017 }
 0xe7a   :  { %v7020_v22 = vpop.eup %7019  ;;  %v5121_v54 = vadd.f32 1.0, %v7018_v39  ;;  %v6805_v39 = vld [vmem:[%s8501_s7 + $0x20] sm:$0xff]  }
 0xe7b   :  { %v5127_v51 = vadd.f32 1.0, %v7020_v22  ;;  %v7022_v0 = vpop.eup %7021  ;;  %v6806_v22 = vld [vmem:[%s8501_s7 + $0x28] sm:$0xff]  }
 0xe7c   :  { %7025 = vrcp.f32 %v5121_v54  ;;  %v7024_v8 = vpop.eup %7023  ;;  %v5134_v41 = vadd.f32 1.0, %v7022_v0  ;;  %v6807_v54 = vld [vmem:[%s8501_s7 + $0x30] sm:$0xff]   ;;  %v8606_v0 = vld [vmem:[#allocation35_spill] sm:$0xff] }
 0xe7d   :  { %7027 = vrcp.f32 %v5127_v51  ;;  %v6808_v51 = vld [vmem:[%s8501_s7 + $0x38] sm:$0xff]  }
 0xe7e   :  { %7029 = vrcp.f32 %v5134_v41 }
 0xe86   :  { %v7026_v48 = vpop.eup %7025 }
 0xe87   :  { %v7028_v3 = vpop.eup %7027  ;;  %v5138_v42 = vmul.f32 %v7026_v48, %v7024_v8  ;;  %v3169_v8 = vadd.f32 %v8606_v0, %v8087_v7  ;;  %v8607_v48 = vld [vmem:[#allocation36_spill] sm:$0xff] }
 0xe88   :  { %v5137_v47 = vmul.f32 %v7028_v3, %v8361_v31  ;;  %v7030_v45 = vpop.eup %7029  ;;  %v3242_v3 = vadd.f32 %v8607_v48, %v8091_v52 }
 0xe8a   :  { %v8407_v60 = vadd.f32 %v5138_v42, %v5137_v47  ;;  %v8608_v42 = vld [vmem:[#allocation15_spill] sm:$0xff]  ;;  %v8609_v47 = vld [vmem:[#allocation37_spill] sm:$0xff] }
 0xe8b   :  { %v3171_v41 = vadd.f32 %v8608_v42, %v8099_v34 }
 0xe8c   :  { %7031 = vtanh.f32 %v8407_v60 }
 0xe96   :  { %v7032_v57 = vpop.eup %7031 }
 0xe97   :  { %v5141_v6 = vmul.f32 %v7032_v57, %v7030_v45 }
 0xe99   :  { %v5150_v10 = vpack.c.bf16 %v5141_v6, %v5141_v6 }
 0xe9b   :  { %5376 = vmatmul.mubr.bf16.vlgmr.msra.gmra.mrb[88].mxu0 %v5150_v10  ;;  %5417 = vmatmul.mubr.bf16.vlgmr.msra.gmra.mrb[88].mxu1 %v5150_v10 }
 0xe9c   :  { %5655 = vmatpush1.bf16.msra.mxu0 %v8212_v2  ;;  %5696 = vmatpush1.bf16.msra.mxu1 %v8214_v27  ;;  %v8603_v27 = vld [vmem:[#allocation32_spill] sm:$0xff] }
 0xe9d   :  { %5656 = vmatprep.subr.bf16.mxu0 %v8220_v24  ;;  %5697 = vmatprep.subr.bf16.mxu1 %v8222_v35  ;;  %v3238_v24 = vadd.f32 %v8603_v27, %v8091_v52  ;;  %v8604_v35 = vld [vmem:[#allocation33_spill] sm:$0xff] }
 0xe9e   :  { %5686 = vmatprep.mubr.bf16.mxu0 %v8536_v46  ;;  %5727 = vmatprep.mubr.bf16.mxu1 %v8536_v46  ;;  %v8602_v46 = vld [vmem:[#allocation31_spill] sm:$0xff] }
 0xe9f   :  { %v3165_v2 = vadd.f32 %v8602_v46, %v8087_v7 }
 0xea0   :  { %5657 = vmatpush1.bf16.msra.mxu0 %v8224_v55  ;;  %5698 = vmatpush1.bf16.msra.mxu1 %v8226_v15  ;;  %v3167_v55 = vadd.f32 %v8604_v35, %v8099_v34  ;;  %v8605_v15 = vld [vmem:[#allocation34_spill] sm:$0xff] }
 0xea1   :  { %5658 = vmatprep.subr.bf16.mxu0 %v8232_v33  ;;  %5699 = vmatprep.subr.bf16.mxu1 %v8234_v9  ;;  %v3240_v33 = vadd.f32 %v8605_v15, %v8103_v50 }
 0xea4   :  { %5659 = vmatpush1.bf16.msra.mxu0 %v8236_v43  ;;  %5700 = vmatpush1.bf16.msra.mxu1 %v8238_v30 }
 0xea5   :  { %5660 = vmatprep.subr.bf16.mxu0 %v8244_v25  ;;  %5701 = vmatprep.subr.bf16.mxu1 %v8246_v29 }
 0xea8   :  { %5661 = vmatpush1.bf16.msra.mxu0 %v8248_v49  ;;  %5702 = vmatpush1.bf16.msra.mxu1 %v8250_v11 }
 0xea9   :  { %5662 = vmatprep.subr.bf16.mxu0 %v8258_v53  ;;  %5703 = vmatprep.subr.bf16.mxu1 %v8262_v38 }
 0xeac   :  { %5663 = vmatpush1.bf16.msra.mxu0 %v8256_v5  ;;  %5704 = vmatpush1.bf16.msra.mxu1 %v8260_v17 }
 0xead   :  { %5664 = vmatprep.subr.bf16.mxu0 %v8264_v21  ;;  %5705 = vmatprep.subr.bf16.mxu1 %v8267_v4 }
 0xeb0   :  { %5665 = vmatpush1.bf16.msra.mxu0 %v8271_v19  ;;  %5706 = vmatpush1.bf16.msra.mxu1 %v8275_v28 }
 0xeb1   :  { %5666 = vmatprep.subr.bf16.mxu0 %v8277_v36  ;;  %5707 = vmatprep.subr.bf16.mxu1 %v8280_v56 }
 0xeb4   :  { %5667 = vmatpush1.bf16.msra.mxu0 %v8283_v59  ;;  %5708 = vmatpush1.bf16.msra.mxu1 %v8287_v61 }
 0xeb5   :  { %5668 = vmatprep.subr.bf16.mxu0 %v8289_v63  ;;  %5709 = vmatprep.subr.bf16.mxu1 %v8292_v44 }
 0xeb8   :  { %5669 = vmatpush1.bf16.msra.mxu0 %v8295_v1  ;;  %5710 = vmatpush1.bf16.msra.mxu1 %v8299_v62 }
 0xeb9   :  { %6522 = vmatprep.subr.bf16.mxu0 %v7142_v13 }
 0xf6e   :  { %v5377_v9 = vpop.f32.mrb[88].mxu0  ;;  %v5418_v43 = vpop.f32.mrb[88].mxu1 }
 0xf6f   :  { %v5425_v30 = vadd.f32 %v5377_v9, %v3165_v2  ;;  %v5427_v25 = vadd.f32 %v5418_v43, %v3238_v24  ;;  %v5379_v29 = vpop.f32.mrb[89].mxu0  ;;  %v5420_v49 = vpop.f32.mrb[89].mxu1 }
 0xf70   :  { %v5426_v11 = vadd.f32 %v5379_v29, %v3167_v55  ;;  %v5428_v5 = vadd.f32 %v5420_v49, %v3240_v33  ;;  %v5381_v53 = vpop.f32.mrb[90].mxu0  ;;  %v5422_v17 = vpop.f32.mrb[90].mxu1 }
 0xf71   :  { %v6466_v38 = vmul.f32 -1.442695, %v5425_v30  ;;  %v5382_v21 = vpop.f32.mrb[91].mxu0  ;;  %v5423_v4 = vpop.f32.mrb[91].mxu1 }
 0xf72   :  { %v6467_v19 = vmul.f32 -1.442695, %v5426_v11  ;;  %v6468_v28 = vmul.f32 -1.442695, %v5428_v5 }
 0xf73   :  { %7033 = vpow2.f32 %v6466_v38 }
 0xf74   :  { %7035 = vpow2.f32 %v6467_v19 }
 0xf75   :  { %7037 = vpow2.f32 %v6468_v28 }
 0xf76   :  { %7039 = vtanh.f32 %v5427_v25 }
 0xf7d   :  { %v7034_v36 = vpop.eup %7033 }
 0xf7e   :  { %v7036_v56 = vpop.eup %7035  ;;  %v5432_v59 = vadd.f32 1.0, %v7034_v36  ;;  %v6504_v36 = vld [vmem:[%s8502_s8] ss:$0 sm:$0xff] }
 0xf7f   :  { %v5438_v61 = vadd.f32 1.0, %v7036_v56  ;;  %v7038_v63 = vpop.eup %7037 }
 0xf80   :  { %7041 = vrcp.f32 %v5432_v59  ;;  %v7040_v44 = vpop.eup %7039  ;;  %v5445_v23 = vadd.f32 1.0, %v7038_v63 }
 0xf81   :  { %7043 = vrcp.f32 %v5438_v61 }
 0xf82   :  { %7045 = vrcp.f32 %v5445_v23 }
 0xf8a   :  { %v7042_v1 = vpop.eup %7041 }
 0xf8b   :  { %v7044_v62 = vpop.eup %7043  ;;  %v5449_v31 = vmul.f32 %v7042_v1, %v7040_v44 }
 0xf8c   :  { %v5448_v40 = vmul.f32 %v7044_v62, %v8407_v60  ;;  %v7046_v37 = vpop.eup %7045  ;;  %v3244_v60 = vadd.f32 %v8609_v47, %v8103_v50 }
 0xf8e   :  { %v8451_v26 = vadd.f32 %v5449_v31, %v5448_v40 }
 0xf90   :  { %7047 = vtanh.f32 %v8451_v26 }
 0xf9a   :  { %v7048_v20 = vpop.eup %7047 }
 0xf9b   :  { %v5452_v58 = vmul.f32 %v7048_v20, %v7046_v37 }
 0xf9d   :  { %v5461_v14 = vpack.c.bf16 %v5452_v58, %v5452_v58 }
 0xf9f   :  { %5687 = vmatmul.mubr.bf16.vlgmr.msra.gmra.mrb[92].mxu0 %v5461_v14  ;;  %5728 = vmatmul.mubr.bf16.vlgmr.msra.gmra.mrb[92].mxu1 %v5461_v14 }
 0xfa0   :  { %6523 = vmatpush3.bf16.msra.mxu0 %v6801_v12  ;;  %6538 = vmatprep.mubr.msk.bf16.mxu0 %vm7143_vm1, %v7142_v13 }
 0xfa1   :  { %6524 = vmatprep.subr.bf16.mxu0 %v7142_v13 }
 0xfa4   :  { %6525 = vmatpush3.bf16.msra.mxu0 %v6802_v16 }
 0xfa5   :  { %6526 = vmatprep.subr.bf16.mxu0 %v7142_v13 }
 0xfa8   :  { %6527 = vmatpush3.bf16.msra.mxu0 %v6803_v18 }
 0xfa9   :  { %6528 = vmatprep.subr.bf16.mxu0 %v7142_v13 }
 0xfac   :  { %6529 = vmatpush3.bf16.msra.mxu0 %v6804_v32 }
 0xfad   :  { %6530 = vmatprep.subr.bf16.mxu0 %v7142_v13 }
 0xfb0   :  { %6531 = vmatpush3.bf16.msra.mxu0 %v6805_v39 }
 0xfb1   :  { %6532 = vmatprep.subr.bf16.mxu0 %v7142_v13 }
 0xfb4   :  { %6533 = vmatpush3.bf16.msra.mxu0 %v6806_v22 }
 0xfb5   :  { %6534 = vmatprep.subr.bf16.mxu0 %v7142_v13 }
 0xfb8   :  { %6535 = vmatpush3.bf16.msra.mxu0 %v6807_v54 }
 0xfb9   :  { %6536 = vmatprep.subr.bf16.mxu0 %v7142_v13 }
 0xfbc   :  { %6537 = vmatpush3.bf16.msra.mxu0 %v6808_v51 }
0x1072   :  { %v5688_v45 = vpop.f32.mrb[92].mxu0  ;;  %v5729_v57 = vpop.f32.mrb[92].mxu1 }
0x1073   :  { %v5736_v6 = vadd.f32 %v5688_v45, %v3169_v8  ;;  %v5738_v10 = vadd.f32 %v5729_v57, %v3242_v3  ;;  %v5690_v46 = vpop.f32.mrb[93].mxu0  ;;  %v5731_v2 = vpop.f32.mrb[93].mxu1 }
0x1074   :  { %v5737_v27 = vadd.f32 %v5690_v46, %v3171_v41  ;;  %v5739_v24 = vadd.f32 %v5731_v2, %v3244_v60  ;;  %v5692_v35 = vpop.f32.mrb[94].mxu0  ;;  %v5733_v55 = vpop.f32.mrb[94].mxu1 }
0x1075   :  { %v6501_v7 = vmul.f32 -1.442695, %v5736_v6  ;;  %v5693_v15 = vpop.f32.mrb[95].mxu0  ;;  %v5734_v33 = vpop.f32.mrb[95].mxu1 }
0x1076   :  { %v6502_v52 = vmul.f32 -1.442695, %v5737_v27  ;;  %v6503_v34 = vmul.f32 -1.442695, %v5739_v24 }
0x1077   :  { %7049 = vpow2.f32 %v6501_v7 }
0x1078   :  { %7051 = vpow2.f32 %v6502_v52 }
0x1079   :  { %7053 = vpow2.f32 %v6503_v34 }
0x107a   :  { %7055 = vtanh.f32 %v5738_v10 }
0x1081   :  { %v7050_v9 = vpop.eup %7049 }
0x1082   :  { %v7052_v43 = vpop.eup %7051  ;;  %v5743_v50 = vadd.f32 1.0, %v7050_v9 }
0x1083   :  { %v5749_v30 = vadd.f32 1.0, %v7052_v43  ;;  %v7054_v25 = vpop.eup %7053 }
0x1084   :  { %7057 = vrcp.f32 %v5743_v50  ;;  %v7056_v29 = vpop.eup %7055  ;;  %v5756_v53 = vadd.f32 1.0, %v7054_v25 }
0x1085   :  { %7059 = vrcp.f32 %v5749_v30 }
0x1086   :  { %7061 = vrcp.f32 %v5756_v53 }
0x108e   :  { %v7058_v49 = vpop.eup %7057 }
0x108f   :  { %v7060_v11 = vpop.eup %7059  ;;  %v5760_v5 = vmul.f32 %v7058_v49, %v7056_v29 }
0x1090   :  { %v5759_v17 = vmul.f32 %v7060_v11, %v8451_v26  ;;  %v7062_v21 = vpop.eup %7061 }
0x1092   :  { %v5761_v38 = vadd.f32 %v5760_v5, %v5759_v17 }
0x1094   :  { %7063 = vtanh.f32 %v5761_v38 }
0x109e   :  { %v7064_v4 = vpop.eup %7063 }
0x109f   :  { %v5763_v19 = vmul.f32 %v7064_v4, %v7062_v21 }
0x10a1   :  { %v5770_v28 = vpack.c.bf16 %v5763_v19, %v5763_v19 }
0x10a3   :  { %6539 = vmatmul.mubr.bf16.vlgmr.msra.gmra.mrb[96].mxu0 %v5770_v28 }
0x1176   :  { %v5876_v56 = vpop.f32.mrb[96].mxu0 }
0x1177   :  { %v5877_v59 = vadd.f32 %v6504_v36, %v5876_v56  ;;  %v6540_v61 = vpop.f32.mrb[97].mxu0 }
0x1178   :  { %v5879_v63 = vpop.f32.mrb[98].mxu0 }
0x1179   :  { %5882 = vst.msk [vmem:[%s8503_s9] sm:$0xff] %vm156_vm0, %v5877_v59  ;;  %v6541_v44 = vpop.f32.mrb[99].mxu0 }
0x117a   :  { %5887 = vsyncpa [#allocation9], 1 }
0x117b   :  { %5888 = vsyncpa [#allocation11], 1 }

</bundles_post_ra>
